<compile_context>
chip_gen: v7x
topology: tpu7x:2x2x1
jax: 0.10.0
libtpu: 0.0.40
codegen_flags: <defaults>
</compile_context>

<pallas_src>
import jax
import jax.numpy as jnp
import numpy as np
from jax import lax
from jax.experimental import pallas as pl
from jax.experimental.pallas import tpu as pltpu  # noqa: F401  (TPU tuning hooks)


# ------------------------------ Fused kernel ------------------------------- #

def _make_fused_kernel(num_layers, T, Bp, Hp):
    """Kernel args: x_flat, wih0, whh0, b0, (wstack_l, b_l)*, wfc, bfc -> out."""
    n_stack = num_layers - 1

    def kernel(*refs):
        x_ref = refs[0]                                    # (T*Bp, D)
        wih0_ref, whh0_ref, b0_ref = refs[1:4]             # (D,4Hp) (Hp,4Hp) (1,4Hp)
        stack_refs = refs[4:4 + 2 * n_stack]               # [(2Hp,4Hp), (1,4Hp)] * (L-1)
        wfc_ref = refs[4 + 2 * n_stack]                    # (Hp, O)
        bfc_ref = refs[5 + 2 * n_stack]                    # (1, O)
        out_ref = refs[6 + 2 * n_stack]                    # (Bp, O)

        # ---- Off the serial chain: hoisted layer-0 input projection, bias folded.
        gx0 = jnp.dot(x_ref[...], wih0_ref[...],
                      preferred_element_type=jnp.float32) + b0_ref[...]   # (T*Bp, 4Hp)

        whh0 = whh0_ref[...]
        wstk = [stack_refs[2 * i][...] for i in range(n_stack)]
        bstk = [stack_refs[2 * i + 1][...] for i in range(n_stack)]

        def lstm_cell(gates, c_prev):
            # i/f/o weight columns were pre-scaled by 0.5 at weight prep, so
            # sigmoid(x) == 0.5*tanh(x/2)+0.5: ONE EUP tanh launch + one FMA.
            y = jnp.tanh(gates)                            # (Bp, 4*Hp)
            z = 0.5 * y + 0.5
            i = z[:, 0 * Hp:1 * Hp]
            f = z[:, 1 * Hp:2 * Hp]
            g = y[:, 2 * Hp:3 * Hp]
            o = z[:, 3 * Hp:4 * Hp]
            c_new = f * c_prev + i * g
            h_new = o * jnp.tanh(c_new)
            return h_new, c_new

        zero = jnp.zeros((Bp, Hp), jnp.float32)
        h = [zero] * num_layers
        c = [zero] * num_layers

        # Fully unrolled time loop with layers interleaved per timestep.
        for t in range(T):
            # layer 0: only the recurrent matmul is on the serial chain;
            # the gx0 slice is an 8-sublane-aligned static whole-tile read.
            gates0 = gx0[t * Bp:(t + 1) * Bp, :] + jnp.dot(
                h[0], whh0, preferred_element_type=jnp.float32)
            h[0], c[0] = lstm_cell(gates0, c[0])
            # layers >= 1: single fused [h_{l-1,t} | h_{l,t-1}] matmul,
            # 2*Hp-deep contraction.
            for l in range(1, num_layers):
                lhs = jnp.concatenate([h[l - 1], h[l]], axis=1)        # (Bp, 2*Hp)
                gates = jnp.dot(lhs, wstk[l - 1],
                                preferred_element_type=jnp.float32) + bstk[l - 1]
                h[l], c[l] = lstm_cell(gates, c[l])

        # Final Linear on the last layer's last-timestep hidden state.
        out_ref[...] = (jnp.dot(h[-1], wfc_ref[...],
                                preferred_element_type=jnp.float32) + bfc_ref[...])

    return kernel


# ------------------------- One-time weight preparation ----------------------- #

def _pad_and_prescale_gate_cols(m, H, Hp):
    """(rows, 4H) PyTorch gate order [i|f|g|o] -> (rows, 4*Hp); i/f/o cols * 0.5."""
    parts = []
    for gidx in range(4):
        blk = m[:, gidx * H:(gidx + 1) * H]
        if gidx != 2:                       # i, f, o: sigmoid-via-tanh prescale
            blk = blk * 0.5
        parts.append(jnp.pad(blk, ((0, 0), (0, Hp - H))))
    return jnp.concatenate(parts, axis=1)


def prepare_weights(params):
    """Hoisted out of the per-call path: transpose/pad/stack/prescale once."""
    H = params["lstm"][0][1].shape[1]               # w_hh: (4H, H)
    Hp = 128 * pl.cdiv(H, 128)                      # lane-aligned per-gate width
    O = params["fc_w"].shape[0]

    weights = {"wstack": [], "bstack": []}
    for layer, (w_ih, w_hh, b_ih, b_hh) in enumerate(params["lstm"]):
        wih = _pad_and_prescale_gate_cols(w_ih.T, H, Hp)               # (Din, 4*Hp)
        whh = jnp.pad(_pad_and_prescale_gate_cols(w_hh.T, H, Hp),
                      ((0, Hp - H), (0, 0)))                           # (Hp, 4*Hp)
        b = _pad_and_prescale_gate_cols((b_ih + b_hh).reshape(1, 4 * H), H, Hp)
        if layer == 0:
            weights["wih0"], weights["whh0"], weights["b0"] = wih, whh, b
        else:
            wih = jnp.pad(wih, ((0, Hp - wih.shape[0]), (0, 0)))       # Din==H -> Hp
            weights["wstack"].append(jnp.concatenate([wih, whh], axis=0))  # (2Hp,4Hp)
            weights["bstack"].append(b)

    weights["wfc"] = jnp.pad(params["fc_w"].T, ((0, Hp - H), (0, 0)))  # (Hp, O)
    weights["bfc"] = params["fc_b"].reshape(1, O)
    return weights


# --------------------------------- Wrapper ---------------------------------- #

@jax.jit
def lstm_model_forward(x_btd, weights):
    """Forward pass matching the PyTorch LSTMModel.

    x_btd: (B, T, input_size) float32 (batch_first=True).
    weights: output of prepare_weights(params) (computed once).
    Returns: (B, output_size).
    """
    B, T, D = x_btd.shape
    Hp = weights["whh0"].shape[0]
    O = weights["wfc"].shape[1]
    num_layers = 1 + len(weights["wstack"])
    Bp = 8 * pl.cdiv(B, 8)                          # sublane-aligned padded batch

    # Layout plumbing in XLA (fuses into the HBM->VMEM copy): time-major,
    # batch padded to a whole sublane tile, flattened to (T*Bp, D).
    x_t = jnp.transpose(x_btd, (1, 0, 2))                     # (T, B, D)
    x_t = jnp.pad(x_t, ((0, 0), (0, Bp - B), (0, 0)))         # (T, Bp, D)
    x_flat = x_t.reshape(T * Bp, D)

    flat = [weights["wih0"], weights["whh0"], weights["b0"]]
    for w, b in zip(weights["wstack"], weights["bstack"]):
        flat += [w, b]
    flat += [weights["wfc"], weights["bfc"]]

    kernel = _make_fused_kernel(num_layers, T, Bp, Hp)
    out = pl.pallas_call(
        kernel,
        out_shape=jax.ShapeDtypeStruct((Bp, O), jnp.float32),
    )(x_flat, *flat)
    return out[:B]


# -------------------------- Deterministic params ---------------------------- #

def init_params(key, input_size, hidden_size, output_size, num_layers):
    """PyTorch-style uniform(-1/sqrt(H), 1/sqrt(H)) init, deterministic."""
    k = 1.0 / np.sqrt(hidden_size)
    params = {"lstm": []}
    for layer in range(num_layers):
        d_in = input_size if layer == 0 else hidden_size
        key, k1, k2, k3, k4 = jax.random.split(key, 5)
        w_ih = jax.random.uniform(k1, (4 * hidden_size, d_in), jnp.float32, -k, k)
        w_hh = jax.random.uniform(k2, (4 * hidden_size, hidden_size), jnp.float32, -k, k)
        b_ih = jax.random.uniform(k3, (4 * hidden_size,), jnp.float32, -k, k)
        b_hh = jax.random.uniform(k4, (4 * hidden_size,), jnp.float32, -k, k)
        params["lstm"].append((w_ih, w_hh, b_ih, b_hh))
    key, k5, k6 = jax.random.split(key, 3)
    params["fc_w"] = jax.random.uniform(k5, (output_size, hidden_size), jnp.float32, -k, k)
    params["fc_b"] = jax.random.uniform(k6, (output_size,), jnp.float32, -k, k)
    return params


# ---------------------------- Pure-JAX reference ---------------------------- #

def lstm_model_reference(x_btd, params):
    h_seq = jnp.transpose(x_btd, (1, 0, 2))          # (T, B, D)
    for (w_ih, w_hh, b_ih, b_hh) in params["lstm"]:
        H = w_hh.shape[1]
        B = h_seq.shape[1]

        def step(carry, x_t):
            h, c = carry
            gates = x_t @ w_ih.T + h @ w_hh.T + b_ih + b_hh
            i = jax.nn.sigmoid(gates[:, 0 * H:1 * H])
            f = jax.nn.sigmoid(gates[:, 1 * H:2 * H])
            g = jnp.tanh(gates[:, 2 * H:3 * H])
            o = jax.nn.sigmoid(gates[:, 3 * H:4 * H])
            c = f * c + i * g
            h = o * jnp.tanh(c)
            return (h, c), h

        init = (jnp.zeros((B, H), jnp.float32), jnp.zeros((B, H), jnp.float32))
        _, h_seq = lax.scan(step, init, h_seq)
    h_last = h_seq[-1]
    return h_last @ params["fc_w"].T + params["fc_b"]


# ----------------------------------- Main ----------------------------------- #

if __name__ == "__main__":
    B, T = 2, 8
    input_size = 4          # == data_scaled.shape[1]
    hidden_size = 64        # module constant
    output_size = 4         # == input_size
    num_layers = 2

    key = jax.random.PRNGKey(0)
    key, xkey = jax.random.split(key)
    x = jax.random.uniform(xkey, (B, T, input_size), jnp.float32, -1.0, 1.0)

    params = init_params(key, input_size, hidden_size, output_size, num_layers)
    weights = prepare_weights(params)          # one-time, outside the hot path

    out = jax.block_until_ready(lstm_model_forward(x, weights))
    ref = jax.block_until_ready(lstm_model_reference(x, params))

    assert out.shape == (B, output_size)
    np.testing.assert_allclose(np.asarray(out), np.asarray(ref), rtol=2e-4, atol=2e-4)

    print("KERNEL_OK")
</pallas_src>

<mosaic_0001>
module attributes {stable_mosaic.version = 11 : i64} {
  func.func @kernel(%arg0: memref<64x4xf32, #tpu.memory_space<vmem>>, %arg1: memref<4x512xf32, #tpu.memory_space<vmem>>, %arg2: memref<128x512xf32, #tpu.memory_space<vmem>>, %arg3: memref<1x512xf32, #tpu.memory_space<vmem>>, %arg4: memref<256x512xf32, #tpu.memory_space<vmem>>, %arg5: memref<1x512xf32, #tpu.memory_space<vmem>>, %arg6: memref<128x4xf32, #tpu.memory_space<vmem>>, %arg7: memref<1x4xf32, #tpu.memory_space<vmem>>, %arg8: memref<8x4xf32, #tpu.memory_space<vmem>>) attributes {dimension_semantics = [], scalar_prefetch = 0 : i64, scratch_operands = 0 : i64, tpu.core_type = #tpu.core_type<tc>} {
    %c0 = arith.constant 0 : index
    %c0_0 = arith.constant 0 : index
    %0 = vector.load %arg0[%c0, %c0_0] : memref<64x4xf32, #tpu.memory_space<vmem>>, vector<64x4xf32>
    %c0_1 = arith.constant 0 : index
    %c0_2 = arith.constant 0 : index
    %1 = vector.load %arg1[%c0_1, %c0_2] : memref<4x512xf32, #tpu.memory_space<vmem>>, vector<4x512xf32>
    %cst = arith.constant dense<0.000000e+00> : vector<64x512xf32>
    %2 = tpu.matmul %0, %1, %cst {dimension_numbers = #tpu.dot_dimension_numbers<[1], [0], [0], [1], [0, 0, 1, 1], [], []>} : vector<64x4xf32>, vector<4x512xf32>, vector<64x512xf32> -> vector<64x512xf32>
    %c0_3 = arith.constant 0 : index
    %c0_4 = arith.constant 0 : index
    %3 = vector.load %arg3[%c0_3, %c0_4] : memref<1x512xf32, #tpu.memory_space<vmem>>, vector<1x512xf32>
    %4 = vector.broadcast %3 : vector<1x512xf32> to vector<64x512xf32>
    %5 = arith.addf %2, %4 : vector<64x512xf32>
    %c0_5 = arith.constant 0 : index
    %c0_6 = arith.constant 0 : index
    %6 = vector.load %arg2[%c0_5, %c0_6] : memref<128x512xf32, #tpu.memory_space<vmem>>, vector<128x512xf32>
    %c0_7 = arith.constant 0 : index
    %c0_8 = arith.constant 0 : index
    %7 = vector.load %arg4[%c0_7, %c0_8] : memref<256x512xf32, #tpu.memory_space<vmem>>, vector<256x512xf32>
    %c0_9 = arith.constant 0 : index
    %c0_10 = arith.constant 0 : index
    %8 = vector.load %arg5[%c0_9, %c0_10] : memref<1x512xf32, #tpu.memory_space<vmem>>, vector<1x512xf32>
    %cst_11 = arith.constant 0.000000e+00 : f32
    %9 = vector.broadcast %cst_11 : f32 to vector<8x128xf32>
    %10 = vector.extract_strided_slice %5 {offsets = [0, 0], sizes = [8, 512], strides = [1, 1]} : vector<64x512xf32> to vector<8x512xf32>
    %cst_12 = arith.constant dense<0.000000e+00> : vector<8x512xf32>
    %11 = tpu.matmul %9, %6, %cst_12 {dimension_numbers = #tpu.dot_dimension_numbers<[1], [0], [0], [1], [0, 0, 1, 1], [], []>} : vector<8x128xf32>, vector<128x512xf32>, vector<8x512xf32> -> vector<8x512xf32>
    %12 = arith.addf %10, %11 : vector<8x512xf32>
    %13 = math.tanh %12 : vector<8x512xf32>
    %cst_13 = arith.constant 5.000000e-01 : f32
    %14 = vector.broadcast %cst_13 : f32 to vector<8x512xf32>
    %15 = arith.mulf %14, %13 : vector<8x512xf32>
    %cst_14 = arith.constant 5.000000e-01 : f32
    %16 = vector.broadcast %cst_14 : f32 to vector<8x512xf32>
    %17 = arith.addf %15, %16 : vector<8x512xf32>
    %18 = vector.extract_strided_slice %17 {offsets = [0, 0], sizes = [8, 128], strides = [1, 1]} : vector<8x512xf32> to vector<8x128xf32>
    %19 = vector.extract_strided_slice %17 {offsets = [0, 128], sizes = [8, 128], strides = [1, 1]} : vector<8x512xf32> to vector<8x128xf32>
    %20 = vector.extract_strided_slice %13 {offsets = [0, 256], sizes = [8, 128], strides = [1, 1]} : vector<8x512xf32> to vector<8x128xf32>
    %21 = vector.extract_strided_slice %17 {offsets = [0, 384], sizes = [8, 128], strides = [1, 1]} : vector<8x512xf32> to vector<8x128xf32>
    %22 = arith.mulf %19, %9 : vector<8x128xf32>
    %23 = arith.mulf %18, %20 : vector<8x128xf32>
    %24 = arith.addf %22, %23 : vector<8x128xf32>
    %25 = math.tanh %24 : vector<8x128xf32>
    %26 = arith.mulf %21, %25 : vector<8x128xf32>
    %27 = tpu.concatenate %26, %9 in 1 : vector<8x128xf32>, vector<8x128xf32> -> vector<8x256xf32>
    %cst_15 = arith.constant dense<0.000000e+00> : vector<8x512xf32>
    %28 = tpu.matmul %27, %7, %cst_15 {dimension_numbers = #tpu.dot_dimension_numbers<[1], [0], [0], [1], [0, 0, 1, 1], [], []>} : vector<8x256xf32>, vector<256x512xf32>, vector<8x512xf32> -> vector<8x512xf32>
    %29 = vector.broadcast %8 : vector<1x512xf32> to vector<8x512xf32>
    %30 = arith.addf %28, %29 : vector<8x512xf32>
    %31 = math.tanh %30 : vector<8x512xf32>
    %cst_16 = arith.constant 5.000000e-01 : f32
    %32 = vector.broadcast %cst_16 : f32 to vector<8x512xf32>
    %33 = arith.mulf %32, %31 : vector<8x512xf32>
    %cst_17 = arith.constant 5.000000e-01 : f32
    %34 = vector.broadcast %cst_17 : f32 to vector<8x512xf32>
    %35 = arith.addf %33, %34 : vector<8x512xf32>
    %36 = vector.extract_strided_slice %35 {offsets = [0, 0], sizes = [8, 128], strides = [1, 1]} : vector<8x512xf32> to vector<8x128xf32>
    %37 = vector.extract_strided_slice %35 {offsets = [0, 128], sizes = [8, 128], strides = [1, 1]} : vector<8x512xf32> to vector<8x128xf32>
    %38 = vector.extract_strided_slice %31 {offsets = [0, 256], sizes = [8, 128], strides = [1, 1]} : vector<8x512xf32> to vector<8x128xf32>
    %39 = vector.extract_strided_slice %35 {offsets = [0, 384], sizes = [8, 128], strides = [1, 1]} : vector<8x512xf32> to vector<8x128xf32>
    %40 = arith.mulf %37, %9 : vector<8x128xf32>
    %41 = arith.mulf %36, %38 : vector<8x128xf32>
    %42 = arith.addf %40, %41 : vector<8x128xf32>
    %43 = math.tanh %42 : vector<8x128xf32>
    %44 = arith.mulf %39, %43 : vector<8x128xf32>
    %45 = vector.extract_strided_slice %5 {offsets = [8, 0], sizes = [8, 512], strides = [1, 1]} : vector<64x512xf32> to vector<8x512xf32>
    %cst_18 = arith.constant dense<0.000000e+00> : vector<8x512xf32>
    %46 = tpu.matmul %26, %6, %cst_18 {dimension_numbers = #tpu.dot_dimension_numbers<[1], [0], [0], [1], [0, 0, 1, 1], [], []>} : vector<8x128xf32>, vector<128x512xf32>, vector<8x512xf32> -> vector<8x512xf32>
    %47 = arith.addf %45, %46 : vector<8x512xf32>
    %48 = math.tanh %47 : vector<8x512xf32>
    %cst_19 = arith.constant 5.000000e-01 : f32
    %49 = vector.broadcast %cst_19 : f32 to vector<8x512xf32>
    %50 = arith.mulf %49, %48 : vector<8x512xf32>
    %cst_20 = arith.constant 5.000000e-01 : f32
    %51 = vector.broadcast %cst_20 : f32 to vector<8x512xf32>
    %52 = arith.addf %50, %51 : vector<8x512xf32>
    %53 = vector.extract_strided_slice %52 {offsets = [0, 0], sizes = [8, 128], strides = [1, 1]} : vector<8x512xf32> to vector<8x128xf32>
    %54 = vector.extract_strided_slice %52 {offsets = [0, 128], sizes = [8, 128], strides = [1, 1]} : vector<8x512xf32> to vector<8x128xf32>
    %55 = vector.extract_strided_slice %48 {offsets = [0, 256], sizes = [8, 128], strides = [1, 1]} : vector<8x512xf32> to vector<8x128xf32>
    %56 = vector.extract_strided_slice %52 {offsets = [0, 384], sizes = [8, 128], strides = [1, 1]} : vector<8x512xf32> to vector<8x128xf32>
    %57 = arith.mulf %54, %24 : vector<8x128xf32>
    %58 = arith.mulf %53, %55 : vector<8x128xf32>
    %59 = arith.addf %57, %58 : vector<8x128xf32>
    %60 = math.tanh %59 : vector<8x128xf32>
    %61 = arith.mulf %56, %60 : vector<8x128xf32>
    %62 = tpu.concatenate %61, %44 in 1 : vector<8x128xf32>, vector<8x128xf32> -> vector<8x256xf32>
    %cst_21 = arith.constant dense<0.000000e+00> : vector<8x512xf32>
    %63 = tpu.matmul %62, %7, %cst_21 {dimension_numbers = #tpu.dot_dimension_numbers<[1], [0], [0], [1], [0, 0, 1, 1], [], []>} : vector<8x256xf32>, vector<256x512xf32>, vector<8x512xf32> -> vector<8x512xf32>
    %64 = vector.broadcast %8 : vector<1x512xf32> to vector<8x512xf32>
    %65 = arith.addf %63, %64 : vector<8x512xf32>
    %66 = math.tanh %65 : vector<8x512xf32>
    %cst_22 = arith.constant 5.000000e-01 : f32
    %67 = vector.broadcast %cst_22 : f32 to vector<8x512xf32>
    %68 = arith.mulf %67, %66 : vector<8x512xf32>
    %cst_23 = arith.constant 5.000000e-01 : f32
    %69 = vector.broadcast %cst_23 : f32 to vector<8x512xf32>
    %70 = arith.addf %68, %69 : vector<8x512xf32>
    %71 = vector.extract_strided_slice %70 {offsets = [0, 0], sizes = [8, 128], strides = [1, 1]} : vector<8x512xf32> to vector<8x128xf32>
    %72 = vector.extract_strided_slice %70 {offsets = [0, 128], sizes = [8, 128], strides = [1, 1]} : vector<8x512xf32> to vector<8x128xf32>
    %73 = vector.extract_strided_slice %66 {offsets = [0, 256], sizes = [8, 128], strides = [1, 1]} : vector<8x512xf32> to vector<8x128xf32>
    %74 = vector.extract_strided_slice %70 {offsets = [0, 384], sizes = [8, 128], strides = [1, 1]} : vector<8x512xf32> to vector<8x128xf32>
    %75 = arith.mulf %72, %42 : vector<8x128xf32>
    %76 = arith.mulf %71, %73 : vector<8x128xf32>
    %77 = arith.addf %75, %76 : vector<8x128xf32>
    %78 = math.tanh %77 : vector<8x128xf32>
    %79 = arith.mulf %74, %78 : vector<8x128xf32>
    %80 = vector.extract_strided_slice %5 {offsets = [16, 0], sizes = [8, 512], strides = [1, 1]} : vector<64x512xf32> to vector<8x512xf32>
    %cst_24 = arith.constant dense<0.000000e+00> : vector<8x512xf32>
    %81 = tpu.matmul %61, %6, %cst_24 {dimension_numbers = #tpu.dot_dimension_numbers<[1], [0], [0], [1], [0, 0, 1, 1], [], []>} : vector<8x128xf32>, vector<128x512xf32>, vector<8x512xf32> -> vector<8x512xf32>
    %82 = arith.addf %80, %81 : vector<8x512xf32>
    %83 = math.tanh %82 : vector<8x512xf32>
    %cst_25 = arith.constant 5.000000e-01 : f32
    %84 = vector.broadcast %cst_25 : f32 to vector<8x512xf32>
    %85 = arith.mulf %84, %83 : vector<8x512xf32>
    %cst_26 = arith.constant 5.000000e-01 : f32
    %86 = vector.broadcast %cst_26 : f32 to vector<8x512xf32>
    %87 = arith.addf %85, %86 : vector<8x512xf32>
    %88 = vector.extract_strided_slice %87 {offsets = [0, 0], sizes = [8, 128], strides = [1, 1]} : vector<8x512xf32> to vector<8x128xf32>
    %89 = vector.extract_strided_slice %87 {offsets = [0, 128], sizes = [8, 128], strides = [1, 1]} : vector<8x512xf32> to vector<8x128xf32>
    %90 = vector.extract_strided_slice %83 {offsets = [0, 256], sizes = [8, 128], strides = [1, 1]} : vector<8x512xf32> to vector<8x128xf32>
    %91 = vector.extract_strided_slice %87 {offsets = [0, 384], sizes = [8, 128], strides = [1, 1]} : vector<8x512xf32> to vector<8x128xf32>
    %92 = arith.mulf %89, %59 : vector<8x128xf32>
    %93 = arith.mulf %88, %90 : vector<8x128xf32>
    %94 = arith.addf %92, %93 : vector<8x128xf32>
    %95 = math.tanh %94 : vector<8x128xf32>
    %96 = arith.mulf %91, %95 : vector<8x128xf32>
    %97 = tpu.concatenate %96, %79 in 1 : vector<8x128xf32>, vector<8x128xf32> -> vector<8x256xf32>
    %cst_27 = arith.constant dense<0.000000e+00> : vector<8x512xf32>
    %98 = tpu.matmul %97, %7, %cst_27 {dimension_numbers = #tpu.dot_dimension_numbers<[1], [0], [0], [1], [0, 0, 1, 1], [], []>} : vector<8x256xf32>, vector<256x512xf32>, vector<8x512xf32> -> vector<8x512xf32>
    %99 = vector.broadcast %8 : vector<1x512xf32> to vector<8x512xf32>
    %100 = arith.addf %98, %99 : vector<8x512xf32>
    %101 = math.tanh %100 : vector<8x512xf32>
    %cst_28 = arith.constant 5.000000e-01 : f32
    %102 = vector.broadcast %cst_28 : f32 to vector<8x512xf32>
    %103 = arith.mulf %102, %101 : vector<8x512xf32>
    %cst_29 = arith.constant 5.000000e-01 : f32
    %104 = vector.broadcast %cst_29 : f32 to vector<8x512xf32>
    %105 = arith.addf %103, %104 : vector<8x512xf32>
    %106 = vector.extract_strided_slice %105 {offsets = [0, 0], sizes = [8, 128], strides = [1, 1]} : vector<8x512xf32> to vector<8x128xf32>
    %107 = vector.extract_strided_slice %105 {offsets = [0, 128], sizes = [8, 128], strides = [1, 1]} : vector<8x512xf32> to vector<8x128xf32>
    %108 = vector.extract_strided_slice %101 {offsets = [0, 256], sizes = [8, 128], strides = [1, 1]} : vector<8x512xf32> to vector<8x128xf32>
    %109 = vector.extract_strided_slice %105 {offsets = [0, 384], sizes = [8, 128], strides = [1, 1]} : vector<8x512xf32> to vector<8x128xf32>
    %110 = arith.mulf %107, %77 : vector<8x128xf32>
    %111 = arith.mulf %106, %108 : vector<8x128xf32>
    %112 = arith.addf %110, %111 : vector<8x128xf32>
    %113 = math.tanh %112 : vector<8x128xf32>
    %114 = arith.mulf %109, %113 : vector<8x128xf32>
    %115 = vector.extract_strided_slice %5 {offsets = [24, 0], sizes = [8, 512], strides = [1, 1]} : vector<64x512xf32> to vector<8x512xf32>
    %cst_30 = arith.constant dense<0.000000e+00> : vector<8x512xf32>
    %116 = tpu.matmul %96, %6, %cst_30 {dimension_numbers = #tpu.dot_dimension_numbers<[1], [0], [0], [1], [0, 0, 1, 1], [], []>} : vector<8x128xf32>, vector<128x512xf32>, vector<8x512xf32> -> vector<8x512xf32>
    %117 = arith.addf %115, %116 : vector<8x512xf32>
    %118 = math.tanh %117 : vector<8x512xf32>
    %cst_31 = arith.constant 5.000000e-01 : f32
    %119 = vector.broadcast %cst_31 : f32 to vector<8x512xf32>
    %120 = arith.mulf %119, %118 : vector<8x512xf32>
    %cst_32 = arith.constant 5.000000e-01 : f32
    %121 = vector.broadcast %cst_32 : f32 to vector<8x512xf32>
    %122 = arith.addf %120, %121 : vector<8x512xf32>
    %123 = vector.extract_strided_slice %122 {offsets = [0, 0], sizes = [8, 128], strides = [1, 1]} : vector<8x512xf32> to vector<8x128xf32>
    %124 = vector.extract_strided_slice %122 {offsets = [0, 128], sizes = [8, 128], strides = [1, 1]} : vector<8x512xf32> to vector<8x128xf32>
    %125 = vector.extract_strided_slice %118 {offsets = [0, 256], sizes = [8, 128], strides = [1, 1]} : vector<8x512xf32> to vector<8x128xf32>
    %126 = vector.extract_strided_slice %122 {offsets = [0, 384], sizes = [8, 128], strides = [1, 1]} : vector<8x512xf32> to vector<8x128xf32>
    %127 = arith.mulf %124, %94 : vector<8x128xf32>
    %128 = arith.mulf %123, %125 : vector<8x128xf32>
    %129 = arith.addf %127, %128 : vector<8x128xf32>
    %130 = math.tanh %129 : vector<8x128xf32>
    %131 = arith.mulf %126, %130 : vector<8x128xf32>
    %132 = tpu.concatenate %131, %114 in 1 : vector<8x128xf32>, vector<8x128xf32> -> vector<8x256xf32>
    %cst_33 = arith.constant dense<0.000000e+00> : vector<8x512xf32>
    %133 = tpu.matmul %132, %7, %cst_33 {dimension_numbers = #tpu.dot_dimension_numbers<[1], [0], [0], [1], [0, 0, 1, 1], [], []>} : vector<8x256xf32>, vector<256x512xf32>, vector<8x512xf32> -> vector<8x512xf32>
    %134 = vector.broadcast %8 : vector<1x512xf32> to vector<8x512xf32>
    %135 = arith.addf %133, %134 : vector<8x512xf32>
    %136 = math.tanh %135 : vector<8x512xf32>
    %cst_34 = arith.constant 5.000000e-01 : f32
    %137 = vector.broadcast %cst_34 : f32 to vector<8x512xf32>
    %138 = arith.mulf %137, %136 : vector<8x512xf32>
    %cst_35 = arith.constant 5.000000e-01 : f32
    %139 = vector.broadcast %cst_35 : f32 to vector<8x512xf32>
    %140 = arith.addf %138, %139 : vector<8x512xf32>
    %141 = vector.extract_strided_slice %140 {offsets = [0, 0], sizes = [8, 128], strides = [1, 1]} : vector<8x512xf32> to vector<8x128xf32>
    %142 = vector.extract_strided_slice %140 {offsets = [0, 128], sizes = [8, 128], strides = [1, 1]} : vector<8x512xf32> to vector<8x128xf32>
    %143 = vector.extract_strided_slice %136 {offsets = [0, 256], sizes = [8, 128], strides = [1, 1]} : vector<8x512xf32> to vector<8x128xf32>
    %144 = vector.extract_strided_slice %140 {offsets = [0, 384], sizes = [8, 128], strides = [1, 1]} : vector<8x512xf32> to vector<8x128xf32>
    %145 = arith.mulf %142, %112 : vector<8x128xf32>
    %146 = arith.mulf %141, %143 : vector<8x128xf32>
    %147 = arith.addf %145, %146 : vector<8x128xf32>
    %148 = math.tanh %147 : vector<8x128xf32>
    %149 = arith.mulf %144, %148 : vector<8x128xf32>
    %150 = vector.extract_strided_slice %5 {offsets = [32, 0], sizes = [8, 512], strides = [1, 1]} : vector<64x512xf32> to vector<8x512xf32>
    %cst_36 = arith.constant dense<0.000000e+00> : vector<8x512xf32>
    %151 = tpu.matmul %131, %6, %cst_36 {dimension_numbers = #tpu.dot_dimension_numbers<[1], [0], [0], [1], [0, 0, 1, 1], [], []>} : vector<8x128xf32>, vector<128x512xf32>, vector<8x512xf32> -> vector<8x512xf32>
    %152 = arith.addf %150, %151 : vector<8x512xf32>
    %153 = math.tanh %152 : vector<8x512xf32>
    %cst_37 = arith.constant 5.000000e-01 : f32
    %154 = vector.broadcast %cst_37 : f32 to vector<8x512xf32>
    %155 = arith.mulf %154, %153 : vector<8x512xf32>
    %cst_38 = arith.constant 5.000000e-01 : f32
    %156 = vector.broadcast %cst_38 : f32 to vector<8x512xf32>
    %157 = arith.addf %155, %156 : vector<8x512xf32>
    %158 = vector.extract_strided_slice %157 {offsets = [0, 0], sizes = [8, 128], strides = [1, 1]} : vector<8x512xf32> to vector<8x128xf32>
    %159 = vector.extract_strided_slice %157 {offsets = [0, 128], sizes = [8, 128], strides = [1, 1]} : vector<8x512xf32> to vector<8x128xf32>
    %160 = vector.extract_strided_slice %153 {offsets = [0, 256], sizes = [8, 128], strides = [1, 1]} : vector<8x512xf32> to vector<8x128xf32>
    %161 = vector.extract_strided_slice %157 {offsets = [0, 384], sizes = [8, 128], strides = [1, 1]} : vector<8x512xf32> to vector<8x128xf32>
    %162 = arith.mulf %159, %129 : vector<8x128xf32>
    %163 = arith.mulf %158, %160 : vector<8x128xf32>
    %164 = arith.addf %162, %163 : vector<8x128xf32>
    %165 = math.tanh %164 : vector<8x128xf32>
    %166 = arith.mulf %161, %165 : vector<8x128xf32>
    %167 = tpu.concatenate %166, %149 in 1 : vector<8x128xf32>, vector<8x128xf32> -> vector<8x256xf32>
    %cst_39 = arith.constant dense<0.000000e+00> : vector<8x512xf32>
    %168 = tpu.matmul %167, %7, %cst_39 {dimension_numbers = #tpu.dot_dimension_numbers<[1], [0], [0], [1], [0, 0, 1, 1], [], []>} : vector<8x256xf32>, vector<256x512xf32>, vector<8x512xf32> -> vector<8x512xf32>
    %169 = vector.broadcast %8 : vector<1x512xf32> to vector<8x512xf32>
    %170 = arith.addf %168, %169 : vector<8x512xf32>
    %171 = math.tanh %170 : vector<8x512xf32>
    %cst_40 = arith.constant 5.000000e-01 : f32
    %172 = vector.broadcast %cst_40 : f32 to vector<8x512xf32>
    %173 = arith.mulf %172, %171 : vector<8x512xf32>
    %cst_41 = arith.constant 5.000000e-01 : f32
    %174 = vector.broadcast %cst_41 : f32 to vector<8x512xf32>
    %175 = arith.addf %173, %174 : vector<8x512xf32>
    %176 = vector.extract_strided_slice %175 {offsets = [0, 0], sizes = [8, 128], strides = [1, 1]} : vector<8x512xf32> to vector<8x128xf32>
    %177 = vector.extract_strided_slice %175 {offsets = [0, 128], sizes = [8, 128], strides = [1, 1]} : vector<8x512xf32> to vector<8x128xf32>
    %178 = vector.extract_strided_slice %171 {offsets = [0, 256], sizes = [8, 128], strides = [1, 1]} : vector<8x512xf32> to vector<8x128xf32>
    %179 = vector.extract_strided_slice %175 {offsets = [0, 384], sizes = [8, 128], strides = [1, 1]} : vector<8x512xf32> to vector<8x128xf32>
    %180 = arith.mulf %177, %147 : vector<8x128xf32>
    %181 = arith.mulf %176, %178 : vector<8x128xf32>
    %182 = arith.addf %180, %181 : vector<8x128xf32>
    %183 = math.tanh %182 : vector<8x128xf32>
    %184 = arith.mulf %179, %183 : vector<8x128xf32>
    %185 = vector.extract_strided_slice %5 {offsets = [40, 0], sizes = [8, 512], strides = [1, 1]} : vector<64x512xf32> to vector<8x512xf32>
    %cst_42 = arith.constant dense<0.000000e+00> : vector<8x512xf32>
    %186 = tpu.matmul %166, %6, %cst_42 {dimension_numbers = #tpu.dot_dimension_numbers<[1], [0], [0], [1], [0, 0, 1, 1], [], []>} : vector<8x128xf32>, vector<128x512xf32>, vector<8x512xf32> -> vector<8x512xf32>
    %187 = arith.addf %185, %186 : vector<8x512xf32>
    %188 = math.tanh %187 : vector<8x512xf32>
    %cst_43 = arith.constant 5.000000e-01 : f32
    %189 = vector.broadcast %cst_43 : f32 to vector<8x512xf32>
    %190 = arith.mulf %189, %188 : vector<8x512xf32>
    %cst_44 = arith.constant 5.000000e-01 : f32
    %191 = vector.broadcast %cst_44 : f32 to vector<8x512xf32>
    %192 = arith.addf %190, %191 : vector<8x512xf32>
    %193 = vector.extract_strided_slice %192 {offsets = [0, 0], sizes = [8, 128], strides = [1, 1]} : vector<8x512xf32> to vector<8x128xf32>
    %194 = vector.extract_strided_slice %192 {offsets = [0, 128], sizes = [8, 128], strides = [1, 1]} : vector<8x512xf32> to vector<8x128xf32>
    %195 = vector.extract_strided_slice %188 {offsets = [0, 256], sizes = [8, 128], strides = [1, 1]} : vector<8x512xf32> to vector<8x128xf32>
    %196 = vector.extract_strided_slice %192 {offsets = [0, 384], sizes = [8, 128], strides = [1, 1]} : vector<8x512xf32> to vector<8x128xf32>
    %197 = arith.mulf %194, %164 : vector<8x128xf32>
    %198 = arith.mulf %193, %195 : vector<8x128xf32>
    %199 = arith.addf %197, %198 : vector<8x128xf32>
    %200 = math.tanh %199 : vector<8x128xf32>
    %201 = arith.mulf %196, %200 : vector<8x128xf32>
    %202 = tpu.concatenate %201, %184 in 1 : vector<8x128xf32>, vector<8x128xf32> -> vector<8x256xf32>
    %cst_45 = arith.constant dense<0.000000e+00> : vector<8x512xf32>
    %203 = tpu.matmul %202, %7, %cst_45 {dimension_numbers = #tpu.dot_dimension_numbers<[1], [0], [0], [1], [0, 0, 1, 1], [], []>} : vector<8x256xf32>, vector<256x512xf32>, vector<8x512xf32> -> vector<8x512xf32>
    %204 = vector.broadcast %8 : vector<1x512xf32> to vector<8x512xf32>
    %205 = arith.addf %203, %204 : vector<8x512xf32>
    %206 = math.tanh %205 : vector<8x512xf32>
    %cst_46 = arith.constant 5.000000e-01 : f32
    %207 = vector.broadcast %cst_46 : f32 to vector<8x512xf32>
    %208 = arith.mulf %207, %206 : vector<8x512xf32>
    %cst_47 = arith.constant 5.000000e-01 : f32
    %209 = vector.broadcast %cst_47 : f32 to vector<8x512xf32>
    %210 = arith.addf %208, %209 : vector<8x512xf32>
    %211 = vector.extract_strided_slice %210 {offsets = [0, 0], sizes = [8, 128], strides = [1, 1]} : vector<8x512xf32> to vector<8x128xf32>
    %212 = vector.extract_strided_slice %210 {offsets = [0, 128], sizes = [8, 128], strides = [1, 1]} : vector<8x512xf32> to vector<8x128xf32>
    %213 = vector.extract_strided_slice %206 {offsets = [0, 256], sizes = [8, 128], strides = [1, 1]} : vector<8x512xf32> to vector<8x128xf32>
    %214 = vector.extract_strided_slice %210 {offsets = [0, 384], sizes = [8, 128], strides = [1, 1]} : vector<8x512xf32> to vector<8x128xf32>
    %215 = arith.mulf %212, %182 : vector<8x128xf32>
    %216 = arith.mulf %211, %213 : vector<8x128xf32>
    %217 = arith.addf %215, %216 : vector<8x128xf32>
    %218 = math.tanh %217 : vector<8x128xf32>
    %219 = arith.mulf %214, %218 : vector<8x128xf32>
    %220 = vector.extract_strided_slice %5 {offsets = [48, 0], sizes = [8, 512], strides = [1, 1]} : vector<64x512xf32> to vector<8x512xf32>
    %cst_48 = arith.constant dense<0.000000e+00> : vector<8x512xf32>
    %221 = tpu.matmul %201, %6, %cst_48 {dimension_numbers = #tpu.dot_dimension_numbers<[1], [0], [0], [1], [0, 0, 1, 1], [], []>} : vector<8x128xf32>, vector<128x512xf32>, vector<8x512xf32> -> vector<8x512xf32>
    %222 = arith.addf %220, %221 : vector<8x512xf32>
    %223 = math.tanh %222 : vector<8x512xf32>
    %cst_49 = arith.constant 5.000000e-01 : f32
    %224 = vector.broadcast %cst_49 : f32 to vector<8x512xf32>
    %225 = arith.mulf %224, %223 : vector<8x512xf32>
    %cst_50 = arith.constant 5.000000e-01 : f32
    %226 = vector.broadcast %cst_50 : f32 to vector<8x512xf32>
    %227 = arith.addf %225, %226 : vector<8x512xf32>
    %228 = vector.extract_strided_slice %227 {offsets = [0, 0], sizes = [8, 128], strides = [1, 1]} : vector<8x512xf32> to vector<8x128xf32>
    %229 = vector.extract_strided_slice %227 {offsets = [0, 128], sizes = [8, 128], strides = [1, 1]} : vector<8x512xf32> to vector<8x128xf32>
    %230 = vector.extract_strided_slice %223 {offsets = [0, 256], sizes = [8, 128], strides = [1, 1]} : vector<8x512xf32> to vector<8x128xf32>
    %231 = vector.extract_strided_slice %227 {offsets = [0, 384], sizes = [8, 128], strides = [1, 1]} : vector<8x512xf32> to vector<8x128xf32>
    %232 = arith.mulf %229, %199 : vector<8x128xf32>
    %233 = arith.mulf %228, %230 : vector<8x128xf32>
    %234 = arith.addf %232, %233 : vector<8x128xf32>
    %235 = math.tanh %234 : vector<8x128xf32>
    %236 = arith.mulf %231, %235 : vector<8x128xf32>
    %237 = tpu.concatenate %236, %219 in 1 : vector<8x128xf32>, vector<8x128xf32> -> vector<8x256xf32>
    %cst_51 = arith.constant dense<0.000000e+00> : vector<8x512xf32>
    %238 = tpu.matmul %237, %7, %cst_51 {dimension_numbers = #tpu.dot_dimension_numbers<[1], [0], [0], [1], [0, 0, 1, 1], [], []>} : vector<8x256xf32>, vector<256x512xf32>, vector<8x512xf32> -> vector<8x512xf32>
    %239 = vector.broadcast %8 : vector<1x512xf32> to vector<8x512xf32>
    %240 = arith.addf %238, %239 : vector<8x512xf32>
    %241 = math.tanh %240 : vector<8x512xf32>
    %cst_52 = arith.constant 5.000000e-01 : f32
    %242 = vector.broadcast %cst_52 : f32 to vector<8x512xf32>
    %243 = arith.mulf %242, %241 : vector<8x512xf32>
    %cst_53 = arith.constant 5.000000e-01 : f32
    %244 = vector.broadcast %cst_53 : f32 to vector<8x512xf32>
    %245 = arith.addf %243, %244 : vector<8x512xf32>
    %246 = vector.extract_strided_slice %245 {offsets = [0, 0], sizes = [8, 128], strides = [1, 1]} : vector<8x512xf32> to vector<8x128xf32>
    %247 = vector.extract_strided_slice %245 {offsets = [0, 128], sizes = [8, 128], strides = [1, 1]} : vector<8x512xf32> to vector<8x128xf32>
    %248 = vector.extract_strided_slice %241 {offsets = [0, 256], sizes = [8, 128], strides = [1, 1]} : vector<8x512xf32> to vector<8x128xf32>
    %249 = vector.extract_strided_slice %245 {offsets = [0, 384], sizes = [8, 128], strides = [1, 1]} : vector<8x512xf32> to vector<8x128xf32>
    %250 = arith.mulf %247, %217 : vector<8x128xf32>
    %251 = arith.mulf %246, %248 : vector<8x128xf32>
    %252 = arith.addf %250, %251 : vector<8x128xf32>
    %253 = math.tanh %252 : vector<8x128xf32>
    %254 = arith.mulf %249, %253 : vector<8x128xf32>
    %255 = vector.extract_strided_slice %5 {offsets = [56, 0], sizes = [8, 512], strides = [1, 1]} : vector<64x512xf32> to vector<8x512xf32>
    %cst_54 = arith.constant dense<0.000000e+00> : vector<8x512xf32>
    %256 = tpu.matmul %236, %6, %cst_54 {dimension_numbers = #tpu.dot_dimension_numbers<[1], [0], [0], [1], [0, 0, 1, 1], [], []>} : vector<8x128xf32>, vector<128x512xf32>, vector<8x512xf32> -> vector<8x512xf32>
    %257 = arith.addf %255, %256 : vector<8x512xf32>
    %258 = math.tanh %257 : vector<8x512xf32>
    %cst_55 = arith.constant 5.000000e-01 : f32
    %259 = vector.broadcast %cst_55 : f32 to vector<8x512xf32>
    %260 = arith.mulf %259, %258 : vector<8x512xf32>
    %cst_56 = arith.constant 5.000000e-01 : f32
    %261 = vector.broadcast %cst_56 : f32 to vector<8x512xf32>
    %262 = arith.addf %260, %261 : vector<8x512xf32>
    %263 = vector.extract_strided_slice %262 {offsets = [0, 0], sizes = [8, 128], strides = [1, 1]} : vector<8x512xf32> to vector<8x128xf32>
    %264 = vector.extract_strided_slice %262 {offsets = [0, 128], sizes = [8, 128], strides = [1, 1]} : vector<8x512xf32> to vector<8x128xf32>
    %265 = vector.extract_strided_slice %258 {offsets = [0, 256], sizes = [8, 128], strides = [1, 1]} : vector<8x512xf32> to vector<8x128xf32>
    %266 = vector.extract_strided_slice %262 {offsets = [0, 384], sizes = [8, 128], strides = [1, 1]} : vector<8x512xf32> to vector<8x128xf32>
    %267 = arith.mulf %264, %234 : vector<8x128xf32>
    %268 = arith.mulf %263, %265 : vector<8x128xf32>
    %269 = arith.addf %267, %268 : vector<8x128xf32>
    %270 = math.tanh %269 : vector<8x128xf32>
    %271 = arith.mulf %266, %270 : vector<8x128xf32>
    %272 = tpu.concatenate %271, %254 in 1 : vector<8x128xf32>, vector<8x128xf32> -> vector<8x256xf32>
    %cst_57 = arith.constant dense<0.000000e+00> : vector<8x512xf32>
    %273 = tpu.matmul %272, %7, %cst_57 {dimension_numbers = #tpu.dot_dimension_numbers<[1], [0], [0], [1], [0, 0, 1, 1], [], []>} : vector<8x256xf32>, vector<256x512xf32>, vector<8x512xf32> -> vector<8x512xf32>
    %274 = vector.broadcast %8 : vector<1x512xf32> to vector<8x512xf32>
    %275 = arith.addf %273, %274 : vector<8x512xf32>
    %276 = math.tanh %275 : vector<8x512xf32>
    %cst_58 = arith.constant 5.000000e-01 : f32
    %277 = vector.broadcast %cst_58 : f32 to vector<8x512xf32>
    %278 = arith.mulf %277, %276 : vector<8x512xf32>
    %cst_59 = arith.constant 5.000000e-01 : f32
    %279 = vector.broadcast %cst_59 : f32 to vector<8x512xf32>
    %280 = arith.addf %278, %279 : vector<8x512xf32>
    %281 = vector.extract_strided_slice %280 {offsets = [0, 0], sizes = [8, 128], strides = [1, 1]} : vector<8x512xf32> to vector<8x128xf32>
    %282 = vector.extract_strided_slice %280 {offsets = [0, 128], sizes = [8, 128], strides = [1, 1]} : vector<8x512xf32> to vector<8x128xf32>
    %283 = vector.extract_strided_slice %276 {offsets = [0, 256], sizes = [8, 128], strides = [1, 1]} : vector<8x512xf32> to vector<8x128xf32>
    %284 = vector.extract_strided_slice %280 {offsets = [0, 384], sizes = [8, 128], strides = [1, 1]} : vector<8x512xf32> to vector<8x128xf32>
    %285 = arith.mulf %282, %252 : vector<8x128xf32>
    %286 = arith.mulf %281, %283 : vector<8x128xf32>
    %287 = arith.addf %285, %286 : vector<8x128xf32>
    %288 = math.tanh %287 : vector<8x128xf32>
    %289 = arith.mulf %284, %288 : vector<8x128xf32>
    %c0_60 = arith.constant 0 : index
    %c0_61 = arith.constant 0 : index
    %290 = vector.load %arg6[%c0_60, %c0_61] : memref<128x4xf32, #tpu.memory_space<vmem>>, vector<128x4xf32>
    %cst_62 = arith.constant dense<0.000000e+00> : vector<8x4xf32>
    %291 = tpu.matmul %289, %290, %cst_62 {dimension_numbers = #tpu.dot_dimension_numbers<[1], [0], [0], [1], [0, 0, 1, 1], [], []>} : vector<8x128xf32>, vector<128x4xf32>, vector<8x4xf32> -> vector<8x4xf32>
    %c0_63 = arith.constant 0 : index
    %c0_64 = arith.constant 0 : index
    %292 = vector.load %arg7[%c0_63, %c0_64] : memref<1x4xf32, #tpu.memory_space<vmem>>, vector<1x4xf32>
    %293 = vector.broadcast %292 : vector<1x4xf32> to vector<8x4xf32>
    %294 = arith.addf %291, %293 : vector<8x4xf32>
    %c0_65 = arith.constant 0 : index
    %c0_66 = arith.constant 0 : index
    %295 = vector.load %arg8[%c0_65, %c0_66] : memref<8x4xf32, #tpu.memory_space<vmem>>, vector<8x4xf32>
    tpu.vector_store %arg8[%c0_65, %c0_66], %294 {strides = array<i32>} : memref<8x4xf32, #tpu.memory_space<vmem>>, vector<8x4xf32>,
    return
  }
}

</mosaic_0001>

<bundles_post_ra>
// kernel: lstm_model_forward.1
= control target key start
LH: loop header
LB: loop body
LE: loop exit
PB: predicated region body
PF: predicated region fallthrough
CT: control target
= control target key end

     0   :  { %13 = vsyncpa [#allocation3], 0  ;;  %s6467_s0 = inlined_call_operand.vmem [shape: f32[64,4], index: 0, kind: input, shape index: {}]   ;;  %s6468_s1 = inlined_call_operand.vmem [shape: f32[4,512], index: 1, kind: input, shape index: {}]   ;;  %s6469_s2 = inlined_call_operand.hbm [shape: f32[128,512], index: 2, kind: input, shape index: {}]   ;;  %s6470_s3 = inlined_call_operand.vmem [shape: f32[1,512], index: 3, kind: input, shape index: {}]   ;;  %s6471_s4 = inlined_call_operand.hbm [shape: f32[256,512], index: 4, kind: input, shape index: {}]   ;;  %s6472_s5 = inlined_call_operand.vmem [shape: f32[1,512], index: 5, kind: input, shape index: {}]   ;;  %s6473_s6 = inlined_call_operand.vmem [shape: f32[128,4], index: 6, kind: input, shape index: {}]   ;;  %s6474_s7 = inlined_call_operand.vmem [shape: f32[1,4], index: 7, kind: input, shape index: {}]   ;;  %s6475_s8 = inlined_call_operand.vmem [shape: f32[8,4], index: 8, kind: output, shape index: {}]  }
   0x1   :  { %14 = vsyncpa [#allocation5], 0  ;;  %s5125_s27 = smov [#allocation2]   ;;  %s5077_s9 = scalar_lea.hbm %s6469_s2, 8192 }
   0x2   :  { %s24_s28 = sshll.u32 %s5125_s27, 4  ;;  %p5078_p0 = scmp.ne.s32.totalorder %s6469_s2, %s5077_s9  ;;  %s25_s28 = int_to_ptr.vmem [resolvable:$true] %s24_s28 }
   0x3   :  { %p5081_p1 = scmp.lt.u32.totalorder %s5077_s9, %s6469_s2 }
   0x5   :  { %p5083_p2 = pnand %p5081_p1, %p5078_p0 }
   0x7   :  { %5086 = shalt.err (!%p5083_p2)
}
   0x8   :  { %s5087_s14 = scalar_lea.vmem %s25_s28, 8192  ;;  %p5092_p4 = scmp.lt.s32.totalorder %s25_s28, %s25_s28 }
   0x9   :  { %p5088_p3 = scmp.ne.s32.totalorder %s25_s28, %s5087_s14  ;;  %p5093_p5 = scmp.lt.s32.totalorder %s5087_s14, %s5087_s14 }
   0xb   :  { %p5094_p6 = por %p5093_p5, %p5092_p4 }
   0xd   :  { %p5095_p7 = pnand %p5094_p6, %p5088_p3 }
   0xf   :  { %5098 = shalt.err (!%p5095_p7)
}
  0x10   :  { %s5126_s15 = smov 512   ;;  %s5127_s16 = smov 32  }
  0x11   :  { %30 = dma.hbm_to_vmem [thread:$0]  %s6469_s2, 8192, %s25_s28, [#allocation3], %s5126_s15, %s5126_s15, %s5127_s16  }
  0x12   :  { %s5128_s19 = smov [#allocation4]   ;;  %s5099_s23 = scalar_lea.hbm %s6471_s4, 16384 }
  0x13   :  { %s38_s20 = sshll.u32 %s5128_s19, 4  ;;  %p5100_p8 = scmp.ne.s32.totalorder %s6471_s4, %s5099_s23  ;;  %s39_s20 = int_to_ptr.vmem [resolvable:$true] %s38_s20 }
  0x14   :  { %p5103_p9 = scmp.lt.u32.totalorder %s5099_s23, %s6471_s4 }
  0x16   :  { %p5105_p10 = pnand %p5103_p9, %p5100_p8 }
  0x18   :  { %5108 = shalt.err (!%p5105_p10)
}
  0x19   :  { %s5109_s29 = scalar_lea.vmem %s39_s20, 16384  ;;  %p5114_p12 = scmp.lt.s32.totalorder %s39_s20, %s39_s20 }
  0x1a   :  { %p5110_p11 = scmp.ne.s32.totalorder %s39_s20, %s5109_s29  ;;  %p5115_p13 = scmp.lt.s32.totalorder %s5109_s29, %s5109_s29 }
  0x1c   :  { %p5116_p0 = por %p5115_p13, %p5114_p12 }
  0x1e   :  { %p5117_p1 = pnand %p5116_p0, %p5110_p11 }
  0x20   :  { %5120 = shalt.err (!%p5117_p1)
}
  0x21   :  { %44 = dma.hbm_to_vmem [thread:$0]  %s6471_s4, 16384, %s39_s20, [#allocation5], %s5126_s15, %s5126_s15, %s5127_s16  }
  0x22   :  { %5121 = dma.done.wait [#allocation3], 8192  }
  0x23   :  { %5122 = vsyncadd [#allocation3], 4294959104 }
  0x24   :  { %5123 = dma.done.wait [#allocation5], 16384  }
  0x25   :  { %5124 = vsyncadd [#allocation5], 4294950912  ;;  %v6476_v0 = vmov 0.0   ;;  %v65_v1 = vld [vmem:[%s6468_s1] sm:$0xff]  ;;  %vm118_vm0 = vcmask 1043456   ;;  %v66_v2 = vld [vmem:[%s6468_s1 + $0x8] sm:$0xff] }
  0x26   :  { %191 = vmatprep.mubr.f32.mxu0 %v6476_v0  ;;  %304 = vmatprep.mubr.f32.mxu1 %v6476_v0  ;;  %v57_v3 = vld [vmem:[%s6467_s0] sm:$0xff]  ;;  %v91_v4 = vcombine.high %v65_v1, %v65_v1  ;;  %v92_v5 = vcombine.high %v66_v2, %v66_v2  ;;  %v354_v6 = vld [vmem:[#allocation2 + $0x8] sm:$0xff]  ;;  %v356_v8 = vld [vmem:[#allocation2 + $0x18] sm:$0xff]  ;;  %vm93_vm1 = vcmask 31744   ;;  %vm5131_vm2 = vmmov 0  }
  0x27   :  { %v358_v7 = vld [vmem:[#allocation2 + $0x28] sm:$0xff]  ;;  %v360_v10 = vld [vmem:[#allocation2 + $0x38] sm:$0xff]  ;;  %v353_v11 = vld [vmem:[#allocation2] sm:$0xff] }
  0x28   :  { %v5212_v9 = vpack.c.bf16 %v358_v7, %v354_v6  ;;  %v357_v12 = vld [vmem:[#allocation2 + $0x20] sm:$0xff]  ;;  %3211 = vmatprep.subr.msk.mxu0 %vm118_vm0, %v91_v4  ;;  %3221 = vmatprep.subr.msk.mxu1 %vm118_vm0, %v92_v5  ;;  %v5216_v13 = vpack.c.bf16 %v360_v10, %v356_v8  ;;  %v355_v15 = vld [vmem:[#allocation2 + $0x10] sm:$0xff]  ;;  %v362_v18 = vld [vmem:[#allocation2 + $0x48] sm:$0xff] }
  0x29   :  { %v5218_v14 = vpack.c.bf16 %v357_v12, %v353_v11  ;;  %v359_v16 = vld [vmem:[#allocation2 + $0x30] sm:$0xff]  ;;  %3212 = vmatpush1.msk.msra.mxu0 %vm118_vm0, %v65_v1  ;;  %3222 = vmatpush1.msk.msra.mxu1 %vm118_vm0, %v66_v2  ;;  %v366_v19 = vld [vmem:[#allocation2 + $0x68] sm:$0xff]  ;;  %v364_v20 = vld [vmem:[#allocation2 + $0x58] sm:$0xff] }
  0x2a   :  { %6616 = vst [vmem:[#allocation8_spill] sm:$0xff] %v5212_v9  ;;  %6617 = vst [vmem:[#allocation9_spill] sm:$0xff] %v5216_v13  ;;  %v5222_v17 = vpack.c.bf16 %v359_v16, %v355_v15  ;;  %3213 = vmatmul.mubr.msk.f32.vlgmr.msra.gmra.mrb[0].mxu0 %vm93_vm1, %v57_v3  ;;  %3223 = vmatmul.mubr.msk.f32.vlgmr.msra.gmra.mrb[0].mxu1 %vm93_vm1, %v57_v3  ;;  %v368_v21 = vld [vmem:[#allocation2 + $0x78] sm:$0xff]  ;;  %v361_v22 = vld [vmem:[#allocation2 + $0x40] sm:$0xff]  ;;  %v5231_v25 = vpack.c.bf16 %v366_v19, %v362_v18 }
  0x2b   :  { %v365_v23 = vld [vmem:[#allocation2 + $0x60] sm:$0xff]  ;;  %3285 = vmatprep.subr.bf16.mxu0 %v5212_v9  ;;  %3317 = vmatprep.subr.bf16.mxu1 %v5216_v13  ;;  %v58_v24 = vld [vmem:[%s6467_s0 + $0x8] sm:$0xff]  ;;  %v5233_v26 = vpack.c.bf16 %v368_v21, %v364_v20  ;;  %v363_v27 = vld [vmem:[#allocation2 + $0x50] sm:$0xff] }
  0x2c   :  { %v367_v28 = vld [vmem:[#allocation2 + $0x70] sm:$0xff]  ;;  %3287 = vmatpush1.bf16.msra.mxu0 %v5218_v14  ;;  %3319 = vmatpush1.bf16.msra.mxu1 %v5222_v17  ;;  %v5237_v29 = vpack.c.bf16 %v365_v23, %v361_v22  ;;  %v370_v31 = vld [vmem:[#allocation2 + $0x88] sm:$0xff]  ;;  %v372_v33 = vld [vmem:[#allocation2 + $0x98] sm:$0xff] }
  0x2d   :  { %v5239_v30 = vpack.c.bf16 %v367_v28, %v363_v27  ;;  %v374_v32 = vld [vmem:[#allocation2 + $0xa8] sm:$0xff]  ;;  %197 = vmatprep.mubr.f32.mxu0 %v6476_v0  ;;  %310 = vmatprep.mubr.f32.mxu1 %v6476_v0  ;;  %v376_v34 = vld [vmem:[#allocation2 + $0xb8] sm:$0xff]  ;;  %v369_v35 = vld [vmem:[#allocation2 + $0x80] sm:$0xff] }
  0x2e   :  { %v373_v36 = vld [vmem:[#allocation2 + $0xa0] sm:$0xff]  ;;  %3214 = vmatmul.mubr.msk.f32.gmra.mrb[2].mxu0 %vm93_vm1, %v58_v24  ;;  %3224 = vmatmul.mubr.msk.f32.gmra.mrb[2].mxu1 %vm93_vm1, %v58_v24  ;;  %v371_v37 = vld [vmem:[#allocation2 + $0x90] sm:$0xff]  ;;  %v5250_v40 = vpack.c.bf16 %v374_v32, %v370_v31  ;;  %v5252_v41 = vpack.c.bf16 %v376_v34, %v372_v33  ;;  %v378_v42 = vld [vmem:[#allocation2 + $0xc8] sm:$0xff] }
  0x2f   :  { %v375_v38 = vld [vmem:[#allocation2 + $0xb0] sm:$0xff]  ;;  %3289 = vmatprep.subr.bf16.mxu0 %v5231_v25  ;;  %3321 = vmatprep.subr.bf16.mxu1 %v5233_v26  ;;  %v382_v43 = vld [vmem:[#allocation2 + $0xe8] sm:$0xff]  ;;  %v5256_v44 = vpack.c.bf16 %v373_v36, %v369_v35  ;;  %v380_v46 = vld [vmem:[#allocation2 + $0xd8] sm:$0xff] }
  0x30   :  { %v59_v39 = vld [vmem:[%s6467_s0 + $0x10] sm:$0xff]  ;;  %3291 = vmatpush1.bf16.msra.mxu0 %v5237_v29  ;;  %3323 = vmatpush1.bf16.msra.mxu1 %v5239_v30  ;;  %v5258_v45 = vpack.c.bf16 %v375_v38, %v371_v37  ;;  %v384_v47 = vld [vmem:[#allocation2 + $0xf8] sm:$0xff]  ;;  %v377_v48 = vld [vmem:[#allocation2 + $0xc0] sm:$0xff]  ;;  %v5269_v53 = vpack.c.bf16 %v382_v43, %v378_v42 }
  0x31   :  { %203 = vmatprep.mubr.f32.mxu0 %v6476_v0  ;;  %316 = vmatprep.mubr.f32.mxu1 %v6476_v0  ;;  %v381_v49 = vld [vmem:[#allocation2 + $0xe0] sm:$0xff]  ;;  %v379_v50 = vld [vmem:[#allocation2 + $0xd0] sm:$0xff]  ;;  %v60_v52 = vld [vmem:[%s6467_s0 + $0x18] sm:$0xff]  ;;  %v5271_v54 = vpack.c.bf16 %v384_v47, %v380_v46 }
  0x32   :  { %v383_v51 = vld [vmem:[#allocation2 + $0xf0] sm:$0xff]  ;;  %3215 = vmatmul.mubr.msk.f32.gmra.mrb[4].mxu0 %vm93_vm1, %v59_v39  ;;  %3225 = vmatmul.mubr.msk.f32.gmra.mrb[4].mxu1 %vm93_vm1, %v59_v39  ;;  %v386_v55 = vld [vmem:[#allocation2 + $0x108] sm:$0xff]  ;;  %v5275_v57 = vpack.c.bf16 %v381_v49, %v377_v48  ;;  %v388_v59 = vld [vmem:[#allocation2 + $0x118] sm:$0xff] }
  0x33   :  { %3293 = vmatprep.subr.bf16.mxu0 %v5250_v40  ;;  %3325 = vmatprep.subr.bf16.mxu1 %v5252_v41  ;;  %v390_v56 = vld [vmem:[#allocation2 + $0x128] sm:$0xff]  ;;  %v5277_v58 = vpack.c.bf16 %v383_v51, %v379_v50  ;;  %v392_v60 = vld [vmem:[#allocation2 + $0x138] sm:$0xff]  ;;  %v385_v61 = vld [vmem:[#allocation2 + $0x100] sm:$0xff] }
  0x34   :  { %3295 = vmatpush1.bf16.msra.mxu0 %v5256_v44  ;;  %3327 = vmatpush1.bf16.msra.mxu1 %v5258_v45  ;;  %v389_v62 = vld [vmem:[#allocation2 + $0x120] sm:$0xff]  ;;  %v387_v63 = vld [vmem:[#allocation2 + $0x110] sm:$0xff]  ;;  %v5288_v3 = vpack.c.bf16 %v390_v56, %v386_v55  ;;  %v5290_v4 = vpack.c.bf16 %v392_v60, %v388_v59  ;;  %v394_v5 = vld [vmem:[#allocation2 + $0x148] sm:$0xff] }
  0x35   :  { %209 = vmatprep.mubr.f32.mxu0 %v6476_v0  ;;  %322 = vmatprep.mubr.f32.mxu1 %v6476_v0  ;;  %v391_v1 = vld [vmem:[#allocation2 + $0x130] sm:$0xff]  ;;  %v61_v2 = vld [vmem:[%s6467_s0 + $0x20] sm:$0xff]  ;;  %v398_v6 = vld [vmem:[#allocation2 + $0x168] sm:$0xff]  ;;  %v5294_v7 = vpack.c.bf16 %v389_v62, %v385_v61 }
  0x36   :  { %3216 = vmatmul.mubr.msk.f32.gmra.mrb[6].mxu0 %vm93_vm1, %v60_v52  ;;  %3226 = vmatmul.mubr.msk.f32.gmra.mrb[6].mxu1 %vm93_vm1, %v60_v52  ;;  %v5296_v8 = vpack.c.bf16 %v391_v1, %v387_v63  ;;  %v396_v10 = vld [vmem:[#allocation2 + $0x158] sm:$0xff]  ;;  %v393_v12 = vld [vmem:[#allocation2 + $0x140] sm:$0xff]  ;;  %v395_v16 = vld [vmem:[#allocation2 + $0x150] sm:$0xff]  ;;  %v5307_v20 = vpack.c.bf16 %v398_v6, %v394_v5 }
  0x37   :  { %3297 = vmatprep.subr.bf16.mxu0 %v5269_v53  ;;  %3329 = vmatprep.subr.bf16.mxu1 %v5271_v54  ;;  %v400_v11 = vld [vmem:[#allocation2 + $0x178] sm:$0xff]  ;;  %v397_v15 = vld [vmem:[#allocation2 + $0x160] sm:$0xff]  ;;  %v399_v18 = vld [vmem:[#allocation2 + $0x170] sm:$0xff] }
  0x38   :  { %3299 = vmatpush1.bf16.msra.mxu0 %v5275_v57  ;;  %3331 = vmatpush1.bf16.msra.mxu1 %v5277_v58  ;;  %v62_v19 = vld [vmem:[%s6467_s0 + $0x28] sm:$0xff]  ;;  %v5309_v21 = vpack.c.bf16 %v400_v11, %v396_v10  ;;  %v5313_v24 = vpack.c.bf16 %v397_v15, %v393_v12  ;;  %v5315_v27 = vpack.c.bf16 %v399_v18, %v395_v16  ;;  %v404_v28 = vld [vmem:[#allocation2 + $0x198] sm:$0xff]  ;;  %v401_v32 = vld [vmem:[#allocation2 + $0x180] sm:$0xff] }
  0x39   :  { %215 = vmatprep.mubr.f32.mxu0 %v6476_v0  ;;  %328 = vmatprep.mubr.f32.mxu1 %v6476_v0  ;;  %v402_v22 = vld [vmem:[#allocation2 + $0x188] sm:$0xff]  ;;  %v408_v31 = vld [vmem:[#allocation2 + $0x1b8] sm:$0xff]  ;;  %v405_v33 = vld [vmem:[#allocation2 + $0x1a0] sm:$0xff] }
  0x3a   :  { %3217 = vmatmul.mubr.msk.f32.gmra.mrb[8].mxu0 %vm93_vm1, %v61_v2  ;;  %3227 = vmatmul.mubr.msk.f32.gmra.mrb[8].mxu1 %vm93_vm1, %v61_v2  ;;  %v406_v23 = vld [vmem:[#allocation2 + $0x1a8] sm:$0xff]  ;;  %v403_v34 = vld [vmem:[#allocation2 + $0x190] sm:$0xff]  ;;  %v5328_v38 = vpack.c.bf16 %v408_v31, %v404_v28  ;;  %v5332_v43 = vpack.c.bf16 %v405_v33, %v401_v32  ;;  %v412_v47 = vld [vmem:[#allocation2 + $0x1d8] sm:$0xff] }
  0x3b   :  { %3301 = vmatprep.subr.bf16.mxu0 %v5288_v3  ;;  %3333 = vmatprep.subr.bf16.mxu1 %v5290_v4  ;;  %v407_v35 = vld [vmem:[#allocation2 + $0x1b0] sm:$0xff]  ;;  %v5326_v37 = vpack.c.bf16 %v406_v23, %v402_v22  ;;  %v410_v39 = vld [vmem:[#allocation2 + $0x1c8] sm:$0xff]  ;;  %v416_v48 = vld [vmem:[#allocation2 + $0x1f8] sm:$0xff] }
  0x3c   :  { %3303 = vmatpush1.bf16.msra.mxu0 %v5294_v7  ;;  %3335 = vmatpush1.bf16.msra.mxu1 %v5296_v8  ;;  %v63_v36 = vld [vmem:[%s6467_s0 + $0x30] sm:$0xff]  ;;  %v414_v42 = vld [vmem:[#allocation2 + $0x1e8] sm:$0xff]  ;;  %v5334_v46 = vpack.c.bf16 %v407_v35, %v403_v34  ;;  %v409_v49 = vld [vmem:[#allocation2 + $0x1c0] sm:$0xff]  ;;  %v5347_v60 = vpack.c.bf16 %v416_v48, %v412_v47 }
  0x3d   :  { %221 = vmatprep.mubr.f32.mxu0 %v6476_v0  ;;  %334 = vmatprep.mubr.f32.mxu1 %v6476_v0  ;;  %v413_v50 = vld [vmem:[#allocation2 + $0x1e0] sm:$0xff]  ;;  %v411_v51 = vld [vmem:[#allocation2 + $0x1d0] sm:$0xff]  ;;  %v64_v55 = vld [vmem:[%s6467_s0 + $0x38] sm:$0xff]  ;;  %v5345_v59 = vpack.c.bf16 %v414_v42, %v410_v39 }
  0x3e   :  { %3218 = vmatmul.mubr.msk.f32.gmra.mrb[10].mxu0 %vm93_vm1, %v62_v19  ;;  %3228 = vmatmul.mubr.msk.f32.gmra.mrb[10].mxu1 %vm93_vm1, %v62_v19  ;;  %v415_v52 = vld [vmem:[#allocation2 + $0x1f0] sm:$0xff]  ;;  %v418_v56 = vld [vmem:[#allocation4 + $0x8] sm:$0xff]  ;;  %v420_v62 = vld [vmem:[#allocation4 + $0x18] sm:$0xff]  ;;  %v5351_v1 = vpack.c.bf16 %v413_v50, %v409_v49 }
  0x3f   :  { %3305 = vmatprep.subr.bf16.mxu0 %v5307_v20  ;;  %3337 = vmatprep.subr.bf16.mxu1 %v5309_v21  ;;  %v422_v61 = vld [vmem:[#allocation4 + $0x28] sm:$0xff]  ;;  %v424_v63 = vld [vmem:[#allocation4 + $0x38] sm:$0xff]  ;;  %v5353_v2 = vpack.c.bf16 %v415_v52, %v411_v51  ;;  %v417_v5 = vld [vmem:[#allocation4] sm:$0xff] }
  0x40   :  { %3307 = vmatpush1.bf16.msra.mxu0 %v5313_v24  ;;  %3339 = vmatpush1.bf16.msra.mxu1 %v5315_v27  ;;  %v421_v6 = vld [vmem:[#allocation4 + $0x20] sm:$0xff]  ;;  %v419_v10 = vld [vmem:[#allocation4 + $0x10] sm:$0xff]  ;;  %v426_v12 = vld [vmem:[#allocation4 + $0x48] sm:$0xff]  ;;  %v5359_v15 = vpack.c.bf16 %v422_v61, %v418_v56  ;;  %v5361_v16 = vpack.c.bf16 %v424_v63, %v420_v62 }
  0x41   :  { %227 = vmatprep.mubr.f32.mxu0 %v6476_v0  ;;  %340 = vmatprep.mubr.f32.mxu1 %v6476_v0  ;;  %v423_v11 = vld [vmem:[#allocation4 + $0x30] sm:$0xff]  ;;  %v430_v18 = vld [vmem:[#allocation4 + $0x68] sm:$0xff]  ;;  %v428_v19 = vld [vmem:[#allocation4 + $0x58] sm:$0xff]  ;;  %v5367_v23 = vpack.c.bf16 %v421_v6, %v417_v5 }
  0x42   :  { %3219 = vmatmul.mubr.msk.f32.gmra.mrb[12].mxu0 %vm93_vm1, %v63_v36  ;;  %3229 = vmatmul.mubr.msk.f32.gmra.mrb[12].mxu1 %vm93_vm1, %v63_v36  ;;  %v432_v22 = vld [vmem:[#allocation4 + $0x78] sm:$0xff]  ;;  %v5369_v28 = vpack.c.bf16 %v423_v11, %v419_v10  ;;  %v425_v31 = vld [vmem:[#allocation4 + $0x40] sm:$0xff]  ;;  %v5373_v33 = vpack.c.bf16 %v430_v18, %v426_v12  ;;  %v427_v35 = vld [vmem:[#allocation4 + $0x50] sm:$0xff] }
  0x43   :  { %3309 = vmatprep.subr.bf16.mxu0 %v5326_v37  ;;  %3341 = vmatprep.subr.bf16.mxu1 %v5328_v38  ;;  %v429_v32 = vld [vmem:[#allocation4 + $0x60] sm:$0xff]  ;;  %v5375_v34 = vpack.c.bf16 %v432_v22, %v428_v19  ;;  %v431_v36 = vld [vmem:[#allocation4 + $0x70] sm:$0xff]  ;;  %v434_v39 = vld [vmem:[#allocation4 + $0x88] sm:$0xff] }
  0x44   :  { %3311 = vmatpush1.bf16.msra.mxu0 %v5332_v43  ;;  %3343 = vmatpush1.bf16.msra.mxu1 %v5334_v46  ;;  %v438_v42 = vld [vmem:[#allocation4 + $0xa8] sm:$0xff]  ;;  %v436_v47 = vld [vmem:[#allocation4 + $0x98] sm:$0xff]  ;;  %v5383_v49 = vpack.c.bf16 %v429_v32, %v425_v31  ;;  %v5385_v50 = vpack.c.bf16 %v431_v36, %v427_v35  ;;  %v433_v51 = vld [vmem:[#allocation4 + $0x80] sm:$0xff] }
  0x45   :  { %233 = vmatprep.mubr.f32.mxu0 %v6476_v0  ;;  %346 = vmatprep.mubr.f32.mxu1 %v6476_v0  ;;  %v440_v48 = vld [vmem:[#allocation4 + $0xb8] sm:$0xff]  ;;  %v437_v52 = vld [vmem:[#allocation4 + $0xa0] sm:$0xff]  ;;  %v435_v61 = vld [vmem:[#allocation4 + $0x90] sm:$0xff] }
  0x46   :  { %3220 = vmatmul.mubr.msk.f32.gmra.mrb[14].mxu0 %vm93_vm1, %v64_v55  ;;  %3230 = vmatmul.mubr.msk.f32.gmra.mrb[14].mxu1 %vm93_vm1, %v64_v55  ;;  %v5389_v55 = vpack.c.bf16 %v438_v42, %v434_v39  ;;  %v5391_v56 = vpack.c.bf16 %v440_v48, %v436_v47  ;;  %v439_v62 = vld [vmem:[#allocation4 + $0xb0] sm:$0xff]  ;;  %v442_v63 = vld [vmem:[#allocation4 + $0xc8] sm:$0xff]  ;;  %v444_v6 = vld [vmem:[#allocation4 + $0xd8] sm:$0xff]  ;;  %v5397_v11 = vpack.c.bf16 %v437_v52, %v433_v51 }
  0x47   :  { %3313 = vmatprep.subr.bf16.mxu0 %v5345_v59  ;;  %3345 = vmatprep.subr.bf16.mxu1 %v5347_v60  ;;  %v446_v5 = vld [vmem:[#allocation4 + $0xe8] sm:$0xff]  ;;  %v448_v10 = vld [vmem:[#allocation4 + $0xf8] sm:$0xff]  ;;  %v5399_v12 = vpack.c.bf16 %v439_v62, %v435_v61  ;;  %v441_v18 = vld [vmem:[#allocation4 + $0xc0] sm:$0xff] }
  0x48   :  { %3315 = vmatpush1.bf16.msra.mxu0 %v5351_v1  ;;  %3347 = vmatpush1.bf16.msra.mxu1 %v5353_v2  ;;  %6618 = vst [vmem:[#allocation10_spill] sm:$0xff] %v5389_v55  ;;  %6619 = vst [vmem:[#allocation11_spill] sm:$0xff] %v5391_v56  ;;  %v445_v19 = vld [vmem:[#allocation4 + $0xe0] sm:$0xff]  ;;  %v5403_v22 = vpack.c.bf16 %v446_v5, %v442_v63  ;;  %v5405_v31 = vpack.c.bf16 %v448_v10, %v444_v6  ;;  %v443_v32 = vld [vmem:[#allocation4 + $0xd0] sm:$0xff] }
  0x49   :  { %610 = vmatprep.mubr.f32.mxu0 %v6476_v0  ;;  %681 = vmatprep.mubr.f32.mxu1 %v6476_v0  ;;  %6620 = vst [vmem:[#allocation12_spill] sm:$0xff] %v5397_v11  ;;  %6621 = vst [vmem:[#allocation13_spill] sm:$0xff] %v5399_v12  ;;  %v447_v35 = vld [vmem:[#allocation4 + $0xf0] sm:$0xff]  ;;  %v450_v36 = vld [vmem:[#allocation4 + $0x108] sm:$0xff]  ;;  %v5409_v48 = vpack.c.bf16 %v445_v19, %v441_v18 }
  0x4a   :  { %3349 = vmatprep.subr.bf16.mxu0 %v5359_v15  ;;  %3413 = vmatprep.subr.bf16.mxu1 %v5361_v16  ;;  %6622 = vst [vmem:[#allocation14_spill] sm:$0xff] %v5403_v22  ;;  %6623 = vst [vmem:[#allocation15_spill] sm:$0xff] %v5405_v31  ;;  %v454_v39 = vld [vmem:[#allocation4 + $0x128] sm:$0xff]  ;;  %v452_v42 = vld [vmem:[#allocation4 + $0x118] sm:$0xff]  ;;  %v5411_v51 = vpack.c.bf16 %v447_v35, %v443_v32 }
  0x4b   :  { %611 = vmatmul.mubr.f32.vlgmr.msra.gmra.mrb[0].mxu0 %v6476_v0  ;;  %682 = vmatmul.mubr.f32.vlgmr.msra.gmra.mrb[0].mxu1 %v6476_v0  ;;  %v456_v47 = vld [vmem:[#allocation4 + $0x138] sm:$0xff]  ;;  %6624 = vst [vmem:[#allocation16_spill] sm:$0xff] %v5409_v48  ;;  %v449_v52 = vld [vmem:[#allocation4 + $0x100] sm:$0xff]  ;;  %v5415_v62 = vpack.c.bf16 %v454_v39, %v450_v36  ;;  %v451_v5 = vld [vmem:[#allocation4 + $0x110] sm:$0xff] }
  0x4c   :  { %3351 = vmatpush1.bf16.msra.mxu0 %v5367_v23  ;;  %3415 = vmatpush1.bf16.msra.mxu1 %v5369_v28  ;;  %6625 = vst [vmem:[#allocation17_spill] sm:$0xff] %v5411_v51  ;;  %v453_v61 = vld [vmem:[#allocation4 + $0x120] sm:$0xff]  ;;  %v5417_v63 = vpack.c.bf16 %v456_v47, %v452_v42  ;;  %v455_v6 = vld [vmem:[#allocation4 + $0x130] sm:$0xff]  ;;  %v458_v10 = vld [vmem:[#allocation4 + $0x148] sm:$0xff] }
  0x4d   :  { %3353 = vmatprep.subr.bf16.mxu0 %v5373_v33  ;;  %3417 = vmatprep.subr.bf16.mxu1 %v5375_v34  ;;  %6626 = vst [vmem:[#allocation18_spill] sm:$0xff] %v5415_v62  ;;  %v5421_v18 = vpack.c.bf16 %v453_v61, %v449_v52  ;;  %v5423_v19 = vpack.c.bf16 %v455_v6, %v451_v5  ;;  %v457_v32 = vld [vmem:[#allocation4 + $0x140] sm:$0xff]  ;;  %v459_v42 = vld [vmem:[#allocation4 + $0x150] sm:$0xff] }
  0x4e   :  { %792 = vmatprep.mubr.f32.mxu0 %v6476_v0  ;;  %863 = vmatprep.mubr.f32.mxu1 %v6476_v0  ;;  %6627 = vst [vmem:[#allocation19_spill] sm:$0xff] %v5417_v63  ;;  %v462_v0 = vld [vmem:[#allocation4 + $0x168] sm:$0xff]  ;;  %v461_v35 = vld [vmem:[#allocation4 + $0x160] sm:$0xff]  ;;  %v463_v47 = vld [vmem:[#allocation4 + $0x170] sm:$0xff] }
  0x4f   :  { %6628 = vst [vmem:[#allocation20_spill] sm:$0xff] %v5421_v18  ;;  %6629 = vst [vmem:[#allocation21_spill] sm:$0xff] %v5423_v19  ;;  %v5427_v36 = vpack.c.bf16 %v462_v0, %v458_v10  ;;  %v5433_v52 = vpack.c.bf16 %v461_v35, %v457_v32  ;;  %v5435_v61 = vpack.c.bf16 %v463_v47, %v459_v42  ;;  %v465_v5 = vld [vmem:[#allocation4 + $0x180] sm:$0xff]  ;;  %v471_v10 = vld [vmem:[#allocation4 + $0x1b0] sm:$0xff] }
  0x50   :  { %3355 = vmatpush1.bf16.msra.mxu0 %v5383_v49  ;;  %3419 = vmatpush1.bf16.msra.mxu1 %v5385_v50  ;;  %v469_v6 = vld [vmem:[#allocation4 + $0x1a0] sm:$0xff]  ;;  %v475_v42 = vld [vmem:[#allocation4 + $0x1d0] sm:$0xff] }
  0x51   :  { %3357 = vmatprep.subr.bf16.mxu0 %v5389_v55  ;;  %3421 = vmatprep.subr.bf16.mxu1 %v5391_v56  ;;  %6630 = vst [vmem:[#allocation22_spill] sm:$0xff] %v5427_v36  ;;  %6632 = vst [vmem:[#allocation24_spill] sm:$0xff] %v5433_v52  ;;  %v5445_v32 = vpack.c.bf16 %v469_v6, %v465_v5  ;;  %v479_v5 = vld [vmem:[#allocation4 + $0x1f0] sm:$0xff] }
  0x52   :  { %6633 = vst [vmem:[#allocation25_spill] sm:$0xff] %v5435_v61  ;;  %v5461_v6 = vpack.c.bf16 %v479_v5, %v475_v42  ;;  %v490_v5 = vld [vmem:[#allocation4 + $0x248] sm:$0xff] }
  0x53   :  { %6636 = vst [vmem:[#allocation28_spill] sm:$0xff] %v5445_v32 }
  0x54   :  { %3359 = vmatpush1.bf16.msra.mxu0 %v5397_v11  ;;  %3423 = vmatpush1.bf16.msra.mxu1 %v5399_v12  ;;  %v460_v11 = vld [vmem:[#allocation4 + $0x158] sm:$0xff]  ;;  %6641 = vst [vmem:[#allocation33_spill] sm:$0xff] %v5461_v6 }
  0x55   :  { %3361 = vmatprep.subr.bf16.mxu0 %v5403_v22  ;;  %3425 = vmatprep.subr.bf16.mxu1 %v5405_v31  ;;  %v464_v12 = vld [vmem:[#allocation4 + $0x178] sm:$0xff]  ;;  %v466_v31 = vld [vmem:[#allocation4 + $0x188] sm:$0xff] }
  0x56   :  { %v5429_v39 = vpack.c.bf16 %v464_v12, %v460_v11  ;;  %v468_v22 = vld [vmem:[#allocation4 + $0x198] sm:$0xff]  ;;  %v467_v12 = vld [vmem:[#allocation4 + $0x190] sm:$0xff] }
  0x57   :  { %v5447_v35 = vpack.c.bf16 %v471_v10, %v467_v12  ;;  %v488_v12 = vld [vmem:[#allocation4 + $0x238] sm:$0xff]  ;;  %v481_v10 = vld [vmem:[#allocation4 + $0x200] sm:$0xff] }
  0x58   :  { %3363 = vmatpush1.bf16.msra.mxu0 %v5409_v48  ;;  %3427 = vmatpush1.bf16.msra.mxu1 %v5411_v51  ;;  %6631 = vst [vmem:[#allocation23_spill] sm:$0xff] %v5429_v39  ;;  %v470_v48 = vld [vmem:[#allocation4 + $0x1a8] sm:$0xff]  ;;  %v472_v51 = vld [vmem:[#allocation4 + $0x1b8] sm:$0xff] }
  0x59   :  { %3365 = vmatprep.subr.bf16.mxu0 %v5415_v62  ;;  %3429 = vmatprep.subr.bf16.mxu1 %v5417_v63  ;;  %v5439_v0 = vpack.c.bf16 %v470_v48, %v466_v31  ;;  %v5441_v11 = vpack.c.bf16 %v472_v51, %v468_v22  ;;  %v474_v63 = vld [vmem:[#allocation4 + $0x1c8] sm:$0xff]  ;;  %v476_v62 = vld [vmem:[#allocation4 + $0x1d8] sm:$0xff]  ;;  %6637 = vst [vmem:[#allocation29_spill] sm:$0xff] %v5447_v35  ;;  %v473_v48 = vld [vmem:[#allocation4 + $0x1c0] sm:$0xff] }
  0x5a   :  { %v477_v51 = vld [vmem:[#allocation4 + $0x1e0] sm:$0xff] }
  0x5b   :  { %6634 = vst [vmem:[#allocation26_spill] sm:$0xff] %v5439_v0  ;;  %6635 = vst [vmem:[#allocation27_spill] sm:$0xff] %v5441_v11  ;;  %v5459_v47 = vpack.c.bf16 %v477_v51, %v473_v48  ;;  %v483_v48 = vld [vmem:[#allocation4 + $0x210] sm:$0xff] }
  0x5c   :  { %3367 = vmatpush1.bf16.msra.mxu0 %v5421_v18  ;;  %3431 = vmatpush1.bf16.msra.mxu1 %v5423_v19  ;;  %v478_v18 = vld [vmem:[#allocation4 + $0x1e8] sm:$0xff]  ;;  %v480_v19 = vld [vmem:[#allocation4 + $0x1f8] sm:$0xff]  ;;  %v487_v51 = vld [vmem:[#allocation4 + $0x230] sm:$0xff] }
  0x5d   :  { %3369 = vmatprep.subr.bf16.mxu0 %v5427_v36  ;;  %3433 = vmatprep.subr.bf16.mxu1 %v5429_v39  ;;  %v5451_v22 = vpack.c.bf16 %v478_v18, %v474_v63  ;;  %v5453_v31 = vpack.c.bf16 %v480_v19, %v476_v62  ;;  %6640 = vst [vmem:[#allocation32_spill] sm:$0xff] %v5459_v47  ;;  %v482_v62 = vld [vmem:[#allocation4 + $0x208] sm:$0xff]  ;;  %v484_v18 = vld [vmem:[#allocation4 + $0x218] sm:$0xff] }
  0x5e   :  { %v486_v63 = vld [vmem:[#allocation4 + $0x228] sm:$0xff]  ;;  %v5472_v42 = vpack.c.bf16 %v487_v51, %v483_v48  ;;  %v491_v48 = vld [vmem:[#allocation4 + $0x250] sm:$0xff] }
  0x5f   :  { %6638 = vst [vmem:[#allocation30_spill] sm:$0xff] %v5451_v22  ;;  %6639 = vst [vmem:[#allocation31_spill] sm:$0xff] %v5453_v31  ;;  %v5465_v19 = vpack.c.bf16 %v486_v63, %v482_v62  ;;  %v494_v62 = vld [vmem:[#allocation4 + $0x268] sm:$0xff]  ;;  %v492_v63 = vld [vmem:[#allocation4 + $0x258] sm:$0xff] }
  0x60   :  { %3371 = vmatpush1.bf16.msra.mxu0 %v5433_v52  ;;  %3435 = vmatpush1.bf16.msra.mxu1 %v5435_v61  ;;  %6645 = vst [vmem:[#allocation37_spill] sm:$0xff] %v5472_v42  ;;  %v495_v51 = vld [vmem:[#allocation4 + $0x270] sm:$0xff] }
  0x61   :  { %3373 = vmatprep.subr.bf16.mxu0 %v5439_v0  ;;  %3437 = vmatprep.subr.bf16.mxu1 %v5441_v11  ;;  %6642 = vst [vmem:[#allocation34_spill] sm:$0xff] %v5465_v19 }
  0x64   :  { %3375 = vmatpush1.bf16.msra.mxu0 %v5445_v32  ;;  %3439 = vmatpush1.bf16.msra.mxu1 %v5447_v35 }
  0x65   :  { %3377 = vmatprep.subr.bf16.mxu0 %v5451_v22  ;;  %3441 = vmatprep.subr.bf16.mxu1 %v5453_v31  ;;  %v485_v31 = vld [vmem:[#allocation4 + $0x220] sm:$0xff]  ;;  %v5467_v22 = vpack.c.bf16 %v488_v12, %v484_v18  ;;  %v496_v18 = vld [vmem:[#allocation4 + $0x278] sm:$0xff] }
  0x66   :  { %v5469_v35 = vpack.c.bf16 %v485_v31, %v481_v10  ;;  %v489_v31 = vld [vmem:[#allocation4 + $0x240] sm:$0xff]  ;;  %v5479_v10 = vpack.c.bf16 %v496_v18, %v492_v63  ;;  %v504_v63 = vld [vmem:[#allocation4 + $0x2b8] sm:$0xff] }
  0x67   :  { %6643 = vst [vmem:[#allocation35_spill] sm:$0xff] %v5467_v22  ;;  %v493_v12 = vld [vmem:[#allocation4 + $0x260] sm:$0xff] }
  0x68   :  { %3379 = vmatpush1.bf16.msra.mxu0 %v5459_v47  ;;  %3443 = vmatpush1.bf16.msra.mxu1 %v5461_v6  ;;  %6644 = vst [vmem:[#allocation36_spill] sm:$0xff] %v5469_v35  ;;  %v5477_v6 = vpack.c.bf16 %v494_v62, %v490_v5  ;;  %6647 = vst [vmem:[#allocation39_spill] sm:$0xff] %v5479_v10  ;;  %v5481_v47 = vpack.c.bf16 %v493_v12, %v489_v31  ;;  %v502_v5 = vld [vmem:[#allocation4 + $0x2a8] sm:$0xff]  ;;  %v500_v62 = vld [vmem:[#allocation4 + $0x298] sm:$0xff] }
  0x69   :  { %3381 = vmatprep.subr.bf16.mxu0 %v5465_v19  ;;  %3445 = vmatprep.subr.bf16.mxu1 %v5467_v22  ;;  %v5484_v22 = vpack.c.bf16 %v495_v51, %v491_v48  ;;  %v497_v18 = vld [vmem:[#allocation4 + $0x280] sm:$0xff]  ;;  %v5491_v12 = vpack.c.bf16 %v504_v63, %v500_v62  ;;  %v499_v48 = vld [vmem:[#allocation4 + $0x290] sm:$0xff]  ;;  %v512_v62 = vld [vmem:[#allocation4 + $0x2f8] sm:$0xff] }
  0x6a   :  { %6646 = vst [vmem:[#allocation38_spill] sm:$0xff] %v5477_v6  ;;  %6648 = vst [vmem:[#allocation40_spill] sm:$0xff] %v5481_v47  ;;  %v501_v31 = vld [vmem:[#allocation4 + $0x2a0] sm:$0xff]  ;;  %v503_v51 = vld [vmem:[#allocation4 + $0x2b0] sm:$0xff] }
  0x6b   :  { %6649 = vst [vmem:[#allocation41_spill] sm:$0xff] %v5484_v22  ;;  %6651 = vst [vmem:[#allocation43_spill] sm:$0xff] %v5491_v12  ;;  %v5493_v19 = vpack.c.bf16 %v501_v31, %v497_v18  ;;  %v505_v63 = vld [vmem:[#allocation4 + $0x2c0] sm:$0xff] }
  0x6c   :  { %3383 = vmatpush1.bf16.msra.mxu0 %v5469_v35  ;;  %3447 = vmatpush1.bf16.msra.mxu1 %v5472_v42  ;;  %v498_v42 = vld [vmem:[#allocation4 + $0x288] sm:$0xff]  ;;  %v509_v18 = vld [vmem:[#allocation4 + $0x2e0] sm:$0xff] }
  0x6d   :  { %3385 = vmatprep.subr.bf16.mxu0 %v5477_v6  ;;  %3449 = vmatprep.subr.bf16.mxu1 %v5479_v10  ;;  %v5489_v35 = vpack.c.bf16 %v502_v5, %v498_v42  ;;  %6652 = vst [vmem:[#allocation44_spill] sm:$0xff] %v5493_v19  ;;  %v5496_v10 = vpack.c.bf16 %v503_v51, %v499_v48  ;;  %v510_v42 = vld [vmem:[#allocation4 + $0x2e8] sm:$0xff]  ;;  %v508_v5 = vld [vmem:[#allocation4 + $0x2d8] sm:$0xff]  ;;  %v507_v48 = vld [vmem:[#allocation4 + $0x2d0] sm:$0xff] }
  0x6e   :  { %v5503_v31 = vpack.c.bf16 %v512_v62, %v508_v5  ;;  %v5505_v6 = vpack.c.bf16 %v509_v18, %v505_v63  ;;  %v511_v51 = vld [vmem:[#allocation4 + $0x2f0] sm:$0xff]  ;;  %v520_v5 = vld [vmem:[#allocation4 + $0x338] sm:$0xff]  ;;  %v513_v62 = vld [vmem:[#allocation4 + $0x300] sm:$0xff] }
  0x6f   :  { %6650 = vst [vmem:[#allocation42_spill] sm:$0xff] %v5489_v35  ;;  %6653 = vst [vmem:[#allocation45_spill] sm:$0xff] %v5496_v10  ;;  %v517_v63 = vld [vmem:[#allocation4 + $0x320] sm:$0xff] }
  0x70   :  { %3387 = vmatpush1.bf16.msra.mxu0 %v5481_v47  ;;  %3451 = vmatpush1.bf16.msra.mxu1 %v5484_v22  ;;  %v506_v22 = vld [vmem:[#allocation4 + $0x2c8] sm:$0xff]  ;;  %6655 = vst [vmem:[#allocation47_spill] sm:$0xff] %v5503_v31  ;;  %6656 = vst [vmem:[#allocation48_spill] sm:$0xff] %v5505_v6 }
  0x71   :  { %3389 = vmatprep.subr.bf16.mxu0 %v5489_v35  ;;  %3453 = vmatprep.subr.bf16.mxu1 %v5491_v12  ;;  %v5501_v47 = vpack.c.bf16 %v510_v42, %v506_v22  ;;  %v5508_v12 = vpack.c.bf16 %v511_v51, %v507_v48  ;;  %v518_v22 = vld [vmem:[#allocation4 + $0x328] sm:$0xff]  ;;  %v516_v42 = vld [vmem:[#allocation4 + $0x318] sm:$0xff]  ;;  %v5517_v35 = vpack.c.bf16 %v517_v63, %v513_v62  ;;  %v515_v48 = vld [vmem:[#allocation4 + $0x310] sm:$0xff] }
  0x72   :  { %v5515_v18 = vpack.c.bf16 %v520_v5, %v516_v42  ;;  %v519_v51 = vld [vmem:[#allocation4 + $0x330] sm:$0xff]  ;;  %v528_v42 = vld [vmem:[#allocation4 + $0x378] sm:$0xff]  ;;  %v521_v5 = vld [vmem:[#allocation4 + $0x340] sm:$0xff] }
  0x73   :  { %6654 = vst [vmem:[#allocation46_spill] sm:$0xff] %v5501_v47  ;;  %6657 = vst [vmem:[#allocation49_spill] sm:$0xff] %v5508_v12  ;;  %v525_v62 = vld [vmem:[#allocation4 + $0x360] sm:$0xff] }
  0x74   :  { %3391 = vmatpush1.bf16.msra.mxu0 %v5493_v19  ;;  %3455 = vmatpush1.bf16.msra.mxu1 %v5496_v10  ;;  %v514_v10 = vld [vmem:[#allocation4 + $0x308] sm:$0xff]  ;;  %6659 = vst [vmem:[#allocation51_spill] sm:$0xff] %v5515_v18  ;;  %6660 = vst [vmem:[#allocation52_spill] sm:$0xff] %v5517_v35 }
  0x75   :  { %3393 = vmatprep.subr.bf16.mxu0 %v5501_v47  ;;  %3457 = vmatprep.subr.bf16.mxu1 %v5503_v31  ;;  %v5513_v19 = vpack.c.bf16 %v518_v22, %v514_v10  ;;  %v5520_v31 = vpack.c.bf16 %v519_v51, %v515_v48  ;;  %v526_v10 = vld [vmem:[#allocation4 + $0x368] sm:$0xff]  ;;  %v524_v22 = vld [vmem:[#allocation4 + $0x358] sm:$0xff]  ;;  %v5529_v47 = vpack.c.bf16 %v525_v62, %v521_v5  ;;  %v523_v48 = vld [vmem:[#allocation4 + $0x350] sm:$0xff] }
  0x76   :  { %v5527_v63 = vpack.c.bf16 %v528_v42, %v524_v22  ;;  %v527_v51 = vld [vmem:[#allocation4 + $0x370] sm:$0xff]  ;;  %v536_v22 = vld [vmem:[#allocation4 + $0x3b8] sm:$0xff]  ;;  %v529_v42 = vld [vmem:[#allocation4 + $0x380] sm:$0xff] }
  0x77   :  { %6658 = vst [vmem:[#allocation50_spill] sm:$0xff] %v5513_v19  ;;  %6661 = vst [vmem:[#allocation53_spill] sm:$0xff] %v5520_v31  ;;  %v533_v5 = vld [vmem:[#allocation4 + $0x3a0] sm:$0xff] }
  0x78   :  { %3395 = vmatpush1.bf16.msra.mxu0 %v5505_v6  ;;  %3459 = vmatpush1.bf16.msra.mxu1 %v5508_v12  ;;  %v522_v12 = vld [vmem:[#allocation4 + $0x348] sm:$0xff]  ;;  %6663 = vst [vmem:[#allocation55_spill] sm:$0xff] %v5527_v63  ;;  %6664 = vst [vmem:[#allocation56_spill] sm:$0xff] %v5529_v47 }
  0x79   :  { %3397 = vmatprep.subr.bf16.mxu0 %v5513_v19  ;;  %3461 = vmatprep.subr.bf16.mxu1 %v5515_v18  ;;  %v5525_v6 = vpack.c.bf16 %v526_v10, %v522_v12  ;;  %v5532_v18 = vpack.c.bf16 %v527_v51, %v523_v48  ;;  %v534_v12 = vld [vmem:[#allocation4 + $0x3a8] sm:$0xff]  ;;  %v532_v10 = vld [vmem:[#allocation4 + $0x398] sm:$0xff]  ;;  %v5541_v19 = vpack.c.bf16 %v533_v5, %v529_v42  ;;  %v531_v48 = vld [vmem:[#allocation4 + $0x390] sm:$0xff] }
  0x7a   :  { %v5539_v62 = vpack.c.bf16 %v536_v22, %v532_v10  ;;  %v535_v51 = vld [vmem:[#allocation4 + $0x3b0] sm:$0xff]  ;;  %v544_v10 = vld [vmem:[#allocation4 + $0x3f8] sm:$0xff]  ;;  %v537_v22 = vld [vmem:[#allocation4 + $0x3c0] sm:$0xff] }
  0x7b   :  { %6662 = vst [vmem:[#allocation54_spill] sm:$0xff] %v5525_v6  ;;  %6665 = vst [vmem:[#allocation57_spill] sm:$0xff] %v5532_v18  ;;  %v541_v42 = vld [vmem:[#allocation4 + $0x3e0] sm:$0xff] }
  0x7c   :  { %3399 = vmatpush1.bf16.msra.mxu0 %v5517_v35  ;;  %3463 = vmatpush1.bf16.msra.mxu1 %v5520_v31  ;;  %v530_v31 = vld [vmem:[#allocation4 + $0x388] sm:$0xff]  ;;  %6667 = vst [vmem:[#allocation59_spill] sm:$0xff] %v5539_v62  ;;  %6668 = vst [vmem:[#allocation60_spill] sm:$0xff] %v5541_v19 }
  0x7d   :  { %3401 = vmatprep.subr.bf16.mxu0 %v5525_v6  ;;  %3465 = vmatprep.subr.bf16.mxu1 %v5527_v63  ;;  %v5537_v35 = vpack.c.bf16 %v534_v12, %v530_v31  ;;  %v5544_v63 = vpack.c.bf16 %v535_v51, %v531_v48  ;;  %v542_v31 = vld [vmem:[#allocation4 + $0x3e8] sm:$0xff]  ;;  %v540_v12 = vld [vmem:[#allocation4 + $0x3d8] sm:$0xff]  ;;  %v5553_v6 = vpack.c.bf16 %v541_v42, %v537_v22  ;;  %v539_v48 = vld [vmem:[#allocation4 + $0x3d0] sm:$0xff] }
  0x7e   :  { %v5551_v5 = vpack.c.bf16 %v544_v10, %v540_v12  ;;  %v543_v51 = vld [vmem:[#allocation4 + $0x3f0] sm:$0xff]  ;;  %v67_v10 = vld [vmem:[%s6470_s3] sm:$0xf] }
  0x7f   :  { %6666 = vst [vmem:[#allocation58_spill] sm:$0xff] %v5537_v35  ;;  %6669 = vst [vmem:[#allocation61_spill] sm:$0xff] %v5544_v63 }
  0x80   :  { %3403 = vmatpush1.bf16.msra.mxu0 %v5529_v47  ;;  %3467 = vmatpush1.bf16.msra.mxu1 %v5532_v18  ;;  %v538_v18 = vld [vmem:[#allocation4 + $0x3c8] sm:$0xff]  ;;  %6671 = vst [vmem:[#allocation63_spill] sm:$0xff] %v5551_v5  ;;  %6672 = vst [vmem:[#allocation64_spill] sm:$0xff] %v5553_v6 }
  0x81   :  { %3405 = vmatprep.subr.bf16.mxu0 %v5537_v35  ;;  %3469 = vmatprep.subr.bf16.mxu1 %v5539_v62  ;;  %v5549_v47 = vpack.c.bf16 %v542_v31, %v538_v18  ;;  %v5556_v62 = vpack.c.bf16 %v543_v51, %v539_v48  ;;  %v69_v18 = vlaneseq }
  0x83   :  { %6670 = vst [vmem:[#allocation62_spill] sm:$0xff] %v5549_v47  ;;  %6673 = vst [vmem:[#allocation65_spill] sm:$0xff] %v5556_v62  ;;  %v5563_v31 = vshrl.u32 %v69_v18, 7 }
  0x84   :  { %3407 = vmatpush1.bf16.msra.mxu0 %v5541_v19  ;;  %3471 = vmatpush1.bf16.msra.mxu1 %v5544_v63 }
  0x85   :  { %3409 = vmatprep.subr.bf16.mxu0 %v5549_v47  ;;  %3473 = vmatprep.subr.bf16.mxu1 %v5551_v5  ;;  %6674 = vst [vmem:[#allocation66_spill] sm:$0xff] %v5563_v31  ;;  %v6570_v12 = vsub.s32 0, %v5563_v31  ;;  %v6573_v22 = vsub.s32 1, %v5563_v31  ;;  %v6574_v42 = vsub.s32 2, %v5563_v31  ;;  %v6587_v63 = vsub.s32 3, %v5563_v31 }
  0x87   :  { %v5573_v48 = vrot.slane %v67_v10, %v6570_v12  ;;  %v5577_v51 = vrot.slane %v67_v10, %v6573_v22  ;;  %v5581_v18 = vrot.slane %v67_v10, %v6574_v42  ;;  %v5589_v22 = vrot.slane %v67_v10, %v6587_v63 }
  0x88   :  { %3411 = vmatpush1.bf16.msra.mxu0 %v5553_v6  ;;  %3475 = vmatpush1.bf16.msra.mxu1 %v5556_v62 }
  0x89   :  { %3477 = vmatprep.subr.bf16.mxu0 %v5212_v9  ;;  %3509 = vmatprep.subr.bf16.mxu1 %v5216_v13  ;;  %6675 = vst [vmem:[#allocation67_spill] sm:$0xff] %v5573_v48  ;;  %6676 = vst [vmem:[#allocation68_spill] sm:$0xff] %v5577_v51 }
  0x8a   :  { %6677 = vst [vmem:[#allocation69_spill] sm:$0xff] %v5581_v18 }
 0x11e   :  { %v612_v13 = vpop.f32.mrb[0].mxu0  ;;  %v683_v9 = vpop.f32.mrb[0].mxu1 }
 0x11f   :  { %v4844_v62 = vadd.f32 %v612_v13, %v5573_v48  ;;  %v614_v6 = vpop.f32.mrb[1].mxu0  ;;  %v685_v5 = vpop.f32.mrb[1].mxu1  ;;  %v4860_v12 = vadd.f32 %v683_v9, %v5581_v18 }
 0x120   :  { %v4845_v47 = vadd.f32 %v614_v6, %v5577_v51  ;;  %v4861_v42 = vadd.f32 %v685_v5, %v5589_v22  ;;  %v6682_v5 = vld [vmem:[#allocation15_spill] sm:$0xff] }
 0x121   :  { %4917 = vtanh.f32 %v4844_v62 }
 0x122   :  { %4919 = vtanh.f32 %v4845_v47 }
 0x123   :  { %4921 = vtanh.f32 %v4860_v12 }
 0x124   :  { %4923 = vtanh.f32 %v4861_v42  ;;  %v6684_v42 = vld [vmem:[#allocation17_spill] sm:$0xff] }
 0x12b   :  { %v4918_v19 = vpop.eup %4917 }
 0x12c   :  { %v696_v35 = vmul.f32 0.5, %v4918_v19  ;;  %v4920_v13 = vpop.eup %4919  ;;  %v6680_v19 = vld [vmem:[#allocation13_spill] sm:$0xff] }
 0x12d   :  { %v697_v32 = vmul.f32 0.5, %v4920_v13  ;;  %v4922_v6 = vpop.eup %4921  ;;  %v6687_v13 = vld [vmem:[#allocation20_spill] sm:$0xff] }
 0x12e   :  { %v699_v48 = vadd.f32 0.5, %v696_v35  ;;  %v4924_v47 = vpop.eup %4923  ;;  %v6679_v35 = vld [vmem:[#allocation12_spill] sm:$0xff] }
 0x12f   :  { %v700_v62 = vadd.f32 0.5, %v697_v32  ;;  %v698_v12 = vmul.f32 0.5, %v4924_v47  ;;  %v6678_v32 = vmov 0.0   ;;  %v6691_v47 = vld [vmem:[#allocation30_spill] sm:$0xff] }
 0x130   :  { %v703_v51 = vmul.f32 %v4922_v6, %v699_v48  ;;  %v6685_v48 = vld [vmem:[#allocation18_spill] sm:$0xff]  ;;  %v6688_v6 = vld [vmem:[#allocation21_spill] sm:$0xff] }
 0x131   :  { %v702_v9 = vmul.f32 0.0, %v700_v62  ;;  %v701_v10 = vadd.f32 0.5, %v698_v12  ;;  %v6689_v62 = vld [vmem:[#allocation28_spill] sm:$0xff]  ;;  %v6692_v12 = vld [vmem:[#allocation31_spill] sm:$0xff] }
 0x133   :  { %v5592_v18 = vadd.f32 %v703_v51, %v702_v9  ;;  %v6686_v51 = vld [vmem:[#allocation19_spill] sm:$0xff]  ;;  %v6690_v9 = vld [vmem:[#allocation29_spill] sm:$0xff] }
 0x135   :  { %4925 = vtanh.f32 %v5592_v18 }
 0x13f   :  { %v4926_v63 = vpop.eup %4925 }
 0x140   :  { %v706_v31 = vmul.f32 %v4926_v63, %v701_v10  ;;  %v6681_v63 = vld [vmem:[#allocation14_spill] sm:$0xff]  ;;  %v6693_v10 = vld [vmem:[#allocation32_spill] sm:$0xff] }
 0x142   :  { %793 = vmatmul.mubr.f32.vlgmr.msra.gmra.mrb[16].mxu0 %v706_v31  ;;  %864 = vmatmul.mubr.f32.vlgmr.msra.gmra.mrb[16].mxu1 %v706_v31 }
 0x143   :  { %3479 = vmatpush1.bf16.msra.mxu0 %v5218_v14  ;;  %3511 = vmatpush1.bf16.msra.mxu1 %v5222_v17 }
 0x144   :  { %3481 = vmatprep.subr.bf16.mxu0 %v5231_v25  ;;  %3513 = vmatprep.subr.bf16.mxu1 %v5233_v26 }
 0x145   :  { %949 = vmatprep.mubr.f32.mxu0 %v6678_v32  ;;  %1020 = vmatprep.mubr.f32.mxu1 %v6678_v32 }
 0x147   :  { %3483 = vmatpush1.bf16.msra.mxu0 %v5237_v29  ;;  %3515 = vmatpush1.bf16.msra.mxu1 %v5239_v30 }
 0x148   :  { %3485 = vmatprep.subr.bf16.mxu0 %v5250_v40  ;;  %3517 = vmatprep.subr.bf16.mxu1 %v5252_v41 }
 0x14b   :  { %3487 = vmatpush1.bf16.msra.mxu0 %v5256_v44  ;;  %3519 = vmatpush1.bf16.msra.mxu1 %v5258_v45 }
 0x14c   :  { %3489 = vmatprep.subr.bf16.mxu0 %v5269_v53  ;;  %3521 = vmatprep.subr.bf16.mxu1 %v5271_v54 }
 0x14f   :  { %3491 = vmatpush1.bf16.msra.mxu0 %v5275_v57  ;;  %3523 = vmatpush1.bf16.msra.mxu1 %v5277_v58 }
 0x150   :  { %3493 = vmatprep.subr.bf16.mxu0 %v5288_v3  ;;  %3525 = vmatprep.subr.bf16.mxu1 %v5290_v4 }
 0x153   :  { %3495 = vmatpush1.bf16.msra.mxu0 %v5294_v7  ;;  %3527 = vmatpush1.bf16.msra.mxu1 %v5296_v8 }
 0x154   :  { %3497 = vmatprep.subr.bf16.mxu0 %v5307_v20  ;;  %3529 = vmatprep.subr.bf16.mxu1 %v5309_v21 }
 0x157   :  { %3499 = vmatpush1.bf16.msra.mxu0 %v5313_v24  ;;  %3531 = vmatpush1.bf16.msra.mxu1 %v5315_v27 }
 0x158   :  { %3501 = vmatprep.subr.bf16.mxu0 %v5326_v37  ;;  %3533 = vmatprep.subr.bf16.mxu1 %v5328_v38 }
 0x15b   :  { %3503 = vmatpush1.bf16.msra.mxu0 %v5332_v43  ;;  %3535 = vmatpush1.bf16.msra.mxu1 %v5334_v46 }
 0x15c   :  { %3505 = vmatprep.subr.bf16.mxu0 %v5345_v59  ;;  %3537 = vmatprep.subr.bf16.mxu1 %v5347_v60 }
 0x15f   :  { %3507 = vmatpush1.bf16.msra.mxu0 %v5351_v1  ;;  %3539 = vmatpush1.bf16.msra.mxu1 %v5353_v2 }
 0x160   :  { %3541 = vmatprep.subr.bf16.mxu0 %v5359_v15  ;;  %3605 = vmatprep.subr.bf16.mxu1 %v5361_v16 }
 0x162   :  { %950 = vmatmul.mubr.f32.vlgmr.msra.gmra.mrb[2].mxu0 %v706_v31  ;;  %1021 = vmatmul.mubr.f32.vlgmr.msra.gmra.mrb[2].mxu1 %v706_v31  ;;  %v6683_v31 = vld [vmem:[#allocation16_spill] sm:$0xff] }
 0x163   :  { %3543 = vmatpush1.bf16.msra.mxu0 %v5367_v23  ;;  %3607 = vmatpush1.bf16.msra.mxu1 %v5369_v28 }
 0x164   :  { %3545 = vmatprep.subr.bf16.mxu0 %v5373_v33  ;;  %3609 = vmatprep.subr.bf16.mxu1 %v5375_v34 }
 0x167   :  { %3547 = vmatpush1.bf16.msra.mxu0 %v5383_v49  ;;  %3611 = vmatpush1.bf16.msra.mxu1 %v5385_v50 }
 0x168   :  { %3549 = vmatprep.subr.bf16.mxu0 %v5389_v55  ;;  %3613 = vmatprep.subr.bf16.mxu1 %v5391_v56 }
 0x16b   :  { %3551 = vmatpush1.bf16.msra.mxu0 %v6679_v35  ;;  %3615 = vmatpush1.bf16.msra.mxu1 %v6680_v19 }
 0x16c   :  { %3553 = vmatprep.subr.bf16.mxu0 %v6681_v63  ;;  %3617 = vmatprep.subr.bf16.mxu1 %v6682_v5 }
 0x16f   :  { %3555 = vmatpush1.bf16.msra.mxu0 %v6683_v31  ;;  %3619 = vmatpush1.bf16.msra.mxu1 %v6684_v42 }
 0x170   :  { %3557 = vmatprep.subr.bf16.mxu0 %v6685_v48  ;;  %3621 = vmatprep.subr.bf16.mxu1 %v6686_v51 }
 0x173   :  { %3559 = vmatpush1.bf16.msra.mxu0 %v6687_v13  ;;  %3623 = vmatpush1.bf16.msra.mxu1 %v6688_v6 }
 0x174   :  { %3561 = vmatprep.subr.bf16.mxu0 %v5427_v36  ;;  %3625 = vmatprep.subr.bf16.mxu1 %v5429_v39  ;;  %v6694_v36 = vld [vmem:[#allocation33_spill] sm:$0xff]  ;;  %v6695_v39 = vld [vmem:[#allocation34_spill] sm:$0xff] }
 0x177   :  { %3563 = vmatpush1.bf16.msra.mxu0 %v5433_v52  ;;  %3627 = vmatpush1.bf16.msra.mxu1 %v5435_v61  ;;  %v6696_v52 = vld [vmem:[#allocation35_spill] sm:$0xff]  ;;  %v6697_v61 = vld [vmem:[#allocation36_spill] sm:$0xff] }
 0x178   :  { %3565 = vmatprep.subr.bf16.mxu0 %v5439_v0  ;;  %3629 = vmatprep.subr.bf16.mxu1 %v5441_v11  ;;  %v6698_v0 = vld [vmem:[#allocation37_spill] sm:$0xff]  ;;  %v6699_v11 = vld [vmem:[#allocation38_spill] sm:$0xff] }
 0x17b   :  { %3567 = vmatpush1.bf16.msra.mxu0 %v6689_v62  ;;  %3631 = vmatpush1.bf16.msra.mxu1 %v6690_v9  ;;  %v6700_v62 = vld [vmem:[#allocation39_spill] sm:$0xff]  ;;  %v6701_v9 = vld [vmem:[#allocation40_spill] sm:$0xff] }
 0x17c   :  { %3569 = vmatprep.subr.bf16.mxu0 %v6691_v47  ;;  %3633 = vmatprep.subr.bf16.mxu1 %v6692_v12  ;;  %v6702_v47 = vld [vmem:[#allocation41_spill] sm:$0xff]  ;;  %v6703_v12 = vld [vmem:[#allocation42_spill] sm:$0xff] }
 0x17f   :  { %3571 = vmatpush1.bf16.msra.mxu0 %v6693_v10  ;;  %3635 = vmatpush1.bf16.msra.mxu1 %v6694_v36  ;;  %v6704_v10 = vld [vmem:[#allocation43_spill] sm:$0xff]  ;;  %v6705_v36 = vld [vmem:[#allocation44_spill] sm:$0xff] }
 0x180   :  { %3573 = vmatprep.subr.bf16.mxu0 %v6695_v39  ;;  %3637 = vmatprep.subr.bf16.mxu1 %v6696_v52  ;;  %v6706_v39 = vld [vmem:[#allocation45_spill] sm:$0xff]  ;;  %v6707_v52 = vld [vmem:[#allocation46_spill] sm:$0xff] }
 0x183   :  { %3575 = vmatpush1.bf16.msra.mxu0 %v6697_v61  ;;  %3639 = vmatpush1.bf16.msra.mxu1 %v6698_v0  ;;  %v6708_v61 = vld [vmem:[#allocation47_spill] sm:$0xff]  ;;  %v6709_v0 = vld [vmem:[#allocation48_spill] sm:$0xff] }
 0x184   :  { %3577 = vmatprep.subr.bf16.mxu0 %v6699_v11  ;;  %3641 = vmatprep.subr.bf16.mxu1 %v6700_v62  ;;  %v6710_v11 = vld [vmem:[#allocation49_spill] sm:$0xff]  ;;  %v6711_v62 = vld [vmem:[#allocation50_spill] sm:$0xff] }
 0x187   :  { %3579 = vmatpush1.bf16.msra.mxu0 %v6701_v9  ;;  %3643 = vmatpush1.bf16.msra.mxu1 %v6702_v47  ;;  %v6712_v9 = vld [vmem:[#allocation51_spill] sm:$0xff]  ;;  %v6713_v47 = vld [vmem:[#allocation52_spill] sm:$0xff] }
 0x188   :  { %3581 = vmatprep.subr.bf16.mxu0 %v6703_v12  ;;  %3645 = vmatprep.subr.bf16.mxu1 %v6704_v10  ;;  %v6714_v12 = vld [vmem:[#allocation53_spill] sm:$0xff]  ;;  %v6715_v10 = vld [vmem:[#allocation54_spill] sm:$0xff] }
 0x18b   :  { %3583 = vmatpush1.bf16.msra.mxu0 %v6705_v36  ;;  %3647 = vmatpush1.bf16.msra.mxu1 %v6706_v39  ;;  %v6716_v36 = vld [vmem:[#allocation55_spill] sm:$0xff]  ;;  %v6717_v39 = vld [vmem:[#allocation56_spill] sm:$0xff] }
 0x18c   :  { %3585 = vmatprep.subr.bf16.mxu0 %v6707_v52  ;;  %3649 = vmatprep.subr.bf16.mxu1 %v6708_v61  ;;  %v6718_v52 = vld [vmem:[#allocation57_spill] sm:$0xff]  ;;  %v6719_v61 = vld [vmem:[#allocation58_spill] sm:$0xff] }
 0x18f   :  { %3587 = vmatpush1.bf16.msra.mxu0 %v6709_v0  ;;  %3651 = vmatpush1.bf16.msra.mxu1 %v6710_v11  ;;  %v6720_v0 = vld [vmem:[#allocation59_spill] sm:$0xff]  ;;  %v6721_v11 = vld [vmem:[#allocation60_spill] sm:$0xff] }
 0x190   :  { %3589 = vmatprep.subr.bf16.mxu0 %v6711_v62  ;;  %3653 = vmatprep.subr.bf16.mxu1 %v6712_v9  ;;  %v6722_v62 = vld [vmem:[#allocation61_spill] sm:$0xff]  ;;  %v6723_v9 = vld [vmem:[#allocation62_spill] sm:$0xff] }
 0x193   :  { %3591 = vmatpush1.bf16.msra.mxu0 %v6713_v47  ;;  %3655 = vmatpush1.bf16.msra.mxu1 %v6714_v12  ;;  %v6724_v47 = vld [vmem:[#allocation63_spill] sm:$0xff]  ;;  %v6725_v12 = vld [vmem:[#allocation64_spill] sm:$0xff] }
 0x194   :  { %3593 = vmatprep.subr.bf16.mxu0 %v6715_v10  ;;  %3657 = vmatprep.subr.bf16.mxu1 %v6716_v36  ;;  %v6726_v10 = vld [vmem:[#allocation65_spill] sm:$0xff]  ;;  %v6727_v36 = vld [vmem:[#allocation8_spill] sm:$0xff] }
 0x197   :  { %3595 = vmatpush1.bf16.msra.mxu0 %v6717_v39  ;;  %3659 = vmatpush1.bf16.msra.mxu1 %v6718_v52  ;;  %v6728_v39 = vld [vmem:[#allocation9_spill] sm:$0xff] }
 0x198   :  { %3597 = vmatprep.subr.bf16.mxu0 %v6719_v61  ;;  %3661 = vmatprep.subr.bf16.mxu1 %v6720_v0  ;;  %v545_v0 = vld [vmem:[%s6472_s5] sm:$0xf]  ;;  %v6729_v61 = vld [vmem:[#allocation66_spill] sm:$0xff] }
 0x19b   :  { %3599 = vmatpush1.bf16.msra.mxu0 %v6721_v11  ;;  %3663 = vmatpush1.bf16.msra.mxu1 %v6722_v62  ;;  %v6730_v11 = vsub.s32 0, %v6729_v61 }
 0x19c   :  { %3601 = vmatprep.subr.bf16.mxu0 %v6723_v9  ;;  %3665 = vmatprep.subr.bf16.mxu1 %v6724_v47  ;;  %v6732_v9 = vsub.s32 1, %v6729_v61 }
 0x19d   :  { %v5698_v52 = vrot.slane %v545_v0, %v6730_v11 }
 0x19e   :  { %v5702_v62 = vrot.slane %v545_v0, %v6732_v9  ;;  %v6736_v9 = vsub.s32 3, %v6729_v61 }
 0x19f   :  { %3603 = vmatpush1.bf16.msra.mxu0 %v6725_v12  ;;  %3667 = vmatpush1.bf16.msra.mxu1 %v6726_v10  ;;  %6731 = vst [vmem:[#allocation66_spill] sm:$0xff] %v5698_v52  ;;  %v6734_v12 = vsub.s32 2, %v6729_v61 }
 0x1a0   :  { %3669 = vmatprep.subr.bf16.mxu0 %v6727_v36  ;;  %3701 = vmatprep.subr.bf16.mxu1 %v6728_v39  ;;  %6733 = vst [vmem:[#allocation70_spill] sm:$0xff] %v5702_v62  ;;  %v5713_v48 = vrot.slane %v545_v0, %v6736_v9 }
 0x1a1   :  { %v5706_v47 = vrot.slane %v545_v0, %v6734_v12 }
 0x1a2   :  { %6737 = vst [vmem:[#allocation72_spill] sm:$0xff] %v5713_v48 }
 0x1a3   :  { %6735 = vst [vmem:[#allocation71_spill] sm:$0xff] %v5706_v47 }
 0x215   :  { %v794_v10 = vpop.f32.mrb[16].mxu0  ;;  %v865_v36 = vpop.f32.mrb[16].mxu1 }
 0x216   :  { %v795_v39 = vadd.f32 %v794_v10, %v5698_v52  ;;  %v796_v6 = vpop.f32.mrb[17].mxu0  ;;  %v867_v13 = vpop.f32.mrb[17].mxu1  ;;  %v866_v11 = vadd.f32 %v865_v36, %v5706_v47 }
 0x217   :  { %v797_v51 = vadd.f32 %v796_v6, %v5702_v62  ;;  %v868_v12 = vadd.f32 %v867_v13, %v5713_v48  ;;  %v6739_v13 = vld [vmem:[#allocation67_spill] sm:$0xff] }
 0x218   :  { %4927 = vtanh.f32 %v795_v39 }
 0x219   :  { %4929 = vtanh.f32 %v797_v51 }
 0x21a   :  { %4931 = vtanh.f32 %v866_v11 }
 0x21b   :  { %4933 = vtanh.f32 %v868_v12 }
 0x222   :  { %v4928_v42 = vpop.eup %4927 }
 0x223   :  { %v874_v31 = vmul.f32 0.5, %v4928_v42  ;;  %v4930_v5 = vpop.eup %4929 }
 0x224   :  { %v875_v10 = vmul.f32 0.5, %v4930_v5  ;;  %v4932_v52 = vpop.eup %4931  ;;  %v6740_v5 = vld [vmem:[#allocation68_spill] sm:$0xff] }
 0x225   :  { %v877_v63 = vadd.f32 0.5, %v874_v31  ;;  %v4934_v36 = vpop.eup %4933 }
 0x226   :  { %v878_v19 = vadd.f32 0.5, %v875_v10  ;;  %v876_v61 = vmul.f32 0.5, %v4934_v36  ;;  %v6741_v10 = vld [vmem:[#allocation69_spill] sm:$0xff] }
 0x227   :  { %v881_v6 = vmul.f32 %v4932_v52, %v877_v63 }
 0x228   :  { %v880_v39 = vmul.f32 0.0, %v878_v19  ;;  %v879_v11 = vadd.f32 0.5, %v876_v61 }
 0x22a   :  { %v5716_v62 = vadd.f32 %v881_v6, %v880_v39 }
 0x22c   :  { %6738 = vst [vmem:[#allocation73_spill] sm:$0xff] %v5716_v62  ;;  %4935 = vtanh.f32 %v5716_v62 }
 0x235   :  { %v951_v0 = vpop.f32.mrb[2].mxu0  ;;  %v1022_v51 = vpop.f32.mrb[2].mxu1 }
 0x236   :  { %v4846_v9 = vadd.f32 %v951_v0, %v6739_v13  ;;  %v953_v42 = vpop.f32.mrb[3].mxu0  ;;  %v1024_v48 = vpop.f32.mrb[3].mxu1  ;;  %v4862_v52 = vadd.f32 %v1022_v51, %v6741_v10 }
 0x237   :  { %v4936_v31 = vpop.eup %4935  ;;  %v4847_v12 = vadd.f32 %v953_v42, %v6740_v5  ;;  %v4863_v63 = vadd.f32 %v1024_v48, %v5589_v22 }
 0x238   :  { %4937 = vtanh.f32 %v4846_v9  ;;  %v884_v19 = vmul.f32 %v4936_v31, %v879_v11 }
 0x239   :  { %4939 = vtanh.f32 %v4847_v12 }
 0x23a   :  { %1110 = vmatprep.mubr.f32.mxu0 %v884_v19  ;;  %1181 = vmatprep.mubr.f32.mxu1 %v884_v19  ;;  %4941 = vtanh.f32 %v4862_v52  ;;  %v6746_v52 = vld [vmem:[#allocation17_spill] sm:$0xff]  ;;  %v6747_v19 = vld [vmem:[#allocation18_spill] sm:$0xff] }
 0x23b   :  { %4943 = vtanh.f32 %v4863_v63  ;;  %v6748_v63 = vld [vmem:[#allocation19_spill] sm:$0xff] }
 0x242   :  { %v4938_v6 = vpop.eup %4937 }
 0x243   :  { %v1035_v39 = vmul.f32 0.5, %v4938_v6  ;;  %v4940_v36 = vpop.eup %4939  ;;  %v6749_v6 = vld [vmem:[#allocation20_spill] sm:$0xff] }
 0x244   :  { %v1036_v0 = vmul.f32 0.5, %v4940_v36  ;;  %v4942_v13 = vpop.eup %4941  ;;  %v6751_v36 = vld [vmem:[#allocation22_spill] sm:$0xff] }
 0x245   :  { %v1038_v61 = vadd.f32 0.5, %v1035_v39  ;;  %v4944_v51 = vpop.eup %4943  ;;  %v6750_v39 = vld [vmem:[#allocation21_spill] sm:$0xff] }
 0x246   :  { %v1039_v62 = vadd.f32 0.5, %v1036_v0  ;;  %v1037_v11 = vmul.f32 0.5, %v4944_v51  ;;  %v6753_v0 = vld [vmem:[#allocation24_spill] sm:$0xff]  ;;  %v6755_v51 = vld [vmem:[#allocation26_spill] sm:$0xff] }
 0x247   :  { %v1042_v47 = vmul.f32 %v4942_v13, %v1038_v61  ;;  %v6745_v13 = vld [vmem:[#allocation16_spill] sm:$0xff]  ;;  %v6752_v61 = vld [vmem:[#allocation23_spill] sm:$0xff] }
 0x248   :  { %v1041_v9 = vmul.f32 %v1039_v62, %v5592_v18  ;;  %v1040_v31 = vadd.f32 0.5, %v1037_v11  ;;  %v6742_v18 = vld [vmem:[#allocation13_spill] sm:$0xff]  ;;  %v6743_v62 = vld [vmem:[#allocation14_spill] sm:$0xff]  ;;  %v6756_v11 = vld [vmem:[#allocation27_spill] sm:$0xff] }
 0x24a   :  { %v5724_v42 = vadd.f32 %v1042_v47, %v1041_v9  ;;  %v6744_v47 = vld [vmem:[#allocation15_spill] sm:$0xff]  ;;  %v6754_v9 = vld [vmem:[#allocation25_spill] sm:$0xff] }
 0x24c   :  { %4945 = vtanh.f32 %v5724_v42 }
 0x256   :  { %v4946_v12 = vpop.eup %4945 }
 0x257   :  { %v1045_v48 = vmul.f32 %v4946_v12, %v1040_v31  ;;  %v6757_v31 = vld [vmem:[#allocation28_spill] sm:$0xff]  ;;  %v6758_v12 = vld [vmem:[#allocation29_spill] sm:$0xff] }
 0x259   :  { %1111 = vmatmul.mubr.f32.vlgmr.msra.gmra.mrb[18].mxu0 %v1045_v48  ;;  %1182 = vmatmul.mubr.f32.vlgmr.msra.gmra.mrb[18].mxu1 %v1045_v48 }
 0x25a   :  { %3671 = vmatpush1.bf16.msra.mxu0 %v5218_v14  ;;  %3703 = vmatpush1.bf16.msra.mxu1 %v5222_v17 }
 0x25b   :  { %3673 = vmatprep.subr.bf16.mxu0 %v5231_v25  ;;  %3705 = vmatprep.subr.bf16.mxu1 %v5233_v26 }
 0x25c   :  { %1267 = vmatprep.mubr.f32.mxu0 %v6678_v32  ;;  %1338 = vmatprep.mubr.f32.mxu1 %v6678_v32 }
 0x25e   :  { %3675 = vmatpush1.bf16.msra.mxu0 %v5237_v29  ;;  %3707 = vmatpush1.bf16.msra.mxu1 %v5239_v30 }
 0x25f   :  { %3677 = vmatprep.subr.bf16.mxu0 %v5250_v40  ;;  %3709 = vmatprep.subr.bf16.mxu1 %v5252_v41 }
 0x262   :  { %3679 = vmatpush1.bf16.msra.mxu0 %v5256_v44  ;;  %3711 = vmatpush1.bf16.msra.mxu1 %v5258_v45 }
 0x263   :  { %3681 = vmatprep.subr.bf16.mxu0 %v5269_v53  ;;  %3713 = vmatprep.subr.bf16.mxu1 %v5271_v54 }
 0x266   :  { %3683 = vmatpush1.bf16.msra.mxu0 %v5275_v57  ;;  %3715 = vmatpush1.bf16.msra.mxu1 %v5277_v58 }
 0x267   :  { %3685 = vmatprep.subr.bf16.mxu0 %v5288_v3  ;;  %3717 = vmatprep.subr.bf16.mxu1 %v5290_v4 }
 0x26a   :  { %3687 = vmatpush1.bf16.msra.mxu0 %v5294_v7  ;;  %3719 = vmatpush1.bf16.msra.mxu1 %v5296_v8 }
 0x26b   :  { %3689 = vmatprep.subr.bf16.mxu0 %v5307_v20  ;;  %3721 = vmatprep.subr.bf16.mxu1 %v5309_v21 }
 0x26e   :  { %3691 = vmatpush1.bf16.msra.mxu0 %v5313_v24  ;;  %3723 = vmatpush1.bf16.msra.mxu1 %v5315_v27 }
 0x26f   :  { %3693 = vmatprep.subr.bf16.mxu0 %v5326_v37  ;;  %3725 = vmatprep.subr.bf16.mxu1 %v5328_v38 }
 0x272   :  { %3695 = vmatpush1.bf16.msra.mxu0 %v5332_v43  ;;  %3727 = vmatpush1.bf16.msra.mxu1 %v5334_v46 }
 0x273   :  { %3697 = vmatprep.subr.bf16.mxu0 %v5345_v59  ;;  %3729 = vmatprep.subr.bf16.mxu1 %v5347_v60 }
 0x276   :  { %3699 = vmatpush1.bf16.msra.mxu0 %v5351_v1  ;;  %3731 = vmatpush1.bf16.msra.mxu1 %v5353_v2 }
 0x277   :  { %3733 = vmatprep.subr.bf16.mxu0 %v5359_v15  ;;  %3797 = vmatprep.subr.bf16.mxu1 %v5361_v16 }
 0x279   :  { %1268 = vmatmul.mubr.f32.vlgmr.msra.gmra.mrb[4].mxu0 %v1045_v48  ;;  %1339 = vmatmul.mubr.f32.vlgmr.msra.gmra.mrb[4].mxu1 %v1045_v48  ;;  %v6759_v48 = vld [vmem:[#allocation30_spill] sm:$0xff] }
 0x27a   :  { %3735 = vmatpush1.bf16.msra.mxu0 %v5367_v23  ;;  %3799 = vmatpush1.bf16.msra.mxu1 %v5369_v28 }
 0x27b   :  { %3737 = vmatprep.subr.bf16.mxu0 %v5373_v33  ;;  %3801 = vmatprep.subr.bf16.mxu1 %v5375_v34 }
 0x27e   :  { %3739 = vmatpush1.bf16.msra.mxu0 %v5383_v49  ;;  %3803 = vmatpush1.bf16.msra.mxu1 %v5385_v50 }
 0x27f   :  { %3741 = vmatprep.subr.bf16.mxu0 %v5389_v55  ;;  %3805 = vmatprep.subr.bf16.mxu1 %v5391_v56 }
 0x282   :  { %3743 = vmatpush1.bf16.msra.mxu0 %v6679_v35  ;;  %3807 = vmatpush1.bf16.msra.mxu1 %v6742_v18 }
 0x283   :  { %3745 = vmatprep.subr.bf16.mxu0 %v6743_v62  ;;  %3809 = vmatprep.subr.bf16.mxu1 %v6744_v47 }
 0x286   :  { %3747 = vmatpush1.bf16.msra.mxu0 %v6745_v13  ;;  %3811 = vmatpush1.bf16.msra.mxu1 %v6746_v52  ;;  %v6798_v52 = vld [vmem:[#allocation70_spill] sm:$0xff] }
 0x287   :  { %3749 = vmatprep.subr.bf16.mxu0 %v6747_v19  ;;  %3813 = vmatprep.subr.bf16.mxu1 %v6748_v63  ;;  %v6797_v63 = vld [vmem:[#allocation66_spill] sm:$0xff] }
 0x28a   :  { %3751 = vmatpush1.bf16.msra.mxu0 %v6749_v6  ;;  %3815 = vmatpush1.bf16.msra.mxu1 %v6750_v39  ;;  %v6760_v6 = vld [vmem:[#allocation31_spill] sm:$0xff]  ;;  %v6761_v39 = vld [vmem:[#allocation32_spill] sm:$0xff] }
 0x28b   :  { %3753 = vmatprep.subr.bf16.mxu0 %v6751_v36  ;;  %3817 = vmatprep.subr.bf16.mxu1 %v6752_v61  ;;  %v6762_v36 = vld [vmem:[#allocation33_spill] sm:$0xff]  ;;  %v6763_v61 = vld [vmem:[#allocation34_spill] sm:$0xff] }
 0x28e   :  { %3755 = vmatpush1.bf16.msra.mxu0 %v6753_v0  ;;  %3819 = vmatpush1.bf16.msra.mxu1 %v6754_v9  ;;  %v6764_v0 = vld [vmem:[#allocation35_spill] sm:$0xff]  ;;  %v6765_v9 = vld [vmem:[#allocation36_spill] sm:$0xff] }
 0x28f   :  { %3757 = vmatprep.subr.bf16.mxu0 %v6755_v51  ;;  %3821 = vmatprep.subr.bf16.mxu1 %v6756_v11  ;;  %v6766_v51 = vld [vmem:[#allocation37_spill] sm:$0xff]  ;;  %v6767_v11 = vld [vmem:[#allocation38_spill] sm:$0xff] }
 0x292   :  { %3759 = vmatpush1.bf16.msra.mxu0 %v6757_v31  ;;  %3823 = vmatpush1.bf16.msra.mxu1 %v6758_v12  ;;  %v6768_v31 = vld [vmem:[#allocation39_spill] sm:$0xff]  ;;  %v6769_v12 = vld [vmem:[#allocation40_spill] sm:$0xff] }
 0x293   :  { %3761 = vmatprep.subr.bf16.mxu0 %v6759_v48  ;;  %3825 = vmatprep.subr.bf16.mxu1 %v6760_v6  ;;  %v6770_v48 = vld [vmem:[#allocation41_spill] sm:$0xff]  ;;  %v6771_v6 = vld [vmem:[#allocation42_spill] sm:$0xff] }
 0x296   :  { %3763 = vmatpush1.bf16.msra.mxu0 %v6761_v39  ;;  %3827 = vmatpush1.bf16.msra.mxu1 %v6762_v36  ;;  %v6772_v39 = vld [vmem:[#allocation43_spill] sm:$0xff]  ;;  %v6773_v36 = vld [vmem:[#allocation44_spill] sm:$0xff] }
 0x297   :  { %3765 = vmatprep.subr.bf16.mxu0 %v6763_v61  ;;  %3829 = vmatprep.subr.bf16.mxu1 %v6764_v0  ;;  %v6774_v61 = vld [vmem:[#allocation45_spill] sm:$0xff]  ;;  %v6775_v0 = vld [vmem:[#allocation46_spill] sm:$0xff] }
 0x29a   :  { %3767 = vmatpush1.bf16.msra.mxu0 %v6765_v9  ;;  %3831 = vmatpush1.bf16.msra.mxu1 %v6766_v51  ;;  %v6776_v9 = vld [vmem:[#allocation47_spill] sm:$0xff]  ;;  %v6777_v51 = vld [vmem:[#allocation48_spill] sm:$0xff] }
 0x29b   :  { %3769 = vmatprep.subr.bf16.mxu0 %v6767_v11  ;;  %3833 = vmatprep.subr.bf16.mxu1 %v6768_v31  ;;  %v6778_v11 = vld [vmem:[#allocation49_spill] sm:$0xff]  ;;  %v6779_v31 = vld [vmem:[#allocation50_spill] sm:$0xff] }
 0x29e   :  { %3771 = vmatpush1.bf16.msra.mxu0 %v6769_v12  ;;  %3835 = vmatpush1.bf16.msra.mxu1 %v6770_v48  ;;  %v6780_v12 = vld [vmem:[#allocation51_spill] sm:$0xff]  ;;  %v6781_v48 = vld [vmem:[#allocation52_spill] sm:$0xff] }
 0x29f   :  { %3773 = vmatprep.subr.bf16.mxu0 %v6771_v6  ;;  %3837 = vmatprep.subr.bf16.mxu1 %v6772_v39  ;;  %v6782_v6 = vld [vmem:[#allocation53_spill] sm:$0xff]  ;;  %v6783_v39 = vld [vmem:[#allocation54_spill] sm:$0xff] }
 0x2a2   :  { %3775 = vmatpush1.bf16.msra.mxu0 %v6773_v36  ;;  %3839 = vmatpush1.bf16.msra.mxu1 %v6774_v61  ;;  %v6784_v36 = vld [vmem:[#allocation55_spill] sm:$0xff]  ;;  %v6785_v61 = vld [vmem:[#allocation56_spill] sm:$0xff] }
 0x2a3   :  { %3777 = vmatprep.subr.bf16.mxu0 %v6775_v0  ;;  %3841 = vmatprep.subr.bf16.mxu1 %v6776_v9  ;;  %v6786_v0 = vld [vmem:[#allocation57_spill] sm:$0xff]  ;;  %v6787_v9 = vld [vmem:[#allocation58_spill] sm:$0xff] }
 0x2a6   :  { %3779 = vmatpush1.bf16.msra.mxu0 %v6777_v51  ;;  %3843 = vmatpush1.bf16.msra.mxu1 %v6778_v11  ;;  %v6788_v51 = vld [vmem:[#allocation59_spill] sm:$0xff]  ;;  %v6789_v11 = vld [vmem:[#allocation60_spill] sm:$0xff] }
 0x2a7   :  { %3781 = vmatprep.subr.bf16.mxu0 %v6779_v31  ;;  %3845 = vmatprep.subr.bf16.mxu1 %v6780_v12  ;;  %v6790_v31 = vld [vmem:[#allocation61_spill] sm:$0xff]  ;;  %v6791_v12 = vld [vmem:[#allocation62_spill] sm:$0xff] }
 0x2aa   :  { %3783 = vmatpush1.bf16.msra.mxu0 %v6781_v48  ;;  %3847 = vmatpush1.bf16.msra.mxu1 %v6782_v6  ;;  %v6792_v48 = vld [vmem:[#allocation63_spill] sm:$0xff]  ;;  %v6793_v6 = vld [vmem:[#allocation64_spill] sm:$0xff] }
 0x2ab   :  { %3785 = vmatprep.subr.bf16.mxu0 %v6783_v39  ;;  %3849 = vmatprep.subr.bf16.mxu1 %v6784_v36  ;;  %v6794_v39 = vld [vmem:[#allocation65_spill] sm:$0xff]  ;;  %v6795_v36 = vld [vmem:[#allocation8_spill] sm:$0xff] }
 0x2ae   :  { %3787 = vmatpush1.bf16.msra.mxu0 %v6785_v61  ;;  %3851 = vmatpush1.bf16.msra.mxu1 %v6786_v0  ;;  %v6796_v61 = vld [vmem:[#allocation9_spill] sm:$0xff] }
 0x2af   :  { %3789 = vmatprep.subr.bf16.mxu0 %v6787_v9  ;;  %3853 = vmatprep.subr.bf16.mxu1 %v6788_v51 }
 0x2b2   :  { %3791 = vmatpush1.bf16.msra.mxu0 %v6789_v11  ;;  %3855 = vmatpush1.bf16.msra.mxu1 %v6790_v31 }
 0x2b3   :  { %3793 = vmatprep.subr.bf16.mxu0 %v6791_v12  ;;  %3857 = vmatprep.subr.bf16.mxu1 %v6792_v48  ;;  %v6799_v12 = vld [vmem:[#allocation71_spill] sm:$0xff] }
 0x2b6   :  { %3795 = vmatpush1.bf16.msra.mxu0 %v6793_v6  ;;  %3859 = vmatpush1.bf16.msra.mxu1 %v6794_v39  ;;  %v6800_v6 = vld [vmem:[#allocation72_spill] sm:$0xff] }
 0x2b7   :  { %3861 = vmatprep.subr.bf16.mxu0 %v6795_v36  ;;  %3893 = vmatprep.subr.bf16.mxu1 %v6796_v61 }
 0x32c   :  { %v1112_v0 = vpop.f32.mrb[18].mxu0  ;;  %v1183_v9 = vpop.f32.mrb[18].mxu1 }
 0x32d   :  { %v1113_v51 = vadd.f32 %v1112_v0, %v6797_v63  ;;  %v1114_v19 = vpop.f32.mrb[19].mxu0  ;;  %v1185_v11 = vpop.f32.mrb[19].mxu1  ;;  %v1184_v13 = vadd.f32 %v1183_v9, %v6799_v12  ;;  %v6801_v63 = vld [vmem:[#allocation73_spill] sm:$0xff] }
 0x32e   :  { %v1115_v31 = vadd.f32 %v1114_v19, %v6798_v52  ;;  %v1186_v48 = vadd.f32 %v1185_v11, %v6800_v6 }
 0x32f   :  { %4947 = vtanh.f32 %v1113_v51 }
 0x330   :  { %4949 = vtanh.f32 %v1115_v31  ;;  %v6802_v31 = vld [vmem:[#allocation67_spill] sm:$0xff] }
 0x331   :  { %4951 = vtanh.f32 %v1184_v13 }
 0x332   :  { %4953 = vtanh.f32 %v1186_v48 }
 0x339   :  { %v4948_v39 = vpop.eup %4947 }
 0x33a   :  { %v1192_v47 = vmul.f32 0.5, %v4948_v39  ;;  %v4950_v36 = vpop.eup %4949 }
 0x33b   :  { %v1193_v61 = vmul.f32 0.5, %v4950_v36  ;;  %v4952_v18 = vpop.eup %4951 }
 0x33c   :  { %v1195_v62 = vadd.f32 0.5, %v1192_v47  ;;  %v4954_v19 = vpop.eup %4953 }
 0x33d   :  { %v1196_v35 = vadd.f32 0.5, %v1193_v61  ;;  %v1194_v9 = vmul.f32 0.5, %v4954_v19 }
 0x33e   :  { %v1199_v0 = vmul.f32 %v4952_v18, %v1195_v62 }
 0x33f   :  { %v1198_v56 = vmul.f32 %v1196_v35, %v6801_v63  ;;  %v1197_v11 = vadd.f32 0.5, %v1194_v9 }
 0x341   :  { %v5830_v55 = vadd.f32 %v1199_v0, %v1198_v56 }
 0x343   :  { %4955 = vtanh.f32 %v5830_v55 }
 0x34c   :  { %v1269_v13 = vpop.f32.mrb[4].mxu0  ;;  %v1340_v51 = vpop.f32.mrb[4].mxu1 }
 0x34d   :  { %v4848_v39 = vadd.f32 %v1269_v13, %v6802_v31  ;;  %v1271_v6 = vpop.f32.mrb[5].mxu0  ;;  %v1342_v47 = vpop.f32.mrb[5].mxu1  ;;  %v4864_v18 = vadd.f32 %v1340_v51, %v6741_v10 }
 0x34e   :  { %v4956_v36 = vpop.eup %4955  ;;  %v4849_v48 = vadd.f32 %v1271_v6, %v6740_v5  ;;  %v4865_v56 = vadd.f32 %v1342_v47, %v5589_v22 }
 0x34f   :  { %4957 = vtanh.f32 %v4848_v39  ;;  %v1202_v35 = vmul.f32 %v4956_v36, %v1197_v11 }
 0x350   :  { %4959 = vtanh.f32 %v4849_v48 }
 0x351   :  { %1428 = vmatprep.mubr.f32.mxu0 %v1202_v35  ;;  %1499 = vmatprep.mubr.f32.mxu1 %v1202_v35  ;;  %4961 = vtanh.f32 %v4864_v18  ;;  %v6805_v18 = vld [vmem:[#allocation12_spill] sm:$0xff]  ;;  %v6806_v35 = vld [vmem:[#allocation13_spill] sm:$0xff] }
 0x352   :  { %4963 = vtanh.f32 %v4865_v56  ;;  %v6807_v56 = vld [vmem:[#allocation14_spill] sm:$0xff] }
 0x359   :  { %v4958_v62 = vpop.eup %4957 }
 0x35a   :  { %v1353_v63 = vmul.f32 0.5, %v4958_v62  ;;  %v4960_v61 = vpop.eup %4959  ;;  %v6808_v62 = vld [vmem:[#allocation15_spill] sm:$0xff] }
 0x35b   :  { %v1354_v19 = vmul.f32 0.5, %v4960_v61  ;;  %v4962_v9 = vpop.eup %4961  ;;  %v6810_v61 = vld [vmem:[#allocation17_spill] sm:$0xff] }
 0x35c   :  { %v1356_v0 = vadd.f32 0.5, %v1353_v63  ;;  %v4964_v51 = vpop.eup %4963  ;;  %v6809_v63 = vld [vmem:[#allocation16_spill] sm:$0xff] }
 0x35d   :  { %v1357_v13 = vadd.f32 0.5, %v1354_v19  ;;  %v1355_v11 = vmul.f32 0.5, %v4964_v51  ;;  %v6812_v19 = vld [vmem:[#allocation19_spill] sm:$0xff] }
 0x35e   :  { %v1360_v31 = vmul.f32 %v4962_v9, %v1356_v0  ;;  %v6811_v0 = vld [vmem:[#allocation18_spill] sm:$0xff]  ;;  %v6813_v9 = vld [vmem:[#allocation20_spill] sm:$0xff]  ;;  %v6816_v51 = vld [vmem:[#allocation23_spill] sm:$0xff] }
 0x35f   :  { %v1359_v6 = vmul.f32 %v1357_v13, %v5724_v42  ;;  %v1358_v36 = vadd.f32 0.5, %v1355_v11  ;;  %v6803_v42 = vld [vmem:[#allocation10_spill] sm:$0xff]  ;;  %v6814_v13 = vld [vmem:[#allocation21_spill] sm:$0xff]  ;;  %v6817_v11 = vld [vmem:[#allocation24_spill] sm:$0xff] }
 0x361   :  { %v5838_v39 = vadd.f32 %v1360_v31, %v1359_v6  ;;  %v6804_v31 = vld [vmem:[#allocation11_spill] sm:$0xff]  ;;  %v6815_v6 = vld [vmem:[#allocation22_spill] sm:$0xff] }
 0x363   :  { %4965 = vtanh.f32 %v5838_v39 }
 0x36d   :  { %v4966_v48 = vpop.eup %4965 }
 0x36e   :  { %v1363_v47 = vmul.f32 %v4966_v48, %v1358_v36  ;;  %v6818_v36 = vld [vmem:[#allocation25_spill] sm:$0xff]  ;;  %v6819_v48 = vld [vmem:[#allocation26_spill] sm:$0xff] }
 0x370   :  { %1429 = vmatmul.mubr.f32.vlgmr.msra.gmra.mrb[20].mxu0 %v1363_v47  ;;  %1500 = vmatmul.mubr.f32.vlgmr.msra.gmra.mrb[20].mxu1 %v1363_v47 }
 0x371   :  { %3863 = vmatpush1.bf16.msra.mxu0 %v5218_v14  ;;  %3895 = vmatpush1.bf16.msra.mxu1 %v5222_v17 }
 0x372   :  { %3865 = vmatprep.subr.bf16.mxu0 %v5231_v25  ;;  %3897 = vmatprep.subr.bf16.mxu1 %v5233_v26 }
 0x373   :  { %1585 = vmatprep.mubr.f32.mxu0 %v6678_v32  ;;  %1656 = vmatprep.mubr.f32.mxu1 %v6678_v32 }
 0x375   :  { %3867 = vmatpush1.bf16.msra.mxu0 %v5237_v29  ;;  %3899 = vmatpush1.bf16.msra.mxu1 %v5239_v30 }
 0x376   :  { %3869 = vmatprep.subr.bf16.mxu0 %v5250_v40  ;;  %3901 = vmatprep.subr.bf16.mxu1 %v5252_v41 }
 0x379   :  { %3871 = vmatpush1.bf16.msra.mxu0 %v5256_v44  ;;  %3903 = vmatpush1.bf16.msra.mxu1 %v5258_v45 }
 0x37a   :  { %3873 = vmatprep.subr.bf16.mxu0 %v5269_v53  ;;  %3905 = vmatprep.subr.bf16.mxu1 %v5271_v54 }
 0x37d   :  { %3875 = vmatpush1.bf16.msra.mxu0 %v5275_v57  ;;  %3907 = vmatpush1.bf16.msra.mxu1 %v5277_v58 }
 0x37e   :  { %3877 = vmatprep.subr.bf16.mxu0 %v5288_v3  ;;  %3909 = vmatprep.subr.bf16.mxu1 %v5290_v4 }
 0x381   :  { %3879 = vmatpush1.bf16.msra.mxu0 %v5294_v7  ;;  %3911 = vmatpush1.bf16.msra.mxu1 %v5296_v8 }
 0x382   :  { %3881 = vmatprep.subr.bf16.mxu0 %v5307_v20  ;;  %3913 = vmatprep.subr.bf16.mxu1 %v5309_v21 }
 0x385   :  { %3883 = vmatpush1.bf16.msra.mxu0 %v5313_v24  ;;  %3915 = vmatpush1.bf16.msra.mxu1 %v5315_v27 }
 0x386   :  { %3885 = vmatprep.subr.bf16.mxu0 %v5326_v37  ;;  %3917 = vmatprep.subr.bf16.mxu1 %v5328_v38 }
 0x389   :  { %3887 = vmatpush1.bf16.msra.mxu0 %v5332_v43  ;;  %3919 = vmatpush1.bf16.msra.mxu1 %v5334_v46 }
 0x38a   :  { %3889 = vmatprep.subr.bf16.mxu0 %v5345_v59  ;;  %3921 = vmatprep.subr.bf16.mxu1 %v5347_v60 }
 0x38d   :  { %3891 = vmatpush1.bf16.msra.mxu0 %v5351_v1  ;;  %3923 = vmatpush1.bf16.msra.mxu1 %v5353_v2 }
 0x38e   :  { %3925 = vmatprep.subr.bf16.mxu0 %v5359_v15  ;;  %3989 = vmatprep.subr.bf16.mxu1 %v5361_v16 }
 0x390   :  { %1586 = vmatmul.mubr.f32.vlgmr.msra.gmra.mrb[6].mxu0 %v1363_v47  ;;  %1657 = vmatmul.mubr.f32.vlgmr.msra.gmra.mrb[6].mxu1 %v1363_v47  ;;  %v6820_v47 = vld [vmem:[#allocation27_spill] sm:$0xff] }
 0x391   :  { %3927 = vmatpush1.bf16.msra.mxu0 %v5367_v23  ;;  %3991 = vmatpush1.bf16.msra.mxu1 %v5369_v28 }
 0x392   :  { %3929 = vmatprep.subr.bf16.mxu0 %v5373_v33  ;;  %3993 = vmatprep.subr.bf16.mxu1 %v5375_v34 }
 0x395   :  { %3931 = vmatpush1.bf16.msra.mxu0 %v5383_v49  ;;  %3995 = vmatpush1.bf16.msra.mxu1 %v5385_v50 }
 0x396   :  { %3933 = vmatprep.subr.bf16.mxu0 %v6803_v42  ;;  %3997 = vmatprep.subr.bf16.mxu1 %v6804_v31 }
 0x399   :  { %3935 = vmatpush1.bf16.msra.mxu0 %v6805_v18  ;;  %3999 = vmatpush1.bf16.msra.mxu1 %v6806_v35 }
 0x39a   :  { %3937 = vmatprep.subr.bf16.mxu0 %v6807_v56  ;;  %4001 = vmatprep.subr.bf16.mxu1 %v6808_v62 }
 0x39d   :  { %3939 = vmatpush1.bf16.msra.mxu0 %v6809_v63  ;;  %4003 = vmatpush1.bf16.msra.mxu1 %v6810_v61  ;;  %v6821_v61 = vld [vmem:[#allocation28_spill] sm:$0xff]  ;;  %v6861_v63 = vld [vmem:[#allocation66_spill] sm:$0xff] }
 0x39e   :  { %3941 = vmatprep.subr.bf16.mxu0 %v6811_v0  ;;  %4005 = vmatprep.subr.bf16.mxu1 %v6812_v19  ;;  %v6822_v0 = vld [vmem:[#allocation29_spill] sm:$0xff]  ;;  %v6823_v19 = vld [vmem:[#allocation30_spill] sm:$0xff] }
 0x3a1   :  { %3943 = vmatpush1.bf16.msra.mxu0 %v6813_v9  ;;  %4007 = vmatpush1.bf16.msra.mxu1 %v6814_v13  ;;  %v6824_v9 = vld [vmem:[#allocation31_spill] sm:$0xff]  ;;  %v6825_v13 = vld [vmem:[#allocation32_spill] sm:$0xff] }
 0x3a2   :  { %3945 = vmatprep.subr.bf16.mxu0 %v6815_v6  ;;  %4009 = vmatprep.subr.bf16.mxu1 %v6816_v51  ;;  %v6826_v6 = vld [vmem:[#allocation33_spill] sm:$0xff]  ;;  %v6827_v51 = vld [vmem:[#allocation34_spill] sm:$0xff] }
 0x3a5   :  { %3947 = vmatpush1.bf16.msra.mxu0 %v6817_v11  ;;  %4011 = vmatpush1.bf16.msra.mxu1 %v6818_v36  ;;  %v6828_v11 = vld [vmem:[#allocation35_spill] sm:$0xff]  ;;  %v6829_v36 = vld [vmem:[#allocation36_spill] sm:$0xff] }
 0x3a6   :  { %3949 = vmatprep.subr.bf16.mxu0 %v6819_v48  ;;  %4013 = vmatprep.subr.bf16.mxu1 %v6820_v47  ;;  %v6830_v48 = vld [vmem:[#allocation37_spill] sm:$0xff]  ;;  %v6831_v47 = vld [vmem:[#allocation38_spill] sm:$0xff] }
 0x3a9   :  { %3951 = vmatpush1.bf16.msra.mxu0 %v6821_v61  ;;  %4015 = vmatpush1.bf16.msra.mxu1 %v6822_v0  ;;  %v6832_v61 = vld [vmem:[#allocation39_spill] sm:$0xff]  ;;  %v6833_v0 = vld [vmem:[#allocation40_spill] sm:$0xff] }
 0x3aa   :  { %3953 = vmatprep.subr.bf16.mxu0 %v6823_v19  ;;  %4017 = vmatprep.subr.bf16.mxu1 %v6824_v9  ;;  %v6834_v19 = vld [vmem:[#allocation41_spill] sm:$0xff]  ;;  %v6835_v9 = vld [vmem:[#allocation42_spill] sm:$0xff] }
 0x3ad   :  { %3955 = vmatpush1.bf16.msra.mxu0 %v6825_v13  ;;  %4019 = vmatpush1.bf16.msra.mxu1 %v6826_v6  ;;  %v6836_v13 = vld [vmem:[#allocation43_spill] sm:$0xff]  ;;  %v6837_v6 = vld [vmem:[#allocation44_spill] sm:$0xff] }
 0x3ae   :  { %3957 = vmatprep.subr.bf16.mxu0 %v6827_v51  ;;  %4021 = vmatprep.subr.bf16.mxu1 %v6828_v11  ;;  %v6838_v51 = vld [vmem:[#allocation45_spill] sm:$0xff]  ;;  %v6839_v11 = vld [vmem:[#allocation46_spill] sm:$0xff] }
 0x3b1   :  { %3959 = vmatpush1.bf16.msra.mxu0 %v6829_v36  ;;  %4023 = vmatpush1.bf16.msra.mxu1 %v6830_v48  ;;  %v6840_v36 = vld [vmem:[#allocation47_spill] sm:$0xff]  ;;  %v6841_v48 = vld [vmem:[#allocation48_spill] sm:$0xff] }
 0x3b2   :  { %3961 = vmatprep.subr.bf16.mxu0 %v6831_v47  ;;  %4025 = vmatprep.subr.bf16.mxu1 %v6832_v61  ;;  %v6842_v47 = vld [vmem:[#allocation49_spill] sm:$0xff]  ;;  %v6843_v61 = vld [vmem:[#allocation50_spill] sm:$0xff] }
 0x3b5   :  { %3963 = vmatpush1.bf16.msra.mxu0 %v6833_v0  ;;  %4027 = vmatpush1.bf16.msra.mxu1 %v6834_v19  ;;  %v6844_v0 = vld [vmem:[#allocation51_spill] sm:$0xff]  ;;  %v6845_v19 = vld [vmem:[#allocation52_spill] sm:$0xff] }
 0x3b6   :  { %3965 = vmatprep.subr.bf16.mxu0 %v6835_v9  ;;  %4029 = vmatprep.subr.bf16.mxu1 %v6836_v13  ;;  %v6846_v9 = vld [vmem:[#allocation53_spill] sm:$0xff]  ;;  %v6847_v13 = vld [vmem:[#allocation54_spill] sm:$0xff] }
 0x3b9   :  { %3967 = vmatpush1.bf16.msra.mxu0 %v6837_v6  ;;  %4031 = vmatpush1.bf16.msra.mxu1 %v6838_v51  ;;  %v6848_v6 = vld [vmem:[#allocation55_spill] sm:$0xff]  ;;  %v6849_v51 = vld [vmem:[#allocation56_spill] sm:$0xff] }
 0x3ba   :  { %3969 = vmatprep.subr.bf16.mxu0 %v6839_v11  ;;  %4033 = vmatprep.subr.bf16.mxu1 %v6840_v36  ;;  %v6850_v11 = vld [vmem:[#allocation57_spill] sm:$0xff]  ;;  %v6851_v36 = vld [vmem:[#allocation58_spill] sm:$0xff] }
 0x3bd   :  { %3971 = vmatpush1.bf16.msra.mxu0 %v6841_v48  ;;  %4035 = vmatpush1.bf16.msra.mxu1 %v6842_v47  ;;  %v6852_v48 = vld [vmem:[#allocation59_spill] sm:$0xff]  ;;  %v6853_v47 = vld [vmem:[#allocation60_spill] sm:$0xff] }
 0x3be   :  { %3973 = vmatprep.subr.bf16.mxu0 %v6843_v61  ;;  %4037 = vmatprep.subr.bf16.mxu1 %v6844_v0  ;;  %v6854_v61 = vld [vmem:[#allocation61_spill] sm:$0xff]  ;;  %v6855_v0 = vld [vmem:[#allocation62_spill] sm:$0xff] }
 0x3c1   :  { %3975 = vmatpush1.bf16.msra.mxu0 %v6845_v19  ;;  %4039 = vmatpush1.bf16.msra.mxu1 %v6846_v9  ;;  %v6856_v19 = vld [vmem:[#allocation63_spill] sm:$0xff]  ;;  %v6857_v9 = vld [vmem:[#allocation64_spill] sm:$0xff] }
 0x3c2   :  { %3977 = vmatprep.subr.bf16.mxu0 %v6847_v13  ;;  %4041 = vmatprep.subr.bf16.mxu1 %v6848_v6  ;;  %v6858_v13 = vld [vmem:[#allocation65_spill] sm:$0xff]  ;;  %v6859_v6 = vld [vmem:[#allocation8_spill] sm:$0xff] }
 0x3c5   :  { %3979 = vmatpush1.bf16.msra.mxu0 %v6849_v51  ;;  %4043 = vmatpush1.bf16.msra.mxu1 %v6850_v11  ;;  %v6860_v51 = vld [vmem:[#allocation9_spill] sm:$0xff] }
 0x3c6   :  { %3981 = vmatprep.subr.bf16.mxu0 %v6851_v36  ;;  %4045 = vmatprep.subr.bf16.mxu1 %v6852_v48 }
 0x3c9   :  { %3983 = vmatpush1.bf16.msra.mxu0 %v6853_v47  ;;  %4047 = vmatpush1.bf16.msra.mxu1 %v6854_v61 }
 0x3ca   :  { %3985 = vmatprep.subr.bf16.mxu0 %v6855_v0  ;;  %4049 = vmatprep.subr.bf16.mxu1 %v6856_v19 }
 0x3cd   :  { %3987 = vmatpush1.bf16.msra.mxu0 %v6857_v9  ;;  %4051 = vmatpush1.bf16.msra.mxu1 %v6858_v13  ;;  %v6862_v9 = vld [vmem:[#allocation72_spill] sm:$0xff] }
 0x3ce   :  { %4053 = vmatprep.subr.bf16.mxu0 %v6859_v6  ;;  %4085 = vmatprep.subr.bf16.mxu1 %v6860_v51 }
 0x443   :  { %v1430_v11 = vpop.f32.mrb[20].mxu0  ;;  %v1501_v36 = vpop.f32.mrb[20].mxu1 }
 0x444   :  { %v1431_v48 = vadd.f32 %v1430_v11, %v6861_v63  ;;  %v1432_v62 = vpop.f32.mrb[21].mxu0  ;;  %v1503_v47 = vpop.f32.mrb[21].mxu1  ;;  %v1502_v0 = vadd.f32 %v1501_v36, %v6799_v12 }
 0x445   :  { %v1433_v61 = vadd.f32 %v1432_v62, %v6798_v52  ;;  %v1504_v19 = vadd.f32 %v1503_v47, %v6862_v9  ;;  %v6863_v47 = vld [vmem:[#allocation67_spill] sm:$0xff] }
 0x446   :  { %4967 = vtanh.f32 %v1431_v48 }
 0x447   :  { %4969 = vtanh.f32 %v1433_v61 }
 0x448   :  { %4971 = vtanh.f32 %v1502_v0 }
 0x449   :  { %4973 = vtanh.f32 %v1504_v19 }
 0x450   :  { %v4968_v13 = vpop.eup %4967 }
 0x451   :  { %v1510_v56 = vmul.f32 0.5, %v4968_v13  ;;  %v4970_v6 = vpop.eup %4969 }
 0x452   :  { %v1511_v51 = vmul.f32 0.5, %v4970_v6  ;;  %v4972_v18 = vpop.eup %4971 }
 0x453   :  { %v1513_v35 = vadd.f32 0.5, %v1510_v56  ;;  %v4974_v62 = vpop.eup %4973 }
 0x454   :  { %v1514_v31 = vadd.f32 0.5, %v1511_v51  ;;  %v1512_v61 = vmul.f32 0.5, %v4974_v62 }
 0x455   :  { %v1517_v11 = vmul.f32 %v4972_v18, %v1513_v35 }
 0x456   :  { %v1516_v63 = vmul.f32 %v1514_v31, %v5830_v55  ;;  %v1515_v48 = vadd.f32 0.5, %v1512_v61 }
 0x458   :  { %v5944_v42 = vadd.f32 %v1517_v11, %v1516_v63 }
 0x45a   :  { %4975 = vtanh.f32 %v5944_v42 }
 0x463   :  { %v1587_v0 = vpop.f32.mrb[6].mxu0  ;;  %v1658_v36 = vpop.f32.mrb[6].mxu1 }
 0x464   :  { %v4850_v13 = vadd.f32 %v1587_v0, %v6863_v47  ;;  %v1589_v9 = vpop.f32.mrb[7].mxu0  ;;  %v1660_v56 = vpop.f32.mrb[7].mxu1  ;;  %v4866_v18 = vadd.f32 %v1658_v36, %v6741_v10 }
 0x465   :  { %v4976_v6 = vpop.eup %4975  ;;  %v4851_v19 = vadd.f32 %v1589_v9, %v6740_v5  ;;  %v4867_v31 = vadd.f32 %v1660_v56, %v5589_v22 }
 0x466   :  { %4977 = vtanh.f32 %v4850_v13  ;;  %v1520_v55 = vmul.f32 %v4976_v6, %v1515_v48 }
 0x467   :  { %4979 = vtanh.f32 %v4851_v19 }
 0x468   :  { %1746 = vmatprep.mubr.f32.mxu0 %v1520_v55  ;;  %1817 = vmatprep.mubr.f32.mxu1 %v1520_v55  ;;  %4981 = vtanh.f32 %v4866_v18  ;;  %v6866_v18 = vld [vmem:[#allocation12_spill] sm:$0xff]  ;;  %v6867_v55 = vld [vmem:[#allocation13_spill] sm:$0xff] }
 0x469   :  { %4983 = vtanh.f32 %v4867_v31  ;;  %v6868_v31 = vld [vmem:[#allocation14_spill] sm:$0xff] }
 0x470   :  { %v4978_v35 = vpop.eup %4977 }
 0x471   :  { %v1671_v63 = vmul.f32 0.5, %v4978_v35  ;;  %v4980_v51 = vpop.eup %4979  ;;  %v6869_v35 = vld [vmem:[#allocation15_spill] sm:$0xff] }
 0x472   :  { %v1672_v62 = vmul.f32 0.5, %v4980_v51  ;;  %v4982_v61 = vpop.eup %4981  ;;  %v6871_v51 = vld [vmem:[#allocation17_spill] sm:$0xff] }
 0x473   :  { %v1674_v11 = vadd.f32 0.5, %v1671_v63  ;;  %v4984_v36 = vpop.eup %4983  ;;  %v6870_v63 = vld [vmem:[#allocation16_spill] sm:$0xff] }
 0x474   :  { %v1675_v0 = vadd.f32 0.5, %v1672_v62  ;;  %v1673_v48 = vmul.f32 0.5, %v4984_v36  ;;  %v6873_v62 = vld [vmem:[#allocation19_spill] sm:$0xff] }
 0x475   :  { %v1678_v47 = vmul.f32 %v4982_v61, %v1674_v11  ;;  %v6872_v11 = vld [vmem:[#allocation18_spill] sm:$0xff]  ;;  %v6874_v61 = vld [vmem:[#allocation20_spill] sm:$0xff]  ;;  %v6877_v36 = vld [vmem:[#allocation23_spill] sm:$0xff] }
 0x476   :  { %v1677_v9 = vmul.f32 %v1675_v0, %v5838_v39  ;;  %v1676_v6 = vadd.f32 0.5, %v1673_v48  ;;  %v6864_v39 = vld [vmem:[#allocation10_spill] sm:$0xff]  ;;  %v6875_v0 = vld [vmem:[#allocation21_spill] sm:$0xff]  ;;  %v6878_v48 = vld [vmem:[#allocation24_spill] sm:$0xff] }
 0x478   :  { %v5952_v13 = vadd.f32 %v1678_v47, %v1677_v9  ;;  %v6865_v47 = vld [vmem:[#allocation11_spill] sm:$0xff]  ;;  %v6876_v9 = vld [vmem:[#allocation22_spill] sm:$0xff] }
 0x47a   :  { %4985 = vtanh.f32 %v5952_v13 }
 0x484   :  { %v4986_v19 = vpop.eup %4985 }
 0x485   :  { %v1681_v56 = vmul.f32 %v4986_v19, %v1676_v6  ;;  %v6879_v6 = vld [vmem:[#allocation25_spill] sm:$0xff]  ;;  %v6880_v19 = vld [vmem:[#allocation26_spill] sm:$0xff] }
 0x487   :  { %1747 = vmatmul.mubr.f32.vlgmr.msra.gmra.mrb[22].mxu0 %v1681_v56  ;;  %1818 = vmatmul.mubr.f32.vlgmr.msra.gmra.mrb[22].mxu1 %v1681_v56 }
 0x488   :  { %4055 = vmatpush1.bf16.msra.mxu0 %v5218_v14  ;;  %4087 = vmatpush1.bf16.msra.mxu1 %v5222_v17 }
 0x489   :  { %4057 = vmatprep.subr.bf16.mxu0 %v5231_v25  ;;  %4089 = vmatprep.subr.bf16.mxu1 %v5233_v26 }
 0x48a   :  { %1903 = vmatprep.mubr.f32.mxu0 %v6678_v32  ;;  %1974 = vmatprep.mubr.f32.mxu1 %v6678_v32 }
 0x48c   :  { %4059 = vmatpush1.bf16.msra.mxu0 %v5237_v29  ;;  %4091 = vmatpush1.bf16.msra.mxu1 %v5239_v30 }
 0x48d   :  { %4061 = vmatprep.subr.bf16.mxu0 %v5250_v40  ;;  %4093 = vmatprep.subr.bf16.mxu1 %v5252_v41 }
 0x490   :  { %4063 = vmatpush1.bf16.msra.mxu0 %v5256_v44  ;;  %4095 = vmatpush1.bf16.msra.mxu1 %v5258_v45 }
 0x491   :  { %4065 = vmatprep.subr.bf16.mxu0 %v5269_v53  ;;  %4097 = vmatprep.subr.bf16.mxu1 %v5271_v54 }
 0x494   :  { %4067 = vmatpush1.bf16.msra.mxu0 %v5275_v57  ;;  %4099 = vmatpush1.bf16.msra.mxu1 %v5277_v58 }
 0x495   :  { %4069 = vmatprep.subr.bf16.mxu0 %v5288_v3  ;;  %4101 = vmatprep.subr.bf16.mxu1 %v5290_v4 }
 0x498   :  { %4071 = vmatpush1.bf16.msra.mxu0 %v5294_v7  ;;  %4103 = vmatpush1.bf16.msra.mxu1 %v5296_v8 }
 0x499   :  { %4073 = vmatprep.subr.bf16.mxu0 %v5307_v20  ;;  %4105 = vmatprep.subr.bf16.mxu1 %v5309_v21 }
 0x49c   :  { %4075 = vmatpush1.bf16.msra.mxu0 %v5313_v24  ;;  %4107 = vmatpush1.bf16.msra.mxu1 %v5315_v27 }
 0x49d   :  { %4077 = vmatprep.subr.bf16.mxu0 %v5326_v37  ;;  %4109 = vmatprep.subr.bf16.mxu1 %v5328_v38 }
 0x4a0   :  { %4079 = vmatpush1.bf16.msra.mxu0 %v5332_v43  ;;  %4111 = vmatpush1.bf16.msra.mxu1 %v5334_v46 }
 0x4a1   :  { %4081 = vmatprep.subr.bf16.mxu0 %v5345_v59  ;;  %4113 = vmatprep.subr.bf16.mxu1 %v5347_v60 }
 0x4a4   :  { %4083 = vmatpush1.bf16.msra.mxu0 %v5351_v1  ;;  %4115 = vmatpush1.bf16.msra.mxu1 %v5353_v2 }
 0x4a5   :  { %4117 = vmatprep.subr.bf16.mxu0 %v5359_v15  ;;  %4181 = vmatprep.subr.bf16.mxu1 %v5361_v16 }
 0x4a7   :  { %1904 = vmatmul.mubr.f32.vlgmr.msra.gmra.mrb[8].mxu0 %v1681_v56  ;;  %1975 = vmatmul.mubr.f32.vlgmr.msra.gmra.mrb[8].mxu1 %v1681_v56  ;;  %v6881_v56 = vld [vmem:[#allocation27_spill] sm:$0xff] }
 0x4a8   :  { %4119 = vmatpush1.bf16.msra.mxu0 %v5367_v23  ;;  %4183 = vmatpush1.bf16.msra.mxu1 %v5369_v28 }
 0x4a9   :  { %4121 = vmatprep.subr.bf16.mxu0 %v5373_v33  ;;  %4185 = vmatprep.subr.bf16.mxu1 %v5375_v34 }
 0x4ac   :  { %4123 = vmatpush1.bf16.msra.mxu0 %v5383_v49  ;;  %4187 = vmatpush1.bf16.msra.mxu1 %v5385_v50 }
 0x4ad   :  { %4125 = vmatprep.subr.bf16.mxu0 %v6864_v39  ;;  %4189 = vmatprep.subr.bf16.mxu1 %v6865_v47 }
 0x4b0   :  { %4127 = vmatpush1.bf16.msra.mxu0 %v6866_v18  ;;  %4191 = vmatpush1.bf16.msra.mxu1 %v6867_v55 }
 0x4b1   :  { %4129 = vmatprep.subr.bf16.mxu0 %v6868_v31  ;;  %4193 = vmatprep.subr.bf16.mxu1 %v6869_v35 }
 0x4b4   :  { %4131 = vmatpush1.bf16.msra.mxu0 %v6870_v63  ;;  %4195 = vmatpush1.bf16.msra.mxu1 %v6871_v51  ;;  %v6882_v51 = vld [vmem:[#allocation28_spill] sm:$0xff]  ;;  %v6922_v63 = vld [vmem:[#allocation66_spill] sm:$0xff] }
 0x4b5   :  { %4133 = vmatprep.subr.bf16.mxu0 %v6872_v11  ;;  %4197 = vmatprep.subr.bf16.mxu1 %v6873_v62  ;;  %v6883_v11 = vld [vmem:[#allocation29_spill] sm:$0xff]  ;;  %v6884_v62 = vld [vmem:[#allocation30_spill] sm:$0xff] }
 0x4b8   :  { %4135 = vmatpush1.bf16.msra.mxu0 %v6874_v61  ;;  %4199 = vmatpush1.bf16.msra.mxu1 %v6875_v0  ;;  %v6885_v61 = vld [vmem:[#allocation31_spill] sm:$0xff]  ;;  %v6886_v0 = vld [vmem:[#allocation32_spill] sm:$0xff] }
 0x4b9   :  { %4137 = vmatprep.subr.bf16.mxu0 %v6876_v9  ;;  %4201 = vmatprep.subr.bf16.mxu1 %v6877_v36  ;;  %v6887_v9 = vld [vmem:[#allocation33_spill] sm:$0xff]  ;;  %v6888_v36 = vld [vmem:[#allocation34_spill] sm:$0xff] }
 0x4bc   :  { %4139 = vmatpush1.bf16.msra.mxu0 %v6878_v48  ;;  %4203 = vmatpush1.bf16.msra.mxu1 %v6879_v6  ;;  %v6889_v48 = vld [vmem:[#allocation35_spill] sm:$0xff]  ;;  %v6890_v6 = vld [vmem:[#allocation36_spill] sm:$0xff] }
 0x4bd   :  { %4141 = vmatprep.subr.bf16.mxu0 %v6880_v19  ;;  %4205 = vmatprep.subr.bf16.mxu1 %v6881_v56  ;;  %v6891_v19 = vld [vmem:[#allocation37_spill] sm:$0xff]  ;;  %v6892_v56 = vld [vmem:[#allocation38_spill] sm:$0xff] }
 0x4c0   :  { %4143 = vmatpush1.bf16.msra.mxu0 %v6882_v51  ;;  %4207 = vmatpush1.bf16.msra.mxu1 %v6883_v11  ;;  %v6893_v51 = vld [vmem:[#allocation39_spill] sm:$0xff]  ;;  %v6894_v11 = vld [vmem:[#allocation40_spill] sm:$0xff] }
 0x4c1   :  { %4145 = vmatprep.subr.bf16.mxu0 %v6884_v62  ;;  %4209 = vmatprep.subr.bf16.mxu1 %v6885_v61  ;;  %v6895_v62 = vld [vmem:[#allocation41_spill] sm:$0xff]  ;;  %v6896_v61 = vld [vmem:[#allocation42_spill] sm:$0xff] }
 0x4c4   :  { %4147 = vmatpush1.bf16.msra.mxu0 %v6886_v0  ;;  %4211 = vmatpush1.bf16.msra.mxu1 %v6887_v9  ;;  %v6897_v0 = vld [vmem:[#allocation43_spill] sm:$0xff]  ;;  %v6898_v9 = vld [vmem:[#allocation44_spill] sm:$0xff] }
 0x4c5   :  { %4149 = vmatprep.subr.bf16.mxu0 %v6888_v36  ;;  %4213 = vmatprep.subr.bf16.mxu1 %v6889_v48  ;;  %v6899_v36 = vld [vmem:[#allocation45_spill] sm:$0xff]  ;;  %v6900_v48 = vld [vmem:[#allocation46_spill] sm:$0xff] }
 0x4c8   :  { %4151 = vmatpush1.bf16.msra.mxu0 %v6890_v6  ;;  %4215 = vmatpush1.bf16.msra.mxu1 %v6891_v19  ;;  %v6901_v6 = vld [vmem:[#allocation47_spill] sm:$0xff]  ;;  %v6902_v19 = vld [vmem:[#allocation48_spill] sm:$0xff] }
 0x4c9   :  { %4153 = vmatprep.subr.bf16.mxu0 %v6892_v56  ;;  %4217 = vmatprep.subr.bf16.mxu1 %v6893_v51  ;;  %v6903_v56 = vld [vmem:[#allocation49_spill] sm:$0xff]  ;;  %v6904_v51 = vld [vmem:[#allocation50_spill] sm:$0xff] }
 0x4cc   :  { %4155 = vmatpush1.bf16.msra.mxu0 %v6894_v11  ;;  %4219 = vmatpush1.bf16.msra.mxu1 %v6895_v62  ;;  %v6905_v11 = vld [vmem:[#allocation51_spill] sm:$0xff]  ;;  %v6906_v62 = vld [vmem:[#allocation52_spill] sm:$0xff] }
 0x4cd   :  { %4157 = vmatprep.subr.bf16.mxu0 %v6896_v61  ;;  %4221 = vmatprep.subr.bf16.mxu1 %v6897_v0  ;;  %v6907_v61 = vld [vmem:[#allocation53_spill] sm:$0xff]  ;;  %v6908_v0 = vld [vmem:[#allocation54_spill] sm:$0xff] }
 0x4d0   :  { %4159 = vmatpush1.bf16.msra.mxu0 %v6898_v9  ;;  %4223 = vmatpush1.bf16.msra.mxu1 %v6899_v36  ;;  %v6909_v9 = vld [vmem:[#allocation55_spill] sm:$0xff]  ;;  %v6910_v36 = vld [vmem:[#allocation56_spill] sm:$0xff] }
 0x4d1   :  { %4161 = vmatprep.subr.bf16.mxu0 %v6900_v48  ;;  %4225 = vmatprep.subr.bf16.mxu1 %v6901_v6  ;;  %v6911_v48 = vld [vmem:[#allocation57_spill] sm:$0xff]  ;;  %v6912_v6 = vld [vmem:[#allocation58_spill] sm:$0xff] }
 0x4d4   :  { %4163 = vmatpush1.bf16.msra.mxu0 %v6902_v19  ;;  %4227 = vmatpush1.bf16.msra.mxu1 %v6903_v56  ;;  %v6913_v19 = vld [vmem:[#allocation59_spill] sm:$0xff]  ;;  %v6914_v56 = vld [vmem:[#allocation60_spill] sm:$0xff] }
 0x4d5   :  { %4165 = vmatprep.subr.bf16.mxu0 %v6904_v51  ;;  %4229 = vmatprep.subr.bf16.mxu1 %v6905_v11  ;;  %v6915_v51 = vld [vmem:[#allocation61_spill] sm:$0xff]  ;;  %v6916_v11 = vld [vmem:[#allocation62_spill] sm:$0xff] }
 0x4d8   :  { %4167 = vmatpush1.bf16.msra.mxu0 %v6906_v62  ;;  %4231 = vmatpush1.bf16.msra.mxu1 %v6907_v61  ;;  %v6917_v62 = vld [vmem:[#allocation63_spill] sm:$0xff]  ;;  %v6918_v61 = vld [vmem:[#allocation64_spill] sm:$0xff] }
 0x4d9   :  { %4169 = vmatprep.subr.bf16.mxu0 %v6908_v0  ;;  %4233 = vmatprep.subr.bf16.mxu1 %v6909_v9  ;;  %v6919_v0 = vld [vmem:[#allocation65_spill] sm:$0xff]  ;;  %v6920_v9 = vld [vmem:[#allocation8_spill] sm:$0xff] }
 0x4dc   :  { %4171 = vmatpush1.bf16.msra.mxu0 %v6910_v36  ;;  %4235 = vmatpush1.bf16.msra.mxu1 %v6911_v48  ;;  %v6921_v36 = vld [vmem:[#allocation9_spill] sm:$0xff] }
 0x4dd   :  { %4173 = vmatprep.subr.bf16.mxu0 %v6912_v6  ;;  %4237 = vmatprep.subr.bf16.mxu1 %v6913_v19 }
 0x4e0   :  { %4175 = vmatpush1.bf16.msra.mxu0 %v6914_v56  ;;  %4239 = vmatpush1.bf16.msra.mxu1 %v6915_v51 }
 0x4e1   :  { %4177 = vmatprep.subr.bf16.mxu0 %v6916_v11  ;;  %4241 = vmatprep.subr.bf16.mxu1 %v6917_v62 }
 0x4e4   :  { %4179 = vmatpush1.bf16.msra.mxu0 %v6918_v61  ;;  %4243 = vmatpush1.bf16.msra.mxu1 %v6919_v0  ;;  %v6923_v61 = vld [vmem:[#allocation72_spill] sm:$0xff] }
 0x4e5   :  { %4245 = vmatprep.subr.bf16.mxu0 %v6920_v9  ;;  %4277 = vmatprep.subr.bf16.mxu1 %v6921_v36 }
 0x55a   :  { %v1748_v48 = vpop.f32.mrb[22].mxu0  ;;  %v1819_v6 = vpop.f32.mrb[22].mxu1 }
 0x55b   :  { %v1749_v19 = vadd.f32 %v1748_v48, %v6922_v63  ;;  %v1750_v35 = vpop.f32.mrb[23].mxu0  ;;  %v1821_v56 = vpop.f32.mrb[23].mxu1  ;;  %v1820_v11 = vadd.f32 %v1819_v6, %v6799_v12 }
 0x55c   :  { %v1751_v51 = vadd.f32 %v1750_v35, %v6798_v52  ;;  %v1822_v62 = vadd.f32 %v1821_v56, %v6923_v61  ;;  %v6924_v56 = vld [vmem:[#allocation67_spill] sm:$0xff] }
 0x55d   :  { %4987 = vtanh.f32 %v1749_v19 }
 0x55e   :  { %4989 = vtanh.f32 %v1751_v51 }
 0x55f   :  { %4991 = vtanh.f32 %v1820_v11 }
 0x560   :  { %4993 = vtanh.f32 %v1822_v62 }
 0x567   :  { %v4988_v0 = vpop.eup %4987 }
 0x568   :  { %v1828_v31 = vmul.f32 0.5, %v4988_v0  ;;  %v4990_v9 = vpop.eup %4989 }
 0x569   :  { %v1829_v36 = vmul.f32 0.5, %v4990_v9  ;;  %v4992_v18 = vpop.eup %4991 }
 0x56a   :  { %v1831_v55 = vadd.f32 0.5, %v1828_v31  ;;  %v4994_v35 = vpop.eup %4993 }
 0x56b   :  { %v1832_v47 = vadd.f32 0.5, %v1829_v36  ;;  %v1830_v51 = vmul.f32 0.5, %v4994_v35 }
 0x56c   :  { %v1835_v48 = vmul.f32 %v4992_v18, %v1831_v55 }
 0x56d   :  { %v1834_v63 = vmul.f32 %v1832_v47, %v5944_v42  ;;  %v1833_v19 = vadd.f32 0.5, %v1830_v51 }
 0x56f   :  { %v6058_v39 = vadd.f32 %v1835_v48, %v1834_v63 }
 0x571   :  { %4995 = vtanh.f32 %v6058_v39 }
 0x57a   :  { %v1905_v11 = vpop.f32.mrb[8].mxu0  ;;  %v1976_v6 = vpop.f32.mrb[8].mxu1 }
 0x57b   :  { %v4852_v0 = vadd.f32 %v1905_v11, %v6924_v56  ;;  %v1907_v61 = vpop.f32.mrb[9].mxu0  ;;  %v1978_v31 = vpop.f32.mrb[9].mxu1  ;;  %v4868_v18 = vadd.f32 %v1976_v6, %v6741_v10 }
 0x57c   :  { %v4996_v9 = vpop.eup %4995  ;;  %v4853_v62 = vadd.f32 %v1907_v61, %v6740_v5  ;;  %v4869_v47 = vadd.f32 %v1978_v31, %v5589_v22 }
 0x57d   :  { %4997 = vtanh.f32 %v4852_v0  ;;  %v1838_v42 = vmul.f32 %v4996_v9, %v1833_v19 }
 0x57e   :  { %4999 = vtanh.f32 %v4853_v62 }
 0x57f   :  { %2064 = vmatprep.mubr.f32.mxu0 %v1838_v42  ;;  %2135 = vmatprep.mubr.f32.mxu1 %v1838_v42  ;;  %5001 = vtanh.f32 %v4868_v18  ;;  %v6927_v18 = vld [vmem:[#allocation12_spill] sm:$0xff]  ;;  %v6928_v42 = vld [vmem:[#allocation13_spill] sm:$0xff] }
 0x580   :  { %5003 = vtanh.f32 %v4869_v47  ;;  %v6929_v47 = vld [vmem:[#allocation14_spill] sm:$0xff] }
 0x587   :  { %v4998_v55 = vpop.eup %4997 }
 0x588   :  { %v1989_v63 = vmul.f32 0.5, %v4998_v55  ;;  %v5000_v36 = vpop.eup %4999  ;;  %v6930_v55 = vld [vmem:[#allocation15_spill] sm:$0xff] }
 0x589   :  { %v1990_v35 = vmul.f32 0.5, %v5000_v36  ;;  %v5002_v51 = vpop.eup %5001  ;;  %v6932_v36 = vld [vmem:[#allocation17_spill] sm:$0xff] }
 0x58a   :  { %v1992_v48 = vadd.f32 0.5, %v1989_v63  ;;  %v5004_v6 = vpop.eup %5003  ;;  %v6931_v63 = vld [vmem:[#allocation16_spill] sm:$0xff] }
 0x58b   :  { %v1993_v11 = vadd.f32 0.5, %v1990_v35  ;;  %v1991_v19 = vmul.f32 0.5, %v5004_v6  ;;  %v6934_v35 = vld [vmem:[#allocation19_spill] sm:$0xff] }
 0x58c   :  { %v1996_v56 = vmul.f32 %v5002_v51, %v1992_v48  ;;  %v6933_v48 = vld [vmem:[#allocation18_spill] sm:$0xff]  ;;  %v6935_v51 = vld [vmem:[#allocation20_spill] sm:$0xff]  ;;  %v6938_v6 = vld [vmem:[#allocation23_spill] sm:$0xff] }
 0x58d   :  { %v1995_v61 = vmul.f32 %v1993_v11, %v5952_v13  ;;  %v1994_v9 = vadd.f32 0.5, %v1991_v19  ;;  %v6925_v13 = vld [vmem:[#allocation10_spill] sm:$0xff]  ;;  %v6936_v11 = vld [vmem:[#allocation21_spill] sm:$0xff]  ;;  %v6939_v19 = vld [vmem:[#allocation24_spill] sm:$0xff] }
 0x58f   :  { %v6066_v0 = vadd.f32 %v1996_v56, %v1995_v61  ;;  %v6926_v56 = vld [vmem:[#allocation11_spill] sm:$0xff]  ;;  %v6937_v61 = vld [vmem:[#allocation22_spill] sm:$0xff] }
 0x591   :  { %5005 = vtanh.f32 %v6066_v0 }
 0x59b   :  { %v5006_v62 = vpop.eup %5005 }
 0x59c   :  { %v1999_v31 = vmul.f32 %v5006_v62, %v1994_v9  ;;  %v6940_v9 = vld [vmem:[#allocation25_spill] sm:$0xff]  ;;  %v6941_v62 = vld [vmem:[#allocation26_spill] sm:$0xff] }
 0x59e   :  { %2065 = vmatmul.mubr.f32.vlgmr.msra.gmra.mrb[24].mxu0 %v1999_v31  ;;  %2136 = vmatmul.mubr.f32.vlgmr.msra.gmra.mrb[24].mxu1 %v1999_v31 }
 0x59f   :  { %4247 = vmatpush1.bf16.msra.mxu0 %v5218_v14  ;;  %4279 = vmatpush1.bf16.msra.mxu1 %v5222_v17 }
 0x5a0   :  { %4249 = vmatprep.subr.bf16.mxu0 %v5231_v25  ;;  %4281 = vmatprep.subr.bf16.mxu1 %v5233_v26 }
 0x5a1   :  { %2221 = vmatprep.mubr.f32.mxu0 %v6678_v32  ;;  %2292 = vmatprep.mubr.f32.mxu1 %v6678_v32 }
 0x5a3   :  { %4251 = vmatpush1.bf16.msra.mxu0 %v5237_v29  ;;  %4283 = vmatpush1.bf16.msra.mxu1 %v5239_v30 }
 0x5a4   :  { %4253 = vmatprep.subr.bf16.mxu0 %v5250_v40  ;;  %4285 = vmatprep.subr.bf16.mxu1 %v5252_v41 }
 0x5a7   :  { %4255 = vmatpush1.bf16.msra.mxu0 %v5256_v44  ;;  %4287 = vmatpush1.bf16.msra.mxu1 %v5258_v45 }
 0x5a8   :  { %4257 = vmatprep.subr.bf16.mxu0 %v5269_v53  ;;  %4289 = vmatprep.subr.bf16.mxu1 %v5271_v54 }
 0x5ab   :  { %4259 = vmatpush1.bf16.msra.mxu0 %v5275_v57  ;;  %4291 = vmatpush1.bf16.msra.mxu1 %v5277_v58 }
 0x5ac   :  { %4261 = vmatprep.subr.bf16.mxu0 %v5288_v3  ;;  %4293 = vmatprep.subr.bf16.mxu1 %v5290_v4 }
 0x5af   :  { %4263 = vmatpush1.bf16.msra.mxu0 %v5294_v7  ;;  %4295 = vmatpush1.bf16.msra.mxu1 %v5296_v8 }
 0x5b0   :  { %4265 = vmatprep.subr.bf16.mxu0 %v5307_v20  ;;  %4297 = vmatprep.subr.bf16.mxu1 %v5309_v21 }
 0x5b3   :  { %4267 = vmatpush1.bf16.msra.mxu0 %v5313_v24  ;;  %4299 = vmatpush1.bf16.msra.mxu1 %v5315_v27 }
 0x5b4   :  { %4269 = vmatprep.subr.bf16.mxu0 %v5326_v37  ;;  %4301 = vmatprep.subr.bf16.mxu1 %v5328_v38 }
 0x5b7   :  { %4271 = vmatpush1.bf16.msra.mxu0 %v5332_v43  ;;  %4303 = vmatpush1.bf16.msra.mxu1 %v5334_v46 }
 0x5b8   :  { %4273 = vmatprep.subr.bf16.mxu0 %v5345_v59  ;;  %4305 = vmatprep.subr.bf16.mxu1 %v5347_v60 }
 0x5bb   :  { %4275 = vmatpush1.bf16.msra.mxu0 %v5351_v1  ;;  %4307 = vmatpush1.bf16.msra.mxu1 %v5353_v2 }
 0x5bc   :  { %4309 = vmatprep.subr.bf16.mxu0 %v5359_v15  ;;  %4373 = vmatprep.subr.bf16.mxu1 %v5361_v16 }
 0x5be   :  { %2222 = vmatmul.mubr.f32.vlgmr.msra.gmra.mrb[10].mxu0 %v1999_v31  ;;  %2293 = vmatmul.mubr.f32.vlgmr.msra.gmra.mrb[10].mxu1 %v1999_v31  ;;  %v6942_v31 = vld [vmem:[#allocation27_spill] sm:$0xff] }
 0x5bf   :  { %4311 = vmatpush1.bf16.msra.mxu0 %v5367_v23  ;;  %4375 = vmatpush1.bf16.msra.mxu1 %v5369_v28 }
 0x5c0   :  { %4313 = vmatprep.subr.bf16.mxu0 %v5373_v33  ;;  %4377 = vmatprep.subr.bf16.mxu1 %v5375_v34 }
 0x5c3   :  { %4315 = vmatpush1.bf16.msra.mxu0 %v5383_v49  ;;  %4379 = vmatpush1.bf16.msra.mxu1 %v5385_v50 }
 0x5c4   :  { %4317 = vmatprep.subr.bf16.mxu0 %v6925_v13  ;;  %4381 = vmatprep.subr.bf16.mxu1 %v6926_v56 }
 0x5c7   :  { %4319 = vmatpush1.bf16.msra.mxu0 %v6927_v18  ;;  %4383 = vmatpush1.bf16.msra.mxu1 %v6928_v42 }
 0x5c8   :  { %4321 = vmatprep.subr.bf16.mxu0 %v6929_v47  ;;  %4385 = vmatprep.subr.bf16.mxu1 %v6930_v55 }
 0x5cb   :  { %4323 = vmatpush1.bf16.msra.mxu0 %v6931_v63  ;;  %4387 = vmatpush1.bf16.msra.mxu1 %v6932_v36  ;;  %v6943_v36 = vld [vmem:[#allocation28_spill] sm:$0xff]  ;;  %v6983_v63 = vld [vmem:[#allocation66_spill] sm:$0xff] }
 0x5cc   :  { %4325 = vmatprep.subr.bf16.mxu0 %v6933_v48  ;;  %4389 = vmatprep.subr.bf16.mxu1 %v6934_v35  ;;  %v6944_v48 = vld [vmem:[#allocation29_spill] sm:$0xff]  ;;  %v6945_v35 = vld [vmem:[#allocation30_spill] sm:$0xff] }
 0x5cf   :  { %4327 = vmatpush1.bf16.msra.mxu0 %v6935_v51  ;;  %4391 = vmatpush1.bf16.msra.mxu1 %v6936_v11  ;;  %v6946_v51 = vld [vmem:[#allocation31_spill] sm:$0xff]  ;;  %v6947_v11 = vld [vmem:[#allocation32_spill] sm:$0xff] }
 0x5d0   :  { %4329 = vmatprep.subr.bf16.mxu0 %v6937_v61  ;;  %4393 = vmatprep.subr.bf16.mxu1 %v6938_v6  ;;  %v6948_v61 = vld [vmem:[#allocation33_spill] sm:$0xff]  ;;  %v6949_v6 = vld [vmem:[#allocation34_spill] sm:$0xff] }
 0x5d3   :  { %4331 = vmatpush1.bf16.msra.mxu0 %v6939_v19  ;;  %4395 = vmatpush1.bf16.msra.mxu1 %v6940_v9  ;;  %v6950_v19 = vld [vmem:[#allocation35_spill] sm:$0xff]  ;;  %v6951_v9 = vld [vmem:[#allocation36_spill] sm:$0xff] }
 0x5d4   :  { %4333 = vmatprep.subr.bf16.mxu0 %v6941_v62  ;;  %4397 = vmatprep.subr.bf16.mxu1 %v6942_v31  ;;  %v6952_v62 = vld [vmem:[#allocation37_spill] sm:$0xff]  ;;  %v6953_v31 = vld [vmem:[#allocation38_spill] sm:$0xff] }
 0x5d7   :  { %4335 = vmatpush1.bf16.msra.mxu0 %v6943_v36  ;;  %4399 = vmatpush1.bf16.msra.mxu1 %v6944_v48  ;;  %v6954_v36 = vld [vmem:[#allocation39_spill] sm:$0xff]  ;;  %v6955_v48 = vld [vmem:[#allocation40_spill] sm:$0xff] }
 0x5d8   :  { %4337 = vmatprep.subr.bf16.mxu0 %v6945_v35  ;;  %4401 = vmatprep.subr.bf16.mxu1 %v6946_v51  ;;  %v6956_v35 = vld [vmem:[#allocation41_spill] sm:$0xff]  ;;  %v6957_v51 = vld [vmem:[#allocation42_spill] sm:$0xff] }
 0x5db   :  { %4339 = vmatpush1.bf16.msra.mxu0 %v6947_v11  ;;  %4403 = vmatpush1.bf16.msra.mxu1 %v6948_v61  ;;  %v6958_v11 = vld [vmem:[#allocation43_spill] sm:$0xff]  ;;  %v6959_v61 = vld [vmem:[#allocation44_spill] sm:$0xff] }
 0x5dc   :  { %4341 = vmatprep.subr.bf16.mxu0 %v6949_v6  ;;  %4405 = vmatprep.subr.bf16.mxu1 %v6950_v19  ;;  %v6960_v6 = vld [vmem:[#allocation45_spill] sm:$0xff]  ;;  %v6961_v19 = vld [vmem:[#allocation46_spill] sm:$0xff] }
 0x5df   :  { %4343 = vmatpush1.bf16.msra.mxu0 %v6951_v9  ;;  %4407 = vmatpush1.bf16.msra.mxu1 %v6952_v62  ;;  %v6962_v9 = vld [vmem:[#allocation47_spill] sm:$0xff]  ;;  %v6963_v62 = vld [vmem:[#allocation48_spill] sm:$0xff] }
 0x5e0   :  { %4345 = vmatprep.subr.bf16.mxu0 %v6953_v31  ;;  %4409 = vmatprep.subr.bf16.mxu1 %v6954_v36  ;;  %v6964_v31 = vld [vmem:[#allocation49_spill] sm:$0xff]  ;;  %v6965_v36 = vld [vmem:[#allocation50_spill] sm:$0xff] }
 0x5e3   :  { %4347 = vmatpush1.bf16.msra.mxu0 %v6955_v48  ;;  %4411 = vmatpush1.bf16.msra.mxu1 %v6956_v35  ;;  %v6966_v48 = vld [vmem:[#allocation51_spill] sm:$0xff]  ;;  %v6967_v35 = vld [vmem:[#allocation52_spill] sm:$0xff] }
 0x5e4   :  { %4349 = vmatprep.subr.bf16.mxu0 %v6957_v51  ;;  %4413 = vmatprep.subr.bf16.mxu1 %v6958_v11  ;;  %v6968_v51 = vld [vmem:[#allocation53_spill] sm:$0xff]  ;;  %v6969_v11 = vld [vmem:[#allocation54_spill] sm:$0xff] }
 0x5e7   :  { %4351 = vmatpush1.bf16.msra.mxu0 %v6959_v61  ;;  %4415 = vmatpush1.bf16.msra.mxu1 %v6960_v6  ;;  %v6970_v61 = vld [vmem:[#allocation55_spill] sm:$0xff]  ;;  %v6971_v6 = vld [vmem:[#allocation56_spill] sm:$0xff] }
 0x5e8   :  { %4353 = vmatprep.subr.bf16.mxu0 %v6961_v19  ;;  %4417 = vmatprep.subr.bf16.mxu1 %v6962_v9  ;;  %v6972_v19 = vld [vmem:[#allocation57_spill] sm:$0xff]  ;;  %v6973_v9 = vld [vmem:[#allocation58_spill] sm:$0xff] }
 0x5eb   :  { %4355 = vmatpush1.bf16.msra.mxu0 %v6963_v62  ;;  %4419 = vmatpush1.bf16.msra.mxu1 %v6964_v31  ;;  %v6974_v62 = vld [vmem:[#allocation59_spill] sm:$0xff]  ;;  %v6975_v31 = vld [vmem:[#allocation60_spill] sm:$0xff] }
 0x5ec   :  { %4357 = vmatprep.subr.bf16.mxu0 %v6965_v36  ;;  %4421 = vmatprep.subr.bf16.mxu1 %v6966_v48  ;;  %v6976_v36 = vld [vmem:[#allocation61_spill] sm:$0xff]  ;;  %v6977_v48 = vld [vmem:[#allocation62_spill] sm:$0xff] }
 0x5ef   :  { %4359 = vmatpush1.bf16.msra.mxu0 %v6967_v35  ;;  %4423 = vmatpush1.bf16.msra.mxu1 %v6968_v51  ;;  %v6978_v35 = vld [vmem:[#allocation63_spill] sm:$0xff]  ;;  %v6979_v51 = vld [vmem:[#allocation64_spill] sm:$0xff] }
 0x5f0   :  { %4361 = vmatprep.subr.bf16.mxu0 %v6969_v11  ;;  %4425 = vmatprep.subr.bf16.mxu1 %v6970_v61  ;;  %v6980_v11 = vld [vmem:[#allocation65_spill] sm:$0xff]  ;;  %v6981_v61 = vld [vmem:[#allocation8_spill] sm:$0xff] }
 0x5f3   :  { %4363 = vmatpush1.bf16.msra.mxu0 %v6971_v6  ;;  %4427 = vmatpush1.bf16.msra.mxu1 %v6972_v19  ;;  %v6982_v6 = vld [vmem:[#allocation9_spill] sm:$0xff] }
 0x5f4   :  { %4365 = vmatprep.subr.bf16.mxu0 %v6973_v9  ;;  %4429 = vmatprep.subr.bf16.mxu1 %v6974_v62 }
 0x5f7   :  { %4367 = vmatpush1.bf16.msra.mxu0 %v6975_v31  ;;  %4431 = vmatpush1.bf16.msra.mxu1 %v6976_v36 }
 0x5f8   :  { %4369 = vmatprep.subr.bf16.mxu0 %v6977_v48  ;;  %4433 = vmatprep.subr.bf16.mxu1 %v6978_v35 }
 0x5fb   :  { %4371 = vmatpush1.bf16.msra.mxu0 %v6979_v51  ;;  %4435 = vmatpush1.bf16.msra.mxu1 %v6980_v11  ;;  %v6984_v51 = vld [vmem:[#allocation72_spill] sm:$0xff] }
 0x5fc   :  { %4437 = vmatprep.subr.bf16.mxu0 %v6981_v61  ;;  %4469 = vmatprep.subr.bf16.mxu1 %v6982_v6 }
 0x671   :  { %v2066_v19 = vpop.f32.mrb[24].mxu0  ;;  %v2137_v9 = vpop.f32.mrb[24].mxu1 }
 0x672   :  { %v2067_v62 = vadd.f32 %v2066_v19, %v6983_v63  ;;  %v2068_v55 = vpop.f32.mrb[25].mxu0  ;;  %v2139_v31 = vpop.f32.mrb[25].mxu1  ;;  %v2138_v48 = vadd.f32 %v2137_v9, %v6799_v12 }
 0x673   :  { %v2069_v36 = vadd.f32 %v2068_v55, %v6798_v52  ;;  %v2140_v35 = vadd.f32 %v2139_v31, %v6984_v51  ;;  %v6985_v31 = vld [vmem:[#allocation67_spill] sm:$0xff] }
 0x674   :  { %5007 = vtanh.f32 %v2067_v62 }
 0x675   :  { %5009 = vtanh.f32 %v2069_v36 }
 0x676   :  { %5011 = vtanh.f32 %v2138_v48 }
 0x677   :  { %5013 = vtanh.f32 %v2140_v35 }
 0x67e   :  { %v5008_v11 = vpop.eup %5007 }
 0x67f   :  { %v2146_v47 = vmul.f32 0.5, %v5008_v11  ;;  %v5010_v61 = vpop.eup %5009 }
 0x680   :  { %v2147_v6 = vmul.f32 0.5, %v5010_v61  ;;  %v5012_v18 = vpop.eup %5011 }
 0x681   :  { %v2149_v42 = vadd.f32 0.5, %v2146_v47  ;;  %v5014_v55 = vpop.eup %5013 }
 0x682   :  { %v2150_v56 = vadd.f32 0.5, %v2147_v6  ;;  %v2148_v36 = vmul.f32 0.5, %v5014_v55 }
 0x683   :  { %v2153_v19 = vmul.f32 %v5012_v18, %v2149_v42 }
 0x684   :  { %v2152_v63 = vmul.f32 %v2150_v56, %v6058_v39  ;;  %v2151_v62 = vadd.f32 0.5, %v2148_v36 }
 0x686   :  { %v6172_v13 = vadd.f32 %v2153_v19, %v2152_v63 }
 0x688   :  { %5015 = vtanh.f32 %v6172_v13 }
 0x691   :  { %v2223_v48 = vpop.f32.mrb[10].mxu0  ;;  %v2294_v9 = vpop.f32.mrb[10].mxu1 }
 0x692   :  { %v4854_v11 = vadd.f32 %v2223_v48, %v6985_v31  ;;  %v2225_v51 = vpop.f32.mrb[11].mxu0  ;;  %v2296_v47 = vpop.f32.mrb[11].mxu1  ;;  %v4870_v18 = vadd.f32 %v2294_v9, %v6741_v10 }
 0x693   :  { %v5016_v61 = vpop.eup %5015  ;;  %v4855_v35 = vadd.f32 %v2225_v51, %v6740_v5  ;;  %v4871_v56 = vadd.f32 %v2296_v47, %v5589_v22 }
 0x694   :  { %5017 = vtanh.f32 %v4854_v11  ;;  %v2156_v39 = vmul.f32 %v5016_v61, %v2151_v62 }
 0x695   :  { %5019 = vtanh.f32 %v4855_v35 }
 0x696   :  { %2382 = vmatprep.mubr.f32.mxu0 %v2156_v39  ;;  %2453 = vmatprep.mubr.f32.mxu1 %v2156_v39  ;;  %5021 = vtanh.f32 %v4870_v18  ;;  %v6988_v18 = vld [vmem:[#allocation12_spill] sm:$0xff]  ;;  %v6989_v39 = vld [vmem:[#allocation13_spill] sm:$0xff] }
 0x697   :  { %5023 = vtanh.f32 %v4871_v56  ;;  %v6990_v56 = vld [vmem:[#allocation14_spill] sm:$0xff] }
 0x69e   :  { %v5018_v42 = vpop.eup %5017 }
 0x69f   :  { %v2307_v63 = vmul.f32 0.5, %v5018_v42  ;;  %v5020_v6 = vpop.eup %5019  ;;  %v6991_v42 = vld [vmem:[#allocation15_spill] sm:$0xff] }
 0x6a0   :  { %v2308_v55 = vmul.f32 0.5, %v5020_v6  ;;  %v5022_v36 = vpop.eup %5021  ;;  %v6993_v6 = vld [vmem:[#allocation17_spill] sm:$0xff] }
 0x6a1   :  { %v2310_v19 = vadd.f32 0.5, %v2307_v63  ;;  %v5024_v9 = vpop.eup %5023  ;;  %v6992_v63 = vld [vmem:[#allocation16_spill] sm:$0xff] }
 0x6a2   :  { %v2311_v48 = vadd.f32 0.5, %v2308_v55  ;;  %v2309_v62 = vmul.f32 0.5, %v5024_v9  ;;  %v6995_v55 = vld [vmem:[#allocation19_spill] sm:$0xff] }
 0x6a3   :  { %v2314_v31 = vmul.f32 %v5022_v36, %v2310_v19  ;;  %v6994_v19 = vld [vmem:[#allocation18_spill] sm:$0xff]  ;;  %v6996_v36 = vld [vmem:[#allocation20_spill] sm:$0xff]  ;;  %v6999_v9 = vld [vmem:[#allocation23_spill] sm:$0xff] }
 0x6a4   :  { %v2313_v51 = vmul.f32 %v2311_v48, %v6066_v0  ;;  %v2312_v61 = vadd.f32 0.5, %v2309_v62  ;;  %v6986_v0 = vld [vmem:[#allocation10_spill] sm:$0xff]  ;;  %v6997_v48 = vld [vmem:[#allocation21_spill] sm:$0xff]  ;;  %v7000_v62 = vld [vmem:[#allocation24_spill] sm:$0xff] }
 0x6a6   :  { %v6180_v11 = vadd.f32 %v2314_v31, %v2313_v51  ;;  %v6987_v31 = vld [vmem:[#allocation11_spill] sm:$0xff]  ;;  %v6998_v51 = vld [vmem:[#allocation22_spill] sm:$0xff] }
 0x6a8   :  { %5025 = vtanh.f32 %v6180_v11 }
 0x6b2   :  { %v5026_v35 = vpop.eup %5025 }
 0x6b3   :  { %v2317_v47 = vmul.f32 %v5026_v35, %v2312_v61  ;;  %v7001_v61 = vld [vmem:[#allocation25_spill] sm:$0xff]  ;;  %v7002_v35 = vld [vmem:[#allocation26_spill] sm:$0xff] }
 0x6b5   :  { %2383 = vmatmul.mubr.f32.vlgmr.msra.gmra.mrb[26].mxu0 %v2317_v47  ;;  %2454 = vmatmul.mubr.f32.vlgmr.msra.gmra.mrb[26].mxu1 %v2317_v47 }
 0x6b6   :  { %4439 = vmatpush1.bf16.msra.mxu0 %v5218_v14  ;;  %4471 = vmatpush1.bf16.msra.mxu1 %v5222_v17 }
 0x6b7   :  { %4441 = vmatprep.subr.bf16.mxu0 %v5231_v25  ;;  %4473 = vmatprep.subr.bf16.mxu1 %v5233_v26 }
 0x6b8   :  { %2539 = vmatprep.mubr.f32.mxu0 %v6678_v32  ;;  %2610 = vmatprep.mubr.f32.mxu1 %v6678_v32 }
 0x6ba   :  { %4443 = vmatpush1.bf16.msra.mxu0 %v5237_v29  ;;  %4475 = vmatpush1.bf16.msra.mxu1 %v5239_v30 }
 0x6bb   :  { %4445 = vmatprep.subr.bf16.mxu0 %v5250_v40  ;;  %4477 = vmatprep.subr.bf16.mxu1 %v5252_v41 }
 0x6be   :  { %4447 = vmatpush1.bf16.msra.mxu0 %v5256_v44  ;;  %4479 = vmatpush1.bf16.msra.mxu1 %v5258_v45 }
 0x6bf   :  { %4449 = vmatprep.subr.bf16.mxu0 %v5269_v53  ;;  %4481 = vmatprep.subr.bf16.mxu1 %v5271_v54 }
 0x6c2   :  { %4451 = vmatpush1.bf16.msra.mxu0 %v5275_v57  ;;  %4483 = vmatpush1.bf16.msra.mxu1 %v5277_v58 }
 0x6c3   :  { %4453 = vmatprep.subr.bf16.mxu0 %v5288_v3  ;;  %4485 = vmatprep.subr.bf16.mxu1 %v5290_v4 }
 0x6c6   :  { %4455 = vmatpush1.bf16.msra.mxu0 %v5294_v7  ;;  %4487 = vmatpush1.bf16.msra.mxu1 %v5296_v8 }
 0x6c7   :  { %4457 = vmatprep.subr.bf16.mxu0 %v5307_v20  ;;  %4489 = vmatprep.subr.bf16.mxu1 %v5309_v21 }
 0x6ca   :  { %4459 = vmatpush1.bf16.msra.mxu0 %v5313_v24  ;;  %4491 = vmatpush1.bf16.msra.mxu1 %v5315_v27 }
 0x6cb   :  { %4461 = vmatprep.subr.bf16.mxu0 %v5326_v37  ;;  %4493 = vmatprep.subr.bf16.mxu1 %v5328_v38 }
 0x6ce   :  { %4463 = vmatpush1.bf16.msra.mxu0 %v5332_v43  ;;  %4495 = vmatpush1.bf16.msra.mxu1 %v5334_v46 }
 0x6cf   :  { %4465 = vmatprep.subr.bf16.mxu0 %v5345_v59  ;;  %4497 = vmatprep.subr.bf16.mxu1 %v5347_v60 }
 0x6d2   :  { %4467 = vmatpush1.bf16.msra.mxu0 %v5351_v1  ;;  %4499 = vmatpush1.bf16.msra.mxu1 %v5353_v2 }
 0x6d3   :  { %4501 = vmatprep.subr.bf16.mxu0 %v5359_v15  ;;  %4565 = vmatprep.subr.bf16.mxu1 %v5361_v16 }
 0x6d5   :  { %2540 = vmatmul.mubr.f32.vlgmr.msra.gmra.mrb[12].mxu0 %v2317_v47  ;;  %2611 = vmatmul.mubr.f32.vlgmr.msra.gmra.mrb[12].mxu1 %v2317_v47  ;;  %v7003_v47 = vld [vmem:[#allocation27_spill] sm:$0xff] }
 0x6d6   :  { %4503 = vmatpush1.bf16.msra.mxu0 %v5367_v23  ;;  %4567 = vmatpush1.bf16.msra.mxu1 %v5369_v28 }
 0x6d7   :  { %4505 = vmatprep.subr.bf16.mxu0 %v5373_v33  ;;  %4569 = vmatprep.subr.bf16.mxu1 %v5375_v34 }
 0x6da   :  { %4507 = vmatpush1.bf16.msra.mxu0 %v5383_v49  ;;  %4571 = vmatpush1.bf16.msra.mxu1 %v5385_v50 }
 0x6db   :  { %4509 = vmatprep.subr.bf16.mxu0 %v6986_v0  ;;  %4573 = vmatprep.subr.bf16.mxu1 %v6987_v31 }
 0x6de   :  { %4511 = vmatpush1.bf16.msra.mxu0 %v6988_v18  ;;  %4575 = vmatpush1.bf16.msra.mxu1 %v6989_v39 }
 0x6df   :  { %4513 = vmatprep.subr.bf16.mxu0 %v6990_v56  ;;  %4577 = vmatprep.subr.bf16.mxu1 %v6991_v42 }
 0x6e2   :  { %4515 = vmatpush1.bf16.msra.mxu0 %v6992_v63  ;;  %4579 = vmatpush1.bf16.msra.mxu1 %v6993_v6  ;;  %v7004_v6 = vld [vmem:[#allocation28_spill] sm:$0xff]  ;;  %v7044_v63 = vld [vmem:[#allocation66_spill] sm:$0xff] }
 0x6e3   :  { %4517 = vmatprep.subr.bf16.mxu0 %v6994_v19  ;;  %4581 = vmatprep.subr.bf16.mxu1 %v6995_v55  ;;  %v7005_v19 = vld [vmem:[#allocation29_spill] sm:$0xff]  ;;  %v7006_v55 = vld [vmem:[#allocation30_spill] sm:$0xff] }
 0x6e6   :  { %4519 = vmatpush1.bf16.msra.mxu0 %v6996_v36  ;;  %4583 = vmatpush1.bf16.msra.mxu1 %v6997_v48  ;;  %v7007_v36 = vld [vmem:[#allocation31_spill] sm:$0xff]  ;;  %v7008_v48 = vld [vmem:[#allocation32_spill] sm:$0xff] }
 0x6e7   :  { %4521 = vmatprep.subr.bf16.mxu0 %v6998_v51  ;;  %4585 = vmatprep.subr.bf16.mxu1 %v6999_v9  ;;  %v7009_v51 = vld [vmem:[#allocation33_spill] sm:$0xff]  ;;  %v7010_v9 = vld [vmem:[#allocation34_spill] sm:$0xff] }
 0x6ea   :  { %4523 = vmatpush1.bf16.msra.mxu0 %v7000_v62  ;;  %4587 = vmatpush1.bf16.msra.mxu1 %v7001_v61  ;;  %v7011_v62 = vld [vmem:[#allocation35_spill] sm:$0xff]  ;;  %v7012_v61 = vld [vmem:[#allocation36_spill] sm:$0xff] }
 0x6eb   :  { %4525 = vmatprep.subr.bf16.mxu0 %v7002_v35  ;;  %4589 = vmatprep.subr.bf16.mxu1 %v7003_v47  ;;  %v7013_v35 = vld [vmem:[#allocation37_spill] sm:$0xff]  ;;  %v7014_v47 = vld [vmem:[#allocation38_spill] sm:$0xff] }
 0x6ee   :  { %4527 = vmatpush1.bf16.msra.mxu0 %v7004_v6  ;;  %4591 = vmatpush1.bf16.msra.mxu1 %v7005_v19  ;;  %v7015_v6 = vld [vmem:[#allocation39_spill] sm:$0xff]  ;;  %v7016_v19 = vld [vmem:[#allocation40_spill] sm:$0xff] }
 0x6ef   :  { %4529 = vmatprep.subr.bf16.mxu0 %v7006_v55  ;;  %4593 = vmatprep.subr.bf16.mxu1 %v7007_v36  ;;  %v7017_v55 = vld [vmem:[#allocation41_spill] sm:$0xff]  ;;  %v7018_v36 = vld [vmem:[#allocation42_spill] sm:$0xff] }
 0x6f2   :  { %4531 = vmatpush1.bf16.msra.mxu0 %v7008_v48  ;;  %4595 = vmatpush1.bf16.msra.mxu1 %v7009_v51  ;;  %v7019_v48 = vld [vmem:[#allocation43_spill] sm:$0xff]  ;;  %v7020_v51 = vld [vmem:[#allocation44_spill] sm:$0xff] }
 0x6f3   :  { %4533 = vmatprep.subr.bf16.mxu0 %v7010_v9  ;;  %4597 = vmatprep.subr.bf16.mxu1 %v7011_v62  ;;  %v7021_v9 = vld [vmem:[#allocation45_spill] sm:$0xff]  ;;  %v7022_v62 = vld [vmem:[#allocation46_spill] sm:$0xff] }
 0x6f6   :  { %4535 = vmatpush1.bf16.msra.mxu0 %v7012_v61  ;;  %4599 = vmatpush1.bf16.msra.mxu1 %v7013_v35  ;;  %v7023_v61 = vld [vmem:[#allocation47_spill] sm:$0xff]  ;;  %v7024_v35 = vld [vmem:[#allocation48_spill] sm:$0xff] }
 0x6f7   :  { %4537 = vmatprep.subr.bf16.mxu0 %v7014_v47  ;;  %4601 = vmatprep.subr.bf16.mxu1 %v7015_v6  ;;  %v7025_v47 = vld [vmem:[#allocation49_spill] sm:$0xff]  ;;  %v7026_v6 = vld [vmem:[#allocation50_spill] sm:$0xff] }
 0x6fa   :  { %4539 = vmatpush1.bf16.msra.mxu0 %v7016_v19  ;;  %4603 = vmatpush1.bf16.msra.mxu1 %v7017_v55  ;;  %v7027_v19 = vld [vmem:[#allocation51_spill] sm:$0xff]  ;;  %v7028_v55 = vld [vmem:[#allocation52_spill] sm:$0xff] }
 0x6fb   :  { %4541 = vmatprep.subr.bf16.mxu0 %v7018_v36  ;;  %4605 = vmatprep.subr.bf16.mxu1 %v7019_v48  ;;  %v7029_v36 = vld [vmem:[#allocation53_spill] sm:$0xff]  ;;  %v7030_v48 = vld [vmem:[#allocation54_spill] sm:$0xff] }
 0x6fe   :  { %4543 = vmatpush1.bf16.msra.mxu0 %v7020_v51  ;;  %4607 = vmatpush1.bf16.msra.mxu1 %v7021_v9  ;;  %v7031_v51 = vld [vmem:[#allocation55_spill] sm:$0xff]  ;;  %v7032_v9 = vld [vmem:[#allocation56_spill] sm:$0xff] }
 0x6ff   :  { %4545 = vmatprep.subr.bf16.mxu0 %v7022_v62  ;;  %4609 = vmatprep.subr.bf16.mxu1 %v7023_v61  ;;  %v7033_v62 = vld [vmem:[#allocation57_spill] sm:$0xff]  ;;  %v7034_v61 = vld [vmem:[#allocation58_spill] sm:$0xff] }
 0x702   :  { %4547 = vmatpush1.bf16.msra.mxu0 %v7024_v35  ;;  %4611 = vmatpush1.bf16.msra.mxu1 %v7025_v47  ;;  %v7035_v35 = vld [vmem:[#allocation59_spill] sm:$0xff]  ;;  %v7036_v47 = vld [vmem:[#allocation60_spill] sm:$0xff] }
 0x703   :  { %4549 = vmatprep.subr.bf16.mxu0 %v7026_v6  ;;  %4613 = vmatprep.subr.bf16.mxu1 %v7027_v19  ;;  %v7037_v6 = vld [vmem:[#allocation61_spill] sm:$0xff]  ;;  %v7038_v19 = vld [vmem:[#allocation62_spill] sm:$0xff] }
 0x706   :  { %4551 = vmatpush1.bf16.msra.mxu0 %v7028_v55  ;;  %4615 = vmatpush1.bf16.msra.mxu1 %v7029_v36  ;;  %v7039_v55 = vld [vmem:[#allocation63_spill] sm:$0xff]  ;;  %v7040_v36 = vld [vmem:[#allocation64_spill] sm:$0xff] }
 0x707   :  { %4553 = vmatprep.subr.bf16.mxu0 %v7030_v48  ;;  %4617 = vmatprep.subr.bf16.mxu1 %v7031_v51  ;;  %v7041_v48 = vld [vmem:[#allocation65_spill] sm:$0xff]  ;;  %v7042_v51 = vld [vmem:[#allocation8_spill] sm:$0xff] }
 0x70a   :  { %4555 = vmatpush1.bf16.msra.mxu0 %v7032_v9  ;;  %4619 = vmatpush1.bf16.msra.mxu1 %v7033_v62  ;;  %v7043_v9 = vld [vmem:[#allocation9_spill] sm:$0xff] }
 0x70b   :  { %4557 = vmatprep.subr.bf16.mxu0 %v7034_v61  ;;  %4621 = vmatprep.subr.bf16.mxu1 %v7035_v35 }
 0x70e   :  { %4559 = vmatpush1.bf16.msra.mxu0 %v7036_v47  ;;  %4623 = vmatpush1.bf16.msra.mxu1 %v7037_v6 }
 0x70f   :  { %4561 = vmatprep.subr.bf16.mxu0 %v7038_v19  ;;  %4625 = vmatprep.subr.bf16.mxu1 %v7039_v55 }
 0x712   :  { %4563 = vmatpush1.bf16.msra.mxu0 %v7040_v36  ;;  %4627 = vmatpush1.bf16.msra.mxu1 %v7041_v48  ;;  %v7045_v36 = vld [vmem:[#allocation72_spill] sm:$0xff] }
 0x713   :  { %4629 = vmatprep.subr.bf16.mxu0 %v7042_v51  ;;  %4661 = vmatprep.subr.bf16.mxu1 %v7043_v9 }
 0x788   :  { %v2384_v62 = vpop.f32.mrb[26].mxu0  ;;  %v2455_v61 = vpop.f32.mrb[26].mxu1 }
 0x789   :  { %v2385_v35 = vadd.f32 %v2384_v62, %v7044_v63  ;;  %v2386_v42 = vpop.f32.mrb[27].mxu0  ;;  %v2457_v47 = vpop.f32.mrb[27].mxu1  ;;  %v2456_v19 = vadd.f32 %v2455_v61, %v6799_v12 }
 0x78a   :  { %v2387_v6 = vadd.f32 %v2386_v42, %v6798_v52  ;;  %v2458_v55 = vadd.f32 %v2457_v47, %v7045_v36  ;;  %v7046_v47 = vld [vmem:[#allocation67_spill] sm:$0xff] }
 0x78b   :  { %5027 = vtanh.f32 %v2385_v35 }
 0x78c   :  { %5029 = vtanh.f32 %v2387_v6 }
 0x78d   :  { %5031 = vtanh.f32 %v2456_v19 }
 0x78e   :  { %5033 = vtanh.f32 %v2458_v55 }
 0x795   :  { %v5028_v48 = vpop.eup %5027 }
 0x796   :  { %v2464_v56 = vmul.f32 0.5, %v5028_v48  ;;  %v5030_v51 = vpop.eup %5029 }
 0x797   :  { %v2465_v9 = vmul.f32 0.5, %v5030_v51  ;;  %v5032_v18 = vpop.eup %5031 }
 0x798   :  { %v2467_v39 = vadd.f32 0.5, %v2464_v56  ;;  %v5034_v42 = vpop.eup %5033 }
 0x799   :  { %v2468_v31 = vadd.f32 0.5, %v2465_v9  ;;  %v2466_v6 = vmul.f32 0.5, %v5034_v42 }
 0x79a   :  { %v2471_v62 = vmul.f32 %v5032_v18, %v2467_v39 }
 0x79b   :  { %v2470_v63 = vmul.f32 %v2468_v31, %v6172_v13  ;;  %v2469_v35 = vadd.f32 0.5, %v2466_v6 }
 0x79d   :  { %v6286_v0 = vadd.f32 %v2471_v62, %v2470_v63 }
 0x79f   :  { %5035 = vtanh.f32 %v6286_v0 }
 0x7a8   :  { %v2541_v19 = vpop.f32.mrb[12].mxu0  ;;  %v2612_v61 = vpop.f32.mrb[12].mxu1 }
 0x7a9   :  { %v4856_v48 = vadd.f32 %v2541_v19, %v7046_v47  ;;  %v2543_v36 = vpop.f32.mrb[13].mxu0  ;;  %v2614_v56 = vpop.f32.mrb[13].mxu1  ;;  %v4872_v18 = vadd.f32 %v2612_v61, %v6741_v10 }
 0x7aa   :  { %v5036_v51 = vpop.eup %5035  ;;  %v4857_v55 = vadd.f32 %v2543_v36, %v6740_v5  ;;  %v4873_v31 = vadd.f32 %v2614_v56, %v5589_v22 }
 0x7ab   :  { %5037 = vtanh.f32 %v4856_v48  ;;  %v2474_v13 = vmul.f32 %v5036_v51, %v2469_v35 }
 0x7ac   :  { %5039 = vtanh.f32 %v4857_v55 }
 0x7ad   :  { %2700 = vmatprep.mubr.f32.mxu0 %v2474_v13  ;;  %2771 = vmatprep.mubr.f32.mxu1 %v2474_v13  ;;  %5041 = vtanh.f32 %v4872_v18  ;;  %v7087_v18 = vld [vmem:[#allocation50_spill] sm:$0xff]  ;;  %v7088_v13 = vld [vmem:[#allocation51_spill] sm:$0xff] }
 0x7ae   :  { %5043 = vtanh.f32 %v4873_v31  ;;  %v7089_v31 = vld [vmem:[#allocation52_spill] sm:$0xff] }
 0x7b5   :  { %v5038_v39 = vpop.eup %5037 }
 0x7b6   :  { %v2625_v63 = vmul.f32 0.5, %v5038_v39  ;;  %v5040_v9 = vpop.eup %5039  ;;  %v7090_v39 = vld [vmem:[#allocation53_spill] sm:$0xff] }
 0x7b7   :  { %v2626_v42 = vmul.f32 0.5, %v5040_v9  ;;  %v5042_v6 = vpop.eup %5041  ;;  %v7092_v9 = vld [vmem:[#allocation55_spill] sm:$0xff] }
 0x7b8   :  { %v2628_v62 = vadd.f32 0.5, %v2625_v63  ;;  %v5044_v61 = vpop.eup %5043  ;;  %v7091_v63 = vld [vmem:[#allocation54_spill] sm:$0xff] }
 0x7b9   :  { %v2629_v19 = vadd.f32 0.5, %v2626_v42  ;;  %v2627_v35 = vmul.f32 0.5, %v5044_v61  ;;  %v7094_v42 = vld [vmem:[#allocation57_spill] sm:$0xff] }
 0x7ba   :  { %v2632_v47 = vmul.f32 %v5042_v6, %v2628_v62  ;;  %v7093_v62 = vld [vmem:[#allocation56_spill] sm:$0xff]  ;;  %v7095_v6 = vld [vmem:[#allocation58_spill] sm:$0xff]  ;;  %v7098_v61 = vld [vmem:[#allocation61_spill] sm:$0xff] }
 0x7bb   :  { %v2631_v36 = vmul.f32 %v2629_v19, %v6180_v11  ;;  %v2630_v51 = vadd.f32 0.5, %v2627_v35  ;;  %v7085_v11 = vld [vmem:[#allocation48_spill] sm:$0xff]  ;;  %v7096_v19 = vld [vmem:[#allocation59_spill] sm:$0xff]  ;;  %v7099_v35 = vld [vmem:[#allocation62_spill] sm:$0xff] }
 0x7bd   :  { %v6294_v48 = vadd.f32 %v2632_v47, %v2631_v36  ;;  %v7086_v47 = vld [vmem:[#allocation49_spill] sm:$0xff]  ;;  %v7097_v36 = vld [vmem:[#allocation60_spill] sm:$0xff] }
 0x7bf   :  { %5045 = vtanh.f32 %v6294_v48 }
 0x7c9   :  { %v5046_v55 = vpop.eup %5045 }
 0x7ca   :  { %v2635_v56 = vmul.f32 %v5046_v55, %v2630_v51  ;;  %v7100_v51 = vld [vmem:[#allocation63_spill] sm:$0xff]  ;;  %v7101_v55 = vld [vmem:[#allocation64_spill] sm:$0xff] }
 0x7cc   :  { %2701 = vmatmul.mubr.f32.vlgmr.msra.gmra.mrb[28].mxu0 %v2635_v56  ;;  %2772 = vmatmul.mubr.f32.vlgmr.msra.gmra.mrb[28].mxu1 %v2635_v56 }
 0x7cd   :  { %4631 = vmatpush1.bf16.msra.mxu0 %v5218_v14  ;;  %4663 = vmatpush1.bf16.msra.mxu1 %v5222_v17  ;;  %v7047_v14 = vld [vmem:[#allocation10_spill] sm:$0xff]  ;;  %v7048_v17 = vld [vmem:[#allocation11_spill] sm:$0xff] }
 0x7ce   :  { %4633 = vmatprep.subr.bf16.mxu0 %v5231_v25  ;;  %4665 = vmatprep.subr.bf16.mxu1 %v5233_v26  ;;  %v7049_v25 = vld [vmem:[#allocation12_spill] sm:$0xff]  ;;  %v7050_v26 = vld [vmem:[#allocation13_spill] sm:$0xff] }
 0x7cf   :  { %2857 = vmatprep.mubr.f32.mxu0 %v6678_v32  ;;  %2928 = vmatprep.mubr.f32.mxu1 %v6678_v32 }
 0x7d1   :  { %4635 = vmatpush1.bf16.msra.mxu0 %v5237_v29  ;;  %4667 = vmatpush1.bf16.msra.mxu1 %v5239_v30  ;;  %v7051_v29 = vld [vmem:[#allocation14_spill] sm:$0xff]  ;;  %v7052_v30 = vld [vmem:[#allocation15_spill] sm:$0xff] }
 0x7d2   :  { %4637 = vmatprep.subr.bf16.mxu0 %v5250_v40  ;;  %4669 = vmatprep.subr.bf16.mxu1 %v5252_v41  ;;  %v7053_v40 = vld [vmem:[#allocation16_spill] sm:$0xff]  ;;  %v7054_v41 = vld [vmem:[#allocation17_spill] sm:$0xff] }
 0x7d5   :  { %4639 = vmatpush1.bf16.msra.mxu0 %v5256_v44  ;;  %4671 = vmatpush1.bf16.msra.mxu1 %v5258_v45  ;;  %v7055_v44 = vld [vmem:[#allocation18_spill] sm:$0xff]  ;;  %v7056_v45 = vld [vmem:[#allocation19_spill] sm:$0xff] }
 0x7d6   :  { %4641 = vmatprep.subr.bf16.mxu0 %v5269_v53  ;;  %4673 = vmatprep.subr.bf16.mxu1 %v5271_v54  ;;  %v7057_v53 = vld [vmem:[#allocation20_spill] sm:$0xff]  ;;  %v7058_v54 = vld [vmem:[#allocation21_spill] sm:$0xff] }
 0x7d9   :  { %4643 = vmatpush1.bf16.msra.mxu0 %v5275_v57  ;;  %4675 = vmatpush1.bf16.msra.mxu1 %v5277_v58  ;;  %v7059_v57 = vld [vmem:[#allocation22_spill] sm:$0xff]  ;;  %v7060_v58 = vld [vmem:[#allocation23_spill] sm:$0xff] }
 0x7da   :  { %4645 = vmatprep.subr.bf16.mxu0 %v5288_v3  ;;  %4677 = vmatprep.subr.bf16.mxu1 %v5290_v4  ;;  %v7061_v3 = vld [vmem:[#allocation24_spill] sm:$0xff]  ;;  %v7062_v4 = vld [vmem:[#allocation25_spill] sm:$0xff] }
 0x7dd   :  { %4647 = vmatpush1.bf16.msra.mxu0 %v5294_v7  ;;  %4679 = vmatpush1.bf16.msra.mxu1 %v5296_v8  ;;  %v7063_v7 = vld [vmem:[#allocation26_spill] sm:$0xff]  ;;  %v7064_v8 = vld [vmem:[#allocation27_spill] sm:$0xff] }
 0x7de   :  { %4649 = vmatprep.subr.bf16.mxu0 %v5307_v20  ;;  %4681 = vmatprep.subr.bf16.mxu1 %v5309_v21  ;;  %v7065_v20 = vld [vmem:[#allocation28_spill] sm:$0xff]  ;;  %v7066_v21 = vld [vmem:[#allocation29_spill] sm:$0xff] }
 0x7e1   :  { %4651 = vmatpush1.bf16.msra.mxu0 %v5313_v24  ;;  %4683 = vmatpush1.bf16.msra.mxu1 %v5315_v27  ;;  %v7067_v24 = vld [vmem:[#allocation30_spill] sm:$0xff]  ;;  %v7068_v27 = vld [vmem:[#allocation31_spill] sm:$0xff] }
 0x7e2   :  { %4653 = vmatprep.subr.bf16.mxu0 %v5326_v37  ;;  %4685 = vmatprep.subr.bf16.mxu1 %v5328_v38  ;;  %v7069_v37 = vld [vmem:[#allocation32_spill] sm:$0xff]  ;;  %v7070_v38 = vld [vmem:[#allocation33_spill] sm:$0xff] }
 0x7e5   :  { %4655 = vmatpush1.bf16.msra.mxu0 %v5332_v43  ;;  %4687 = vmatpush1.bf16.msra.mxu1 %v5334_v46  ;;  %v7071_v43 = vld [vmem:[#allocation34_spill] sm:$0xff]  ;;  %v7072_v46 = vld [vmem:[#allocation35_spill] sm:$0xff] }
 0x7e6   :  { %4657 = vmatprep.subr.bf16.mxu0 %v5345_v59  ;;  %4689 = vmatprep.subr.bf16.mxu1 %v5347_v60  ;;  %v7073_v59 = vld [vmem:[#allocation36_spill] sm:$0xff]  ;;  %v7074_v60 = vld [vmem:[#allocation37_spill] sm:$0xff] }
 0x7e9   :  { %4659 = vmatpush1.bf16.msra.mxu0 %v5351_v1  ;;  %4691 = vmatpush1.bf16.msra.mxu1 %v5353_v2  ;;  %v7075_v1 = vld [vmem:[#allocation38_spill] sm:$0xff]  ;;  %v7076_v2 = vld [vmem:[#allocation39_spill] sm:$0xff] }
 0x7ea   :  { %4693 = vmatprep.subr.bf16.mxu0 %v5359_v15  ;;  %4757 = vmatprep.subr.bf16.mxu1 %v5361_v16  ;;  %v7077_v15 = vld [vmem:[#allocation40_spill] sm:$0xff]  ;;  %v7078_v16 = vld [vmem:[#allocation41_spill] sm:$0xff] }
 0x7ec   :  { %2858 = vmatmul.mubr.f32.vlgmr.msra.gmra.mrb[14].mxu0 %v2635_v56  ;;  %2929 = vmatmul.mubr.f32.vlgmr.msra.gmra.mrb[14].mxu1 %v2635_v56  ;;  %v7102_v56 = vld [vmem:[#allocation65_spill] sm:$0xff] }
 0x7ed   :  { %4695 = vmatpush1.bf16.msra.mxu0 %v5367_v23  ;;  %4759 = vmatpush1.bf16.msra.mxu1 %v5369_v28  ;;  %v7079_v23 = vld [vmem:[#allocation42_spill] sm:$0xff]  ;;  %v7080_v28 = vld [vmem:[#allocation43_spill] sm:$0xff] }
 0x7ee   :  { %4697 = vmatprep.subr.bf16.mxu0 %v5373_v33  ;;  %4761 = vmatprep.subr.bf16.mxu1 %v5375_v34  ;;  %v7081_v33 = vld [vmem:[#allocation44_spill] sm:$0xff]  ;;  %v7082_v34 = vld [vmem:[#allocation45_spill] sm:$0xff] }
 0x7f1   :  { %4699 = vmatpush1.bf16.msra.mxu0 %v5383_v49  ;;  %4763 = vmatpush1.bf16.msra.mxu1 %v5385_v50  ;;  %v7083_v49 = vld [vmem:[#allocation46_spill] sm:$0xff]  ;;  %v7084_v50 = vld [vmem:[#allocation47_spill] sm:$0xff] }
 0x7f2   :  { %4701 = vmatprep.subr.bf16.mxu0 %v7047_v14  ;;  %4765 = vmatprep.subr.bf16.mxu1 %v7048_v17 }
 0x7f5   :  { %4703 = vmatpush1.bf16.msra.mxu0 %v7049_v25  ;;  %4767 = vmatpush1.bf16.msra.mxu1 %v7050_v26  ;;  %v7103_v25 = vld [vmem:[#allocation66_spill] sm:$0xff] }
 0x7f6   :  { %4705 = vmatprep.subr.bf16.mxu0 %v7051_v29  ;;  %4769 = vmatprep.subr.bf16.mxu1 %v7052_v30 }
 0x7f9   :  { %4707 = vmatpush1.bf16.msra.mxu0 %v7053_v40  ;;  %4771 = vmatpush1.bf16.msra.mxu1 %v7054_v41 }
 0x7fa   :  { %4709 = vmatprep.subr.bf16.mxu0 %v7055_v44  ;;  %4773 = vmatprep.subr.bf16.mxu1 %v7056_v45  ;;  %v7104_v44 = vld [vmem:[#allocation72_spill] sm:$0xff] }
 0x7fd   :  { %4711 = vmatpush1.bf16.msra.mxu0 %v7057_v53  ;;  %4775 = vmatpush1.bf16.msra.mxu1 %v7058_v54 }
 0x7fe   :  { %4713 = vmatprep.subr.bf16.mxu0 %v7059_v57  ;;  %4777 = vmatprep.subr.bf16.mxu1 %v7060_v58 }
 0x801   :  { %4715 = vmatpush1.bf16.msra.mxu0 %v7061_v3  ;;  %4779 = vmatpush1.bf16.msra.mxu1 %v7062_v4 }
 0x802   :  { %4717 = vmatprep.subr.bf16.mxu0 %v7063_v7  ;;  %4781 = vmatprep.subr.bf16.mxu1 %v7064_v8 }
 0x805   :  { %4719 = vmatpush1.bf16.msra.mxu0 %v7065_v20  ;;  %4783 = vmatpush1.bf16.msra.mxu1 %v7066_v21 }
 0x806   :  { %4721 = vmatprep.subr.bf16.mxu0 %v7067_v24  ;;  %4785 = vmatprep.subr.bf16.mxu1 %v7068_v27 }
 0x809   :  { %4723 = vmatpush1.bf16.msra.mxu0 %v7069_v37  ;;  %4787 = vmatpush1.bf16.msra.mxu1 %v7070_v38 }
 0x80a   :  { %4725 = vmatprep.subr.bf16.mxu0 %v7071_v43  ;;  %4789 = vmatprep.subr.bf16.mxu1 %v7072_v46  ;;  %v7105_v46 = vld [vmem:[#allocation67_spill] sm:$0xff] }
 0x80d   :  { %4727 = vmatpush1.bf16.msra.mxu0 %v7073_v59  ;;  %4791 = vmatpush1.bf16.msra.mxu1 %v7074_v60 }
 0x80e   :  { %4729 = vmatprep.subr.bf16.mxu0 %v7075_v1  ;;  %4793 = vmatprep.subr.bf16.mxu1 %v7076_v2 }
 0x811   :  { %4731 = vmatpush1.bf16.msra.mxu0 %v7077_v15  ;;  %4795 = vmatpush1.bf16.msra.mxu1 %v7078_v16 }
 0x812   :  { %4733 = vmatprep.subr.bf16.mxu0 %v7079_v23  ;;  %4797 = vmatprep.subr.bf16.mxu1 %v7080_v28 }
 0x815   :  { %4735 = vmatpush1.bf16.msra.mxu0 %v7081_v33  ;;  %4799 = vmatpush1.bf16.msra.mxu1 %v7082_v34 }
 0x816   :  { %4737 = vmatprep.subr.bf16.mxu0 %v7083_v49  ;;  %4801 = vmatprep.subr.bf16.mxu1 %v7084_v50 }
 0x819   :  { %4739 = vmatpush1.bf16.msra.mxu0 %v7085_v11  ;;  %4803 = vmatpush1.bf16.msra.mxu1 %v7086_v47 }
 0x81a   :  { %4741 = vmatprep.subr.bf16.mxu0 %v7087_v18  ;;  %4805 = vmatprep.subr.bf16.mxu1 %v7088_v13 }
 0x81d   :  { %4743 = vmatpush1.bf16.msra.mxu0 %v7089_v31  ;;  %4807 = vmatpush1.bf16.msra.mxu1 %v7090_v39 }
 0x81e   :  { %4745 = vmatprep.subr.bf16.mxu0 %v7091_v63  ;;  %4809 = vmatprep.subr.bf16.mxu1 %v7092_v9 }
 0x821   :  { %4747 = vmatpush1.bf16.msra.mxu0 %v7093_v62  ;;  %4811 = vmatpush1.bf16.msra.mxu1 %v7094_v42  ;;  %v3112_v62 = vld [vmem:[%s6473_s6 + $0x8] sm:$0xff] }
 0x822   :  { %4749 = vmatprep.subr.bf16.mxu0 %v7095_v6  ;;  %4813 = vmatprep.subr.bf16.mxu1 %v7096_v19  ;;  %v5130_v6 = vmov 0.0|0.0   ;;  %v3114_v19 = vld [vmem:[%s6473_s6 + $0x18] sm:$0xff] }
 0x825   :  { %4751 = vmatpush1.bf16.msra.mxu0 %v7097_v36  ;;  %4815 = vmatpush1.bf16.msra.mxu1 %v7098_v61  ;;  %v3115_v61 = vld [vmem:[%s6473_s6 + $0x20] sm:$0xff] }
 0x826   :  { %4753 = vmatprep.subr.bf16.mxu0 %v7099_v35  ;;  %4817 = vmatprep.subr.bf16.mxu1 %v7100_v51  ;;  %v3116_v35 = vld [vmem:[%s6473_s6 + $0x28] sm:$0xff] }
 0x827   :  { %v4827_v51 = vpack.c.bf16 %v3116_v35, %v3115_v61 }
 0x829   :  { %4755 = vmatpush1.bf16.msra.mxu0 %v7101_v55  ;;  %4819 = vmatpush1.bf16.msra.mxu1 %v7102_v56  ;;  %v3117_v55 = vld [vmem:[%s6473_s6 + $0x30] sm:$0xff]  ;;  %v3118_v56 = vld [vmem:[%s6473_s6 + $0x38] sm:$0xff] }
 0x82a   :  { %4820 = vmatprep.subr.bf16.mxu0 %v5130_v6 }
 0x89f   :  { %v2702_v14 = vpop.f32.mrb[28].mxu0  ;;  %v2773_v17 = vpop.f32.mrb[28].mxu1 }
 0x8a0   :  { %v2703_v26 = vadd.f32 %v2702_v14, %v7103_v25  ;;  %v2704_v29 = vpop.f32.mrb[29].mxu0  ;;  %v2775_v30 = vpop.f32.mrb[29].mxu1  ;;  %v2774_v41 = vadd.f32 %v2773_v17, %v6799_v12  ;;  %v4830_v14 = vpack.c.bf16 %v3118_v56, %v3117_v55  ;;  %v3119_v17 = vld [vmem:[%s6473_s6 + $0x40] sm:$0xff] }
 0x8a1   :  { %v2705_v40 = vadd.f32 %v2704_v29, %v6798_v52  ;;  %v2776_v45 = vadd.f32 %v2775_v30, %v7104_v44  ;;  %v3121_v30 = vld [vmem:[%s6473_s6 + $0x50] sm:$0xff] }
 0x8a2   :  { %5047 = vtanh.f32 %v2703_v26  ;;  %v3120_v26 = vld [vmem:[%s6473_s6 + $0x48] sm:$0xff] }
 0x8a3   :  { %5049 = vtanh.f32 %v2705_v40  ;;  %v4833_v29 = vpack.c.bf16 %v3120_v26, %v3119_v17  ;;  %v3122_v40 = vld [vmem:[%s6473_s6 + $0x58] sm:$0xff] }
 0x8a4   :  { %5051 = vtanh.f32 %v2774_v41  ;;  %v4836_v41 = vpack.c.bf16 %v3122_v40, %v3121_v30 }
 0x8a5   :  { %5053 = vtanh.f32 %v2776_v45  ;;  %v3123_v45 = vld [vmem:[%s6473_s6 + $0x60] sm:$0xff] }
 0x8ac   :  { %v5048_v53 = vpop.eup %5047 }
 0x8ad   :  { %v2782_v54 = vmul.f32 0.5, %v5048_v53  ;;  %v5050_v57 = vpop.eup %5049  ;;  %v3124_v53 = vld [vmem:[%s6473_s6 + $0x68] sm:$0xff] }
 0x8ae   :  { %v2783_v3 = vmul.f32 0.5, %v5050_v57  ;;  %v5052_v4 = vpop.eup %5051  ;;  %v3125_v57 = vld [vmem:[%s6473_s6 + $0x70] sm:$0xff] }
 0x8af   :  { %v2785_v58 = vadd.f32 0.5, %v2782_v54  ;;  %v5054_v24 = vpop.eup %5053  ;;  %v4839_v54 = vpack.c.bf16 %v3124_v53, %v3123_v45 }
 0x8b0   :  { %v2786_v7 = vadd.f32 0.5, %v2783_v3  ;;  %v2784_v27 = vmul.f32 0.5, %v5054_v24 }
 0x8b1   :  { %v2789_v8 = vmul.f32 %v5052_v4, %v2785_v58  ;;  %v3126_v58 = vld [vmem:[%s6473_s6 + $0x78] sm:$0xff] }
 0x8b2   :  { %v2788_v20 = vmul.f32 %v2786_v7, %v6286_v0  ;;  %v2787_v43 = vadd.f32 0.5, %v2784_v27  ;;  %v4842_v3 = vpack.c.bf16 %v3126_v58, %v3125_v57 }
 0x8b4   :  { %v6398_v21 = vadd.f32 %v2789_v8, %v2788_v20 }
 0x8b6   :  { %5055 = vtanh.f32 %v6398_v21 }
 0x8bf   :  { %v2859_v37 = vpop.f32.mrb[14].mxu0  ;;  %v2930_v38 = vpop.f32.mrb[14].mxu1 }
 0x8c0   :  { %v4858_v59 = vadd.f32 %v2859_v37, %v7105_v46  ;;  %v2861_v60 = vpop.f32.mrb[15].mxu0  ;;  %v2932_v1 = vpop.f32.mrb[15].mxu1  ;;  %v4874_v16 = vadd.f32 %v2930_v38, %v6741_v10 }
 0x8c1   :  { %v5056_v2 = vpop.eup %5055  ;;  %v4859_v15 = vadd.f32 %v2861_v60, %v6740_v5  ;;  %v4875_v23 = vadd.f32 %v2932_v1, %v5589_v22  ;;  %v3111_v22 = vld [vmem:[%s6473_s6] sm:$0xff] }
 0x8c2   :  { %5057 = vtanh.f32 %v4858_v59  ;;  %v2792_v0 = vmul.f32 %v5056_v2, %v2787_v43  ;;  %v4821_v42 = vpack.c.bf16 %v3112_v62, %v3111_v22 }
 0x8c3   :  { %5059 = vtanh.f32 %v4859_v15 }
 0x8c4   :  { %3018 = vmatprep.mubr.f32.mxu0 %v2792_v0  ;;  %3089 = vmatprep.mubr.f32.mxu1 %v2792_v0  ;;  %5061 = vtanh.f32 %v4874_v16 }
 0x8c5   :  { %5063 = vtanh.f32 %v4875_v23 }
 0x8cc   :  { %v5058_v28 = vpop.eup %5057 }
 0x8cd   :  { %v2943_v33 = vmul.f32 0.5, %v5058_v28  ;;  %v5060_v34 = vpop.eup %5059 }
 0x8ce   :  { %v2944_v50 = vmul.f32 0.5, %v5060_v34  ;;  %v5062_v11 = vpop.eup %5061 }
 0x8cf   :  { %v2946_v49 = vadd.f32 0.5, %v2943_v33  ;;  %v5064_v10 = vpop.eup %5063 }
 0x8d0   :  { %v2947_v47 = vadd.f32 0.5, %v2944_v50  ;;  %v2945_v31 = vmul.f32 0.5, %v5064_v10 }
 0x8d1   :  { %v2950_v18 = vmul.f32 %v5062_v11, %v2946_v49 }
 0x8d2   :  { %v2949_v5 = vmul.f32 %v2947_v47, %v6294_v48  ;;  %v2948_v39 = vadd.f32 0.5, %v2945_v31  ;;  %v3113_v48 = vld [vmem:[%s6473_s6 + $0x10] sm:$0xff] }
 0x8d3   :  { %v4824_v36 = vpack.c.bf16 %v3114_v19, %v3113_v48 }
 0x8d4   :  { %v2951_v13 = vadd.f32 %v2950_v18, %v2949_v5 }
 0x8d6   :  { %5065 = vtanh.f32 %v2951_v13 }
 0x8e0   :  { %v5066_v63 = vpop.eup %5065 }
 0x8e1   :  { %v2953_v9 = vmul.f32 %v5066_v63, %v2948_v39 }
 0x8e3   :  { %3019 = vmatmul.mubr.f32.vlgmr.msra.gmra.mrb[30].mxu0 %v2953_v9  ;;  %3090 = vmatmul.mubr.f32.vlgmr.msra.gmra.mrb[30].mxu1 %v2953_v9 }
 0x8e4   :  { %4822 = vmatpush3.bf16.msra.mxu0 %v4821_v42  ;;  %3281 = vmatprep.mubr.msk.f32.mxu0 %vm5131_vm2, %v6678_v32 }
 0x8e5   :  { %4823 = vmatprep.subr.bf16.mxu0 %v5130_v6 }
 0x8e8   :  { %4825 = vmatpush3.bf16.msra.mxu0 %v4824_v36 }
 0x8e9   :  { %4826 = vmatprep.subr.bf16.mxu0 %v5130_v6 }
 0x8ec   :  { %4828 = vmatpush3.bf16.msra.mxu0 %v4827_v51 }
 0x8ed   :  { %4829 = vmatprep.subr.bf16.mxu0 %v5130_v6 }
 0x8f0   :  { %4831 = vmatpush3.bf16.msra.mxu0 %v4830_v14 }
 0x8f1   :  { %4832 = vmatprep.subr.bf16.mxu0 %v5130_v6 }
 0x8f4   :  { %4834 = vmatpush3.bf16.msra.mxu0 %v4833_v29 }
 0x8f5   :  { %4835 = vmatprep.subr.bf16.mxu0 %v5130_v6 }
 0x8f8   :  { %4837 = vmatpush3.bf16.msra.mxu0 %v4836_v41 }
 0x8f9   :  { %4838 = vmatprep.subr.bf16.mxu0 %v5130_v6 }
 0x8fc   :  { %4840 = vmatpush3.bf16.msra.mxu0 %v4839_v54 }
 0x8fd   :  { %4841 = vmatprep.subr.bf16.mxu0 %v5130_v6 }
 0x900   :  { %4843 = vmatpush3.bf16.msra.mxu0 %v4842_v3 }
 0x9b6   :  { %v3020_v4 = vpop.f32.mrb[30].mxu0  ;;  %v3091_v7 = vpop.f32.mrb[30].mxu1 }
 0x9b7   :  { %v3021_v8 = vadd.f32 %v3020_v4, %v7103_v25  ;;  %v3022_v20 = vpop.f32.mrb[31].mxu0  ;;  %v3093_v24 = vpop.f32.mrb[31].mxu1  ;;  %v3092_v37 = vadd.f32 %v3091_v7, %v6799_v12 }
 0x9b8   :  { %v3023_v27 = vadd.f32 %v3022_v20, %v6798_v52  ;;  %v3094_v38 = vadd.f32 %v3093_v24, %v7104_v44  ;;  %v3231_v44 = vld [vmem:[%s6474_s7] ss:$0 sm:$0xff] }
 0x9b9   :  { %5067 = vtanh.f32 %v3021_v8 }
 0x9ba   :  { %5069 = vtanh.f32 %v3023_v27 }
 0x9bb   :  { %5071 = vtanh.f32 %v3092_v37 }
 0x9bc   :  { %5073 = vtanh.f32 %v3094_v38 }
 0x9c3   :  { %v5068_v43 = vpop.eup %5067 }
 0x9c4   :  { %v3100_v46 = vmul.f32 0.5, %v5068_v43  ;;  %v5070_v59 = vpop.eup %5069 }
 0x9c5   :  { %v3101_v32 = vmul.f32 0.5, %v5070_v59  ;;  %v5072_v1 = vpop.eup %5071 }
 0x9c6   :  { %v3103_v60 = vadd.f32 0.5, %v3100_v46  ;;  %v5074_v52 = vpop.eup %5073 }
 0x9c7   :  { %v3104_v2 = vadd.f32 0.5, %v3101_v32  ;;  %v3102_v0 = vmul.f32 0.5, %v5074_v52 }
 0x9c8   :  { %v3107_v25 = vmul.f32 %v5072_v1, %v3103_v60 }
 0x9c9   :  { %v3106_v15 = vmul.f32 %v3104_v2, %v6398_v21  ;;  %v3105_v12 = vadd.f32 0.5, %v3102_v0 }
 0x9cb   :  { %v3108_v16 = vadd.f32 %v3107_v25, %v3106_v15 }
 0x9cd   :  { %5075 = vtanh.f32 %v3108_v16 }
 0x9d7   :  { %v5076_v23 = vpop.eup %5075 }
 0x9d8   :  { %v3110_v28 = vmul.f32 %v5076_v23, %v3105_v12 }
 0x9da   :  { %3282 = vmatmul.mubr.f32.vlgmr.msra.gmra.mrb[32].mxu0 %v3110_v28 }
 0xaad   :  { %v3200_v33 = vpop.f32.mrb[32].mxu0 }
 0xaae   :  { %v3201_v34 = vadd.f32 %v3231_v44, %v3200_v33  ;;  %v3283_v49 = vpop.f32.mrb[33].mxu0 }
 0xab0   :  { %3204 = vst.msk [vmem:[%s6475_s8] sm:$0xff] %vm93_vm1, %v3201_v34 }
 0xab1   :  { %3209 = vsyncpa [#allocation3], 1 }
 0xab2   :  { %3210 = vsyncpa [#allocation5], 1 }

</bundles_post_ra>
